<compile_context>
chip_gen: v6e
topology: v6e:2x2x1
jax: 0.10.0
libtpu: 0.0.40
codegen_flags: <defaults>
</compile_context>

<pallas_src>
import functools

import jax
import jax.numpy as jnp
from jax.experimental import pallas as pl
from jax.experimental.pallas import tpu as pltpu


# ----------------------------------------------------------------------------
# Pallas kernel: out = relu?(x @ w + b), bf16 operands, f32 accumulate.
# Used for the conv layers (as im2col matmuls), gridded over batch.
# ----------------------------------------------------------------------------
def _matmul_bias_kernel(x_ref, w_ref, b_ref, o_ref, *, relu):
    acc = jnp.dot(x_ref[...], w_ref[...], preferred_element_type=jnp.float32)
    acc = acc + b_ref[...]                 # (1, N) broadcasts over rows
    if relu:
        acc = jnp.maximum(acc, 0.0)
    o_ref[...] = acc.astype(o_ref.dtype)


def conv_matmul(cols, w, b, *, relu, out_dtype=jnp.bfloat16):
    """cols: (B, M, K) bf16; w: (K, N) bf16; b: (1, N) f32 -> (B, M, N)."""
    B, M, K = cols.shape
    K2, N = w.shape
    assert K == K2, (K, K2)
    return pl.pallas_call(
        functools.partial(_matmul_bias_kernel, relu=relu),
        out_shape=jax.ShapeDtypeStruct((B, M, N), out_dtype),
        grid=(B,),
        in_specs=[
            pl.BlockSpec((None, M, K), lambda i: (i, 0, 0)),   # per-sample cols
            pl.BlockSpec((K, N), lambda i: (0, 0)),            # resident weight
            pl.BlockSpec((1, N), lambda i: (0, 0)),            # resident bias
        ],
        out_specs=pl.BlockSpec((None, M, N), lambda i: (i, 0, 0)),
        compiler_params=pltpu.CompilerParams(
            dimension_semantics=("parallel",)),                # v7x: 2 TCs
    )(cols, w, b)


# ----------------------------------------------------------------------------
# Pallas kernel: fused FC head  f3(relu(f2(relu(f1(x)))))
# Single grid point; all weights (~2.3 MB bf16) and both intermediates stay
# in VMEM, only the tiny (B, out_dim) result goes back to HBM.
# ----------------------------------------------------------------------------
def _fc_head_kernel(x_ref, w1_ref, b1_ref, w2_ref, b2_ref, w3_ref, b3_ref,
                    o_ref):
    h = jnp.dot(x_ref[...], w1_ref[...], preferred_element_type=jnp.float32)
    h = jnp.maximum(h + b1_ref[...], 0.0).astype(jnp.bfloat16)
    h = jnp.dot(h, w2_ref[...], preferred_element_type=jnp.float32)
    h = jnp.maximum(h + b2_ref[...], 0.0).astype(jnp.bfloat16)
    h = jnp.dot(h, w3_ref[...], preferred_element_type=jnp.float32)
    o_ref[...] = (h + b3_ref[...]).astype(o_ref.dtype)


def fc_head(x, w1, b1, w2, b2, w3, b3):
    B = x.shape[0]
    N = w3.shape[1]
    vmem = pl.BlockSpec(memory_space=pltpu.MemorySpace.VMEM)
    return pl.pallas_call(
        _fc_head_kernel,
        out_shape=jax.ShapeDtypeStruct((B, N), jnp.float32),
        in_specs=[vmem] * 7,
        out_specs=vmem,
    )(x, w1, b1, w2, b2, w3, b3)


# ----------------------------------------------------------------------------
# Conv2d (valid padding) = NHWC im2col (XLA, cheap) + Pallas matmul.
# Feature order of the im2col columns is (kh, kw, cin), which matches the
# pre-laid-out conv weight matrices built in prepare_params.
# ----------------------------------------------------------------------------
def _im2col_nhwc(x, kh, kw, stride):
    B, H, W, C = x.shape
    oh = (H - kh) // stride + 1
    ow = (W - kw) // stride + 1
    patches = []
    for i in range(kh):
        for j in range(kw):
            patches.append(
                x[:, i:i + stride * oh:stride, j:j + stride * ow:stride, :])
    cols = jnp.concatenate(patches, axis=-1)          # (B, OH, OW, KH*KW*C)
    return cols.reshape(B, oh * ow, kh * kw * C), oh, ow


def conv2d_nhwc(x, w_mat, b, kh, kw, stride):
    B = x.shape[0]
    cols, oh, ow = _im2col_nhwc(x, kh, kw, stride)
    out = conv_matmul(cols, w_mat, b, relu=True)      # (B, OH*OW, Cout) bf16
    return out.reshape(B, oh, ow, -1)                 # free, row-major


# ----------------------------------------------------------------------------
# Forward pass (kernel-layout params)
# ----------------------------------------------------------------------------
def dqn_forward(prep, state):
    # NCHW (PyTorch interface) -> NHWC once; bf16 for the MXU path.
    x = jnp.transpose(state, (0, 2, 3, 1)).astype(jnp.bfloat16)
    x = conv2d_nhwc(x, prep["c1w"], prep["c1b"], 8, 8, 4)   # (B, 19, 19, 32)
    x = conv2d_nhwc(x, prep["c2w"], prep["c2b"], 4, 4, 3)   # (B,  6,  6, 64)
    x = conv2d_nhwc(x, prep["c3w"], prep["c3b"], 3, 3, 1)   # (B,  4,  4,128)
    B = x.shape[0]
    x = x.reshape(B, -1)        # (B, 2048) in (h, w, c) order; f1w rows are
    #                             permuted at init so this equals PyTorch's
    #                             NCHW x.view(B, -1).
    return fc_head(x, prep["f1w"], prep["f1b"], prep["f2w"], prep["f2b"],
                   prep["f3w"], prep["f3b"])


# ----------------------------------------------------------------------------
# One-time parameter layout (runs once, outside the forward pass).
# Input params are in PyTorch layout: conv (Cout,Cin,KH,KW), fc (out,in).
# ----------------------------------------------------------------------------
def prepare_params(params, fc1=512, fc2=128):
    def conv_w(w):  # (Cout, Cin, KH, KW) -> (KH*KW*Cin, Cout) bf16
        cout, cin, kh, kw = w.shape
        return (w.transpose(2, 3, 1, 0)
                 .reshape(kh * kw * cin, cout).astype(jnp.bfloat16))

    def bias(b):
        return b.reshape(1, -1).astype(jnp.float32)

    # fc1 weight: PyTorch columns are in (c, h, w) order (c3=128, 4x4 spatial);
    # permute rows to our NHWC flatten order (h, w, c).
    c3, h3, w3 = 128, 4, 4
    f1 = params["f1w"].reshape(fc1, c3, h3, w3)       # (fc1, c, h, w)
    f1 = f1.transpose(2, 3, 1, 0).reshape(h3 * w3 * c3, fc1)

    return {
        "c1w": conv_w(params["c1w"]), "c1b": bias(params["c1b"]),
        "c2w": conv_w(params["c2w"]), "c2b": bias(params["c2b"]),
        "c3w": conv_w(params["c3w"]), "c3b": bias(params["c3b"]),
        "f1w": f1.astype(jnp.bfloat16),               "f1b": bias(params["f1b"]),
        "f2w": params["f2w"].T.astype(jnp.bfloat16),  "f2b": bias(params["f2b"]),
        "f3w": params["f3w"].T.astype(jnp.bfloat16),  "f3b": bias(params["f3b"]),
    }


# ----------------------------------------------------------------------------
# PyTorch-layout init + pure-JAX f32 reference (mirrors the nn.Module exactly)
# ----------------------------------------------------------------------------
def init_params(key, in_channels, out_dim, fc1=512, fc2=128):
    ks = jax.random.split(key, 12)

    def w(k, shape, fan_in):
        return jax.random.normal(k, shape, jnp.float32) * (1.0 / jnp.sqrt(fan_in))

    return {
        "c1w": w(ks[0], (32, in_channels, 8, 8), in_channels * 64),
        "c1b": w(ks[1], (32,), in_channels * 64),
        "c2w": w(ks[2], (64, 32, 4, 4), 32 * 16),
        "c2b": w(ks[3], (64,), 32 * 16),
        "c3w": w(ks[4], (128, 64, 3, 3), 64 * 9),
        "c3b": w(ks[5], (128,), 64 * 9),
        "f1w": w(ks[6], (fc1, 2048), 2048),
        "f1b": w(ks[7], (fc1,), 2048),
        "f2w": w(ks[8], (fc2, fc1), fc1),
        "f2b": w(ks[9], (fc2,), fc1),
        "f3w": w(ks[10], (out_dim, fc2), fc2),
        "f3b": w(ks[11], (out_dim,), fc2),
    }


def dqn_reference(params, state):
    def conv(x, w, b, stride):
        y = jax.lax.conv_general_dilated(
            x, w, window_strides=(stride, stride), padding="VALID",
            dimension_numbers=("NCHW", "OIHW", "NCHW"))
        return jax.nn.relu(y + b[None, :, None, None])

    x = conv(state, params["c1w"], params["c1b"], 4)
    x = conv(x, params["c2w"], params["c2b"], 3)
    x = conv(x, params["c3w"], params["c3b"], 1)
    x = x.reshape(x.shape[0], -1)                     # PyTorch view(B, -1)
    x = jax.nn.relu(x @ params["f1w"].T + params["f1b"])
    x = jax.nn.relu(x @ params["f2w"].T + params["f2b"])
    return x @ params["f3w"].T + params["f3b"]


if __name__ == "__main__":
    # fc_input_dim = 2048 = 128*4*4 forces 80x80 input
    # (80 ->k8 s4-> 19 ->k4 s3-> 6 ->k3 s1-> 4).
    B, C_IN, H, W = 2, 4, 80, 80
    OUT_DIM = 6

    key = jax.random.PRNGKey(0)
    pkey, xkey = jax.random.split(key)
    params = init_params(pkey, C_IN, OUT_DIM)
    prep = prepare_params(params)                     # one-time weight layout
    state = jax.random.normal(xkey, (B, C_IN, H, W), jnp.float32)

    actions = jax.block_until_ready(jax.jit(dqn_forward)(prep, state))
    assert actions.shape == (B, OUT_DIM), actions.shape
    assert bool(jnp.all(jnp.isfinite(actions)))

    # Validate against an f32 pure-JAX reference of the PyTorch module
    # (relaxed tolerance due to the bf16 MXU path).
    ref = jax.block_until_ready(jax.jit(dqn_reference)(params, state))
    assert jnp.allclose(actions, ref, rtol=5e-2, atol=5e-2), (
        float(jnp.max(jnp.abs(actions - ref))))

    print("KERNEL_OK")
</pallas_src>

<mosaic_0001>
module attributes {stable_mosaic.version = 11 : i64} {
  func.func @_matmul_bias_kernel(%arg0: i32, %arg1: memref<1x361x256xbf16, #tpu.memory_space<vmem>>, %arg2: memref<256x32xbf16, #tpu.memory_space<vmem>>, %arg3: memref<1x32xf32, #tpu.memory_space<vmem>>, %arg4: memref<1x361x32xbf16, #tpu.memory_space<vmem>>) attributes {dimension_semantics = [#tpu.dimension_semantics<parallel>], iteration_bounds = array<i64: 2>, scalar_prefetch = 0 : i64, scratch_operands = 0 : i64, tpu.core_type = #tpu.core_type<tc>, window_params = [{transform_indices = @transform_0, window_bounds = array<i64: 1, 361, 256>}, {pipeline_mode = #tpu.pipeline_mode<synchronous>, transform_indices = @transform_1, window_bounds = array<i64: 256, 32>}, {pipeline_mode = #tpu.pipeline_mode<synchronous>, transform_indices = @transform_2, window_bounds = array<i64: 1, 32>}, {transform_indices = @transform_3, window_bounds = array<i64: 1, 361, 32>}]} {
    %c0 = arith.constant 0 : index
    %c0_0 = arith.constant 0 : index
    %c0_1 = arith.constant 0 : index
    %0 = vector.load %arg1[%c0, %c0_0, %c0_1] : memref<1x361x256xbf16, #tpu.memory_space<vmem>>, vector<1x361x256xbf16>
    %1 = vector.shape_cast %0 : vector<1x361x256xbf16> to vector<361x256xbf16>
    %c0_2 = arith.constant 0 : index
    %c0_3 = arith.constant 0 : index
    %2 = vector.load %arg2[%c0_2, %c0_3] : memref<256x32xbf16, #tpu.memory_space<vmem>>, vector<256x32xbf16>
    %cst = arith.constant dense<0.000000e+00> : vector<361x32xf32>
    %3 = tpu.matmul %1, %2, %cst {dimension_numbers = #tpu.dot_dimension_numbers<[1], [0], [0], [1], [0, 0, 1, 1], [], []>} : vector<361x256xbf16>, vector<256x32xbf16>, vector<361x32xf32> -> vector<361x32xf32>
    %c0_4 = arith.constant 0 : index
    %c0_5 = arith.constant 0 : index
    %4 = vector.load %arg3[%c0_4, %c0_5] : memref<1x32xf32, #tpu.memory_space<vmem>>, vector<1x32xf32>
    %5 = vector.broadcast %4 : vector<1x32xf32> to vector<361x32xf32>
    %6 = arith.addf %3, %5 : vector<361x32xf32>
    %cst_6 = arith.constant 0.000000e+00 : f32
    %7 = vector.broadcast %cst_6 : f32 to vector<361x32xf32>
    %8 = arith.maximumf %6, %7 : vector<361x32xf32>
    %9 = arith.truncf %8 : vector<361x32xf32> to vector<361x32xbf16>
    %c0_7 = arith.constant 0 : index
    %c0_8 = arith.constant 0 : index
    %c0_9 = arith.constant 0 : index
    %10 = vector.load %arg4[%c0_7, %c0_8, %c0_9] : memref<1x361x32xbf16, #tpu.memory_space<vmem>>, vector<1x361x32xbf16>
    %11 = vector.shape_cast %10 : vector<1x361x32xbf16> to vector<361x32xbf16>
    %12 = vector.shape_cast %9 : vector<361x32xbf16> to vector<1x361x32xbf16>
    tpu.vector_store %arg4[%c0_7, %c0_8, %c0_9], %12 {strides = array<i32>} : memref<1x361x32xbf16, #tpu.memory_space<vmem>>, vector<1x361x32xbf16>,
    return
  }
  func.func @transform_0(%arg0: i32) -> (i32, i32, i32) {
    %c0_i32 = arith.constant 0 : i32
    %c0_i32_0 = arith.constant 0 : i32
    %c0_i32_1 = arith.constant 0 : i32
    return %arg0, %c0_i32, %c0_i32_0 : i32, i32, i32
  }
  func.func @transform_1(%arg0: i32) -> (i32, i32) {
    %c0_i32 = arith.constant 0 : i32
    %c0_i32_0 = arith.constant 0 : i32
    %c0_i32_1 = arith.constant 0 : i32
    return %c0_i32, %c0_i32_0 : i32, i32
  }
  func.func @transform_2(%arg0: i32) -> (i32, i32) {
    %c0_i32 = arith.constant 0 : i32
    %c0_i32_0 = arith.constant 0 : i32
    %c0_i32_1 = arith.constant 0 : i32
    return %c0_i32, %c0_i32_0 : i32, i32
  }
  func.func @transform_3(%arg0: i32) -> (i32, i32, i32) {
    %c0_i32 = arith.constant 0 : i32
    %c0_i32_0 = arith.constant 0 : i32
    %c0_i32_1 = arith.constant 0 : i32
    return %arg0, %c0_i32, %c0_i32_0 : i32, i32, i32
  }
}

module attributes {stable_mosaic.version = 11 : i64} {
  func.func @_matmul_bias_kernel(%arg0: i32, %arg1: memref<1x36x512xbf16, #tpu.memory_space<vmem>>, %arg2: memref<512x64xbf16, #tpu.memory_space<vmem>>, %arg3: memref<1x64xf32, #tpu.memory_space<vmem>>, %arg4: memref<1x36x64xbf16, #tpu.memory_space<vmem>>) attributes {dimension_semantics = [#tpu.dimension_semantics<parallel>], iteration_bounds = array<i64: 2>, scalar_prefetch = 0 : i64, scratch_operands = 0 : i64, tpu.core_type = #tpu.core_type<tc>, window_params = [{transform_indices = @transform_0, window_bounds = array<i64: 1, 36, 512>}, {pipeline_mode = #tpu.pipeline_mode<synchronous>, transform_indices = @transform_1, window_bounds = array<i64: 512, 64>}, {pipeline_mode = #tpu.pipeline_mode<synchronous>, transform_indices = @transform_2, window_bounds = array<i64: 1, 64>}, {transform_indices = @transform_3, window_bounds = array<i64: 1, 36, 64>}]} {
    %c0 = arith.constant 0 : index
    %c0_0 = arith.constant 0 : index
    %c0_1 = arith.constant 0 : index
    %0 = vector.load %arg1[%c0, %c0_0, %c0_1] : memref<1x36x512xbf16, #tpu.memory_space<vmem>>, vector<1x36x512xbf16>
    %1 = vector.shape_cast %0 : vector<1x36x512xbf16> to vector<36x512xbf16>
    %c0_2 = arith.constant 0 : index
    %c0_3 = arith.constant 0 : index
    %2 = vector.load %arg2[%c0_2, %c0_3] : memref<512x64xbf16, #tpu.memory_space<vmem>>, vector<512x64xbf16>
    %cst = arith.constant dense<0.000000e+00> : vector<36x64xf32>
    %3 = tpu.matmul %1, %2, %cst {dimension_numbers = #tpu.dot_dimension_numbers<[1], [0], [0], [1], [0, 0, 1, 1], [], []>} : vector<36x512xbf16>, vector<512x64xbf16>, vector<36x64xf32> -> vector<36x64xf32>
    %c0_4 = arith.constant 0 : index
    %c0_5 = arith.constant 0 : index
    %4 = vector.load %arg3[%c0_4, %c0_5] : memref<1x64xf32, #tpu.memory_space<vmem>>, vector<1x64xf32>
    %5 = vector.broadcast %4 : vector<1x64xf32> to vector<36x64xf32>
    %6 = arith.addf %3, %5 : vector<36x64xf32>
    %cst_6 = arith.constant 0.000000e+00 : f32
    %7 = vector.broadcast %cst_6 : f32 to vector<36x64xf32>
    %8 = arith.maximumf %6, %7 : vector<36x64xf32>
    %9 = arith.truncf %8 : vector<36x64xf32> to vector<36x64xbf16>
    %c0_7 = arith.constant 0 : index
    %c0_8 = arith.constant 0 : index
    %c0_9 = arith.constant 0 : index
    %10 = vector.load %arg4[%c0_7, %c0_8, %c0_9] : memref<1x36x64xbf16, #tpu.memory_space<vmem>>, vector<1x36x64xbf16>
    %11 = vector.shape_cast %10 : vector<1x36x64xbf16> to vector<36x64xbf16>
    %12 = vector.shape_cast %9 : vector<36x64xbf16> to vector<1x36x64xbf16>
    tpu.vector_store %arg4[%c0_7, %c0_8, %c0_9], %12 {strides = array<i32>} : memref<1x36x64xbf16, #tpu.memory_space<vmem>>, vector<1x36x64xbf16>,
    return
  }
  func.func @transform_0(%arg0: i32) -> (i32, i32, i32) {
    %c0_i32 = arith.constant 0 : i32
    %c0_i32_0 = arith.constant 0 : i32
    %c0_i32_1 = arith.constant 0 : i32
    return %arg0, %c0_i32, %c0_i32_0 : i32, i32, i32
  }
  func.func @transform_1(%arg0: i32) -> (i32, i32) {
    %c0_i32 = arith.constant 0 : i32
    %c0_i32_0 = arith.constant 0 : i32
    %c0_i32_1 = arith.constant 0 : i32
    return %c0_i32, %c0_i32_0 : i32, i32
  }
  func.func @transform_2(%arg0: i32) -> (i32, i32) {
    %c0_i32 = arith.constant 0 : i32
    %c0_i32_0 = arith.constant 0 : i32
    %c0_i32_1 = arith.constant 0 : i32
    return %c0_i32, %c0_i32_0 : i32, i32
  }
  func.func @transform_3(%arg0: i32) -> (i32, i32, i32) {
    %c0_i32 = arith.constant 0 : i32
    %c0_i32_0 = arith.constant 0 : i32
    %c0_i32_1 = arith.constant 0 : i32
    return %arg0, %c0_i32, %c0_i32_0 : i32, i32, i32
  }
}

module attributes {stable_mosaic.version = 11 : i64} {
  func.func @_matmul_bias_kernel(%arg0: i32, %arg1: memref<1x16x576xbf16, #tpu.memory_space<vmem>>, %arg2: memref<576x128xbf16, #tpu.memory_space<vmem>>, %arg3: memref<1x128xf32, #tpu.memory_space<vmem>>, %arg4: memref<1x16x128xbf16, #tpu.memory_space<vmem>>) attributes {dimension_semantics = [#tpu.dimension_semantics<parallel>], iteration_bounds = array<i64: 2>, scalar_prefetch = 0 : i64, scratch_operands = 0 : i64, tpu.core_type = #tpu.core_type<tc>, window_params = [{transform_indices = @transform_0, window_bounds = array<i64: 1, 16, 576>}, {pipeline_mode = #tpu.pipeline_mode<synchronous>, transform_indices = @transform_1, window_bounds = array<i64: 576, 128>}, {pipeline_mode = #tpu.pipeline_mode<synchronous>, transform_indices = @transform_2, window_bounds = array<i64: 1, 128>}, {transform_indices = @transform_3, window_bounds = array<i64: 1, 16, 128>}]} {
    %c0 = arith.constant 0 : index
    %c0_0 = arith.constant 0 : index
    %c0_1 = arith.constant 0 : index
    %0 = vector.load %arg1[%c0, %c0_0, %c0_1] : memref<1x16x576xbf16, #tpu.memory_space<vmem>>, vector<1x16x576xbf16>
    %1 = vector.shape_cast %0 : vector<1x16x576xbf16> to vector<16x576xbf16>
    %c0_2 = arith.constant 0 : index
    %c0_3 = arith.constant 0 : index
    %2 = vector.load %arg2[%c0_2, %c0_3] : memref<576x128xbf16, #tpu.memory_space<vmem>>, vector<576x128xbf16>
    %cst = arith.constant dense<0.000000e+00> : vector<16x128xf32>
    %3 = tpu.matmul %1, %2, %cst {dimension_numbers = #tpu.dot_dimension_numbers<[1], [0], [0], [1], [0, 0, 1, 1], [], []>} : vector<16x576xbf16>, vector<576x128xbf16>, vector<16x128xf32> -> vector<16x128xf32>
    %c0_4 = arith.constant 0 : index
    %c0_5 = arith.constant 0 : index
    %4 = vector.load %arg3[%c0_4, %c0_5] : memref<1x128xf32, #tpu.memory_space<vmem>>, vector<1x128xf32>
    %5 = vector.broadcast %4 : vector<1x128xf32> to vector<16x128xf32>
    %6 = arith.addf %3, %5 : vector<16x128xf32>
    %cst_6 = arith.constant 0.000000e+00 : f32
    %7 = vector.broadcast %cst_6 : f32 to vector<16x128xf32>
    %8 = arith.maximumf %6, %7 : vector<16x128xf32>
    %9 = arith.truncf %8 : vector<16x128xf32> to vector<16x128xbf16>
    %c0_7 = arith.constant 0 : index
    %c0_8 = arith.constant 0 : index
    %c0_9 = arith.constant 0 : index
    %10 = vector.load %arg4[%c0_7, %c0_8, %c0_9] : memref<1x16x128xbf16, #tpu.memory_space<vmem>>, vector<1x16x128xbf16>
    %11 = vector.shape_cast %10 : vector<1x16x128xbf16> to vector<16x128xbf16>
    %12 = vector.shape_cast %9 : vector<16x128xbf16> to vector<1x16x128xbf16>
    tpu.vector_store %arg4[%c0_7, %c0_8, %c0_9], %12 {strides = array<i32>} : memref<1x16x128xbf16, #tpu.memory_space<vmem>>, vector<1x16x128xbf16>,
    return
  }
  func.func @transform_0(%arg0: i32) -> (i32, i32, i32) {
    %c0_i32 = arith.constant 0 : i32
    %c0_i32_0 = arith.constant 0 : i32
    %c0_i32_1 = arith.constant 0 : i32
    return %arg0, %c0_i32, %c0_i32_0 : i32, i32, i32
  }
  func.func @transform_1(%arg0: i32) -> (i32, i32) {
    %c0_i32 = arith.constant 0 : i32
    %c0_i32_0 = arith.constant 0 : i32
    %c0_i32_1 = arith.constant 0 : i32
    return %c0_i32, %c0_i32_0 : i32, i32
  }
  func.func @transform_2(%arg0: i32) -> (i32, i32) {
    %c0_i32 = arith.constant 0 : i32
    %c0_i32_0 = arith.constant 0 : i32
    %c0_i32_1 = arith.constant 0 : i32
    return %c0_i32, %c0_i32_0 : i32, i32
  }
  func.func @transform_3(%arg0: i32) -> (i32, i32, i32) {
    %c0_i32 = arith.constant 0 : i32
    %c0_i32_0 = arith.constant 0 : i32
    %c0_i32_1 = arith.constant 0 : i32
    return %arg0, %c0_i32, %c0_i32_0 : i32, i32, i32
  }
}

module attributes {stable_mosaic.version = 11 : i64} {
  func.func @_fc_head_kernel(%arg0: memref<2x2048xbf16, #tpu.memory_space<vmem>>, %arg1: memref<2048x512xbf16, #tpu.memory_space<vmem>>, %arg2: memref<1x512xf32, #tpu.memory_space<vmem>>, %arg3: memref<512x128xbf16, #tpu.memory_space<vmem>>, %arg4: memref<1x128xf32, #tpu.memory_space<vmem>>, %arg5: memref<128x6xbf16, #tpu.memory_space<vmem>>, %arg6: memref<1x6xf32, #tpu.memory_space<vmem>>, %arg7: memref<2x6xf32, #tpu.memory_space<vmem>>) attributes {dimension_semantics = [], scalar_prefetch = 0 : i64, scratch_operands = 0 : i64, tpu.core_type = #tpu.core_type<tc>} {
    %c0 = arith.constant 0 : index
    %c0_0 = arith.constant 0 : index
    %0 = vector.load %arg0[%c0, %c0_0] : memref<2x2048xbf16, #tpu.memory_space<vmem>>, vector<2x2048xbf16>
    %c0_1 = arith.constant 0 : index
    %c0_2 = arith.constant 0 : index
    %1 = vector.load %arg1[%c0_1, %c0_2] : memref<2048x512xbf16, #tpu.memory_space<vmem>>, vector<2048x512xbf16>
    %cst = arith.constant dense<0.000000e+00> : vector<2x512xf32>
    %2 = tpu.matmul %0, %1, %cst {dimension_numbers = #tpu.dot_dimension_numbers<[1], [0], [0], [1], [0, 0, 1, 1], [], []>} : vector<2x2048xbf16>, vector<2048x512xbf16>, vector<2x512xf32> -> vector<2x512xf32>
    %c0_3 = arith.constant 0 : index
    %c0_4 = arith.constant 0 : index
    %3 = vector.load %arg2[%c0_3, %c0_4] : memref<1x512xf32, #tpu.memory_space<vmem>>, vector<1x512xf32>
    %4 = vector.broadcast %3 : vector<1x512xf32> to vector<2x512xf32>
    %5 = arith.addf %2, %4 : vector<2x512xf32>
    %cst_5 = arith.constant 0.000000e+00 : f32
    %6 = vector.broadcast %cst_5 : f32 to vector<2x512xf32>
    %7 = arith.maximumf %5, %6 : vector<2x512xf32>
    %8 = arith.truncf %7 : vector<2x512xf32> to vector<2x512xbf16>
    %c0_6 = arith.constant 0 : index
    %c0_7 = arith.constant 0 : index
    %9 = vector.load %arg3[%c0_6, %c0_7] : memref<512x128xbf16, #tpu.memory_space<vmem>>, vector<512x128xbf16>
    %cst_8 = arith.constant dense<0.000000e+00> : vector<2x128xf32>
    %10 = tpu.matmul %8, %9, %cst_8 {dimension_numbers = #tpu.dot_dimension_numbers<[1], [0], [0], [1], [0, 0, 1, 1], [], []>} : vector<2x512xbf16>, vector<512x128xbf16>, vector<2x128xf32> -> vector<2x128xf32>
    %c0_9 = arith.constant 0 : index
    %c0_10 = arith.constant 0 : index
    %11 = vector.load %arg4[%c0_9, %c0_10] : memref<1x128xf32, #tpu.memory_space<vmem>>, vector<1x128xf32>
    %12 = vector.broadcast %11 : vector<1x128xf32> to vector<2x128xf32>
    %13 = arith.addf %10, %12 : vector<2x128xf32>
    %cst_11 = arith.constant 0.000000e+00 : f32
    %14 = vector.broadcast %cst_11 : f32 to vector<2x128xf32>
    %15 = arith.maximumf %13, %14 : vector<2x128xf32>
    %16 = arith.truncf %15 : vector<2x128xf32> to vector<2x128xbf16>
    %c0_12 = arith.constant 0 : index
    %c0_13 = arith.constant 0 : index
    %17 = vector.load %arg5[%c0_12, %c0_13] : memref<128x6xbf16, #tpu.memory_space<vmem>>, vector<128x6xbf16>
    %cst_14 = arith.constant dense<0.000000e+00> : vector<2x6xf32>
    %18 = tpu.matmul %16, %17, %cst_14 {dimension_numbers = #tpu.dot_dimension_numbers<[1], [0], [0], [1], [0, 0, 1, 1], [], []>} : vector<2x128xbf16>, vector<128x6xbf16>, vector<2x6xf32> -> vector<2x6xf32>
    %c0_15 = arith.constant 0 : index
    %c0_16 = arith.constant 0 : index
    %19 = vector.load %arg6[%c0_15, %c0_16] : memref<1x6xf32, #tpu.memory_space<vmem>>, vector<1x6xf32>
    %20 = vector.broadcast %19 : vector<1x6xf32> to vector<2x6xf32>
    %21 = arith.addf %18, %20 : vector<2x6xf32>
    %c0_17 = arith.constant 0 : index
    %c0_18 = arith.constant 0 : index
    %22 = vector.load %arg7[%c0_17, %c0_18] : memref<2x6xf32, #tpu.memory_space<vmem>>, vector<2x6xf32>
    tpu.vector_store %arg7[%c0_17, %c0_18], %21 {strides = array<i32>} : memref<2x6xf32, #tpu.memory_space<vmem>>, vector<2x6xf32>,
    return
  }
}

</mosaic_0001>

<bundles_post_ra>
// kernel: dqn_forward.4
= control target key start
LH: loop header
LB: loop body
LE: loop exit
PB: predicated region body
PF: predicated region fallthrough
CT: control target
= control target key end

     0   :  { %s1458_s12 = smov 0   ;;  %s1752_s0 = inlined_call_operand.vmem [shape: bf16[2,361,256], index: 0, kind: input, shape index: {}]   ;;  %s1753_s1 = inlined_call_operand.vmem [shape: bf16[256,32], index: 1, kind: input, shape index: {}]   ;;  %s1754_s2 = inlined_call_operand.vmem [shape: f32[1,32], index: 2, kind: input, shape index: {}]   ;;  %s1755_s3 = inlined_call_operand.vmem [shape: bf16[2,361,32], index: 3, kind: output, shape index: {}]  }
   0x1 LB: > { %s1137_s13 = sadd.s32 4294967295, %s1435_s12   ;;  %p1141_p0 = scmp.ge.s32.totalorder %s1435_s12, 1  ;;  %s1435_s12 = sphi %s1458_s12, %s13_s12  }
   0x2   : > { %p137_p1 = scmp.lt.s32.totalorder %s1435_s12, 3 }
   0x4   : > { %p138_p2 = pnand %p1141_p0, %p137_p1 }
   0x5   : > { %p161_p3 = scmp.lt.s32.totalorder (!%p138_p2), %s1137_s13, 1 }
   0x6   : > { %141 = sbr.rel (%p138_p2) target bundleno = 368 (0x170), region = 32 }
   0xb   : > { %v1344_v0 = vld [vmem:[%s1753_s1 + $0x38] sm:$0xff]   ;;  %v1437_v1 = vmov 0   ;;  %v1345_v2 = vld [vmem:[%s1753_s1 + $0x30] sm:$0xff]   ;;  %v1346_v3 = vld [vmem:[%s1753_s1 + $0x28] sm:$0xff]   ;;  %s1757_s13 = smov (!%p161_p3, %s1137_s13), 1  ;;  %vm1030_vm0 = vcmask 257024  }
   0xc   : > { %583 = vmatprep.subr.bf16.mxu0 %v1437_v1  ;;  %1301 = vmatprep.subr.bf16.mxu1 %v1437_v1  ;;  %v1347_v4 = vld [vmem:[%s1753_s1 + $0x20] sm:$0xff]   ;;  %s1333_s22 = smul.u32 368, %s1757_s13  ;;  %v1348_v5 = vld [vmem:[%s1753_s1 + $0x18] sm:$0xff]   ;;  %v1349_v7 = vld [vmem:[%s1753_s1 + $0x10] sm:$0xff]   ;;  %vm1076_vm1 = vcmask 253952  }
   0xd   : > { %584 = vmatpush1.bf16.msra.mxu0 %v1344_v0  ;;  %1317 = vmatpush1.bf16.msra.mxu1 %v1344_v0  ;;  %v1350_v9 = vld [vmem:[%s1753_s1 + $0x8] sm:$0xff]   ;;  %v1351_v10 = vld [vmem:[%s1753_s1] sm:$0xff]   ;;  %v1352_v11 = vld [vmem:[%s1753_s1 + $0x78] sm:$0xff]   ;;  %s1334_s28 = smul.u32 184, %s1757_s13  ;;  %vm1077_vm2 = vsmask.f32 256 }
   0xe   : > { %585 = vmatprep.subr.bf16.mxu0 %v1437_v1  ;;  %1302 = vmatprep.subr.bf16.mxu1 %v1437_v1  ;;  %s1495_s27 = scalar_lea.vmem %s1752_s0, %s1333_s22  ;;  %v1353_v12 = vld [vmem:[%s1753_s1 + $0x70] sm:$0xff]   ;;  %v1354_v13 = vld [vmem:[%s1753_s1 + $0x68] sm:$0xff]   ;;  %v1355_v14 = vld [vmem:[%s1753_s1 + $0x60] sm:$0xff]  }
   0xf   : > { %v1362_v6 = vld [vmem:[%s1495_s27 + $0x4] ss:$8 sps:$4 sm:$0xff]   ;;  %v1356_v15 = vld [vmem:[%s1753_s1 + $0x58] sm:$0xff]   ;;  %v1357_v16 = vld [vmem:[%s1753_s1 + $0x50] sm:$0xff]  }
  0x10   : > { %v1365_v8 = vld [vmem:[%s1495_s27 + $0xc4] ss:$8 sps:$4 sm:$0xff]   ;;  %615 = vmatprep.mubr.bf16.mxu0 %v1362_v6  ;;  %v1360_v19 = vld [vmem:[%s1495_s27] ss:$8 sps:$4 sm:$0xff]   ;;  %v1366_v21 = vld [vmem:[%s1495_s27 + $0x14] ss:$8 sps:$4 sm:$0xff]  }
  0x11   : > { %586 = vmatpush1.bf16.msra.mxu0 %v1345_v2  ;;  %1318 = vmatpush1.bf16.msra.mxu1 %v1345_v2  ;;  %v1358_v17 = vld [vmem:[%s1753_s1 + $0x48] sm:$0xff]   ;;  %v1359_v18 = vld [vmem:[%s1753_s1 + $0x40] sm:$0xff]   ;;  %v1369_v22 = vld [vmem:[%s1495_s27 + $0xd4] ss:$8 sps:$4 sm:$0xff]  }
  0x12   : > { %587 = vmatprep.subr.bf16.mxu0 %v1437_v1  ;;  %1303 = vmatprep.subr.bf16.mxu1 %v1437_v1  ;;  %v1363_v20 = vld [vmem:[%s1495_s27 + $0xc0] ss:$8 sps:$4 sm:$0xff]   ;;  %v1368_v23 = vld [vmem:[%s1495_s27 + $0x10] ss:$8 sps:$4 sm:$0xff]   ;;  %v1372_v25 = vld [vmem:[%s1495_s27 + $0x24] ss:$8 sps:$4 sm:$0xff]  }
  0x13   : > { %711 = vmatprep.mubr.bf16.mxu1 %v1365_v8  ;;  %v1371_v24 = vld [vmem:[%s1495_s27 + $0xd0] ss:$8 sps:$4 sm:$0xff]   ;;  %v1375_v26 = vld [vmem:[%s1495_s27 + $0xe4] ss:$8 sps:$4 sm:$0xff]   ;;  %v1374_v27 = vld [vmem:[%s1495_s27 + $0x20] ss:$8 sps:$4 sm:$0xff]  }
  0x14   : > { %v1377_v28 = vld [vmem:[%s1495_s27 + $0xe0] ss:$8 sps:$4 sm:$0xff]   ;;  %v1378_v29 = vld [vmem:[%s1495_s27 + $0x34] ss:$8 sps:$4 sm:$0xff]   ;;  %v1380_v31 = vld [vmem:[%s1495_s27 + $0x30] ss:$8 sps:$4 sm:$0xff]  }
  0x15   : > { %588 = vmatpush1.bf16.msra.mxu0 %v1346_v3  ;;  %1319 = vmatpush1.bf16.msra.mxu1 %v1346_v3  ;;  %v1381_v30 = vld [vmem:[%s1495_s27 + $0xf4] ss:$8 sps:$4 sm:$0xff]   ;;  %v1383_v32 = vld [vmem:[%s1495_s27 + $0xf0] ss:$8 sps:$4 sm:$0xff]   ;;  %v1384_v33 = vld [vmem:[%s1495_s27 + $0x44] ss:$8 sps:$4 sm:$0xff]  }
  0x16   : > { %589 = vmatprep.subr.bf16.mxu0 %v1437_v1  ;;  %1304 = vmatprep.subr.bf16.mxu1 %v1437_v1  ;;  %v1387_v34 = vld [vmem:[%s1495_s27 + $0x104] ss:$8 sps:$4 sm:$0xff]   ;;  %v1386_v35 = vld [vmem:[%s1495_s27 + $0x40] ss:$8 sps:$4 sm:$0xff]   ;;  %v1390_v37 = vld [vmem:[%s1495_s27 + $0x54] ss:$8 sps:$4 sm:$0xff]  }
  0x17   : > { %v1389_v36 = vld [vmem:[%s1495_s27 + $0x100] ss:$8 sps:$4 sm:$0xff]   ;;  %v1393_v38 = vld [vmem:[%s1495_s27 + $0x114] ss:$8 sps:$4 sm:$0xff]   ;;  %v1392_v39 = vld [vmem:[%s1495_s27 + $0x50] ss:$8 sps:$4 sm:$0xff]  }
  0x18   : > { %v1395_v40 = vld [vmem:[%s1495_s27 + $0x110] ss:$8 sps:$4 sm:$0xff]   ;;  %v1396_v41 = vld [vmem:[%s1495_s27 + $0x64] ss:$8 sps:$4 sm:$0xff]   ;;  %v1398_v43 = vld [vmem:[%s1495_s27 + $0x60] ss:$8 sps:$4 sm:$0xff]  }
  0x19   : > { %590 = vmatpush1.bf16.msra.mxu0 %v1347_v4  ;;  %1320 = vmatpush1.bf16.msra.mxu1 %v1347_v4  ;;  %v1399_v42 = vld [vmem:[%s1495_s27 + $0x124] ss:$8 sps:$4 sm:$0xff]   ;;  %v1401_v44 = vld [vmem:[%s1495_s27 + $0x120] ss:$8 sps:$4 sm:$0xff]   ;;  %v1402_v45 = vld [vmem:[%s1495_s27 + $0x74] ss:$8 sps:$4 sm:$0xff]  }
  0x1a   : > { %591 = vmatprep.subr.bf16.mxu0 %v1437_v1  ;;  %1305 = vmatprep.subr.bf16.mxu1 %v1437_v1  ;;  %v1405_v46 = vld [vmem:[%s1495_s27 + $0x134] ss:$8 sps:$4 sm:$0xff]   ;;  %v1404_v47 = vld [vmem:[%s1495_s27 + $0x70] ss:$8 sps:$4 sm:$0xff]   ;;  %v1408_v49 = vld [vmem:[%s1495_s27 + $0x84] ss:$8 sps:$4 sm:$0xff]  }
  0x1b   : > { %v1407_v48 = vld [vmem:[%s1495_s27 + $0x130] ss:$8 sps:$4 sm:$0xff]   ;;  %v1411_v50 = vld [vmem:[%s1495_s27 + $0x144] ss:$8 sps:$4 sm:$0xff]   ;;  %v1410_v51 = vld [vmem:[%s1495_s27 + $0x80] ss:$8 sps:$4 sm:$0xff]  }
  0x1c   : > { %v1413_v52 = vld [vmem:[%s1495_s27 + $0x140] ss:$8 sps:$4 sm:$0xff]   ;;  %v1414_v53 = vld [vmem:[%s1495_s27 + $0x94] ss:$8 sps:$4 sm:$0xff]   ;;  %v1416_v55 = vld [vmem:[%s1495_s27 + $0x90] ss:$8 sps:$4 sm:$0xff]  }
  0x1d   : > { %592 = vmatpush1.bf16.msra.mxu0 %v1348_v5  ;;  %1321 = vmatpush1.bf16.msra.mxu1 %v1348_v5  ;;  %v1417_v54 = vld [vmem:[%s1495_s27 + $0x154] ss:$8 sps:$4 sm:$0xff]   ;;  %v1419_v56 = vld [vmem:[%s1495_s27 + $0x150] ss:$8 sps:$4 sm:$0xff]   ;;  %v1420_v57 = vld [vmem:[%s1495_s27 + $0xa4] ss:$8 sps:$4 sm:$0xff]  }
  0x1e   : > { %593 = vmatprep.subr.bf16.mxu0 %v1437_v1  ;;  %1306 = vmatprep.subr.bf16.mxu1 %v1437_v1  ;;  %v1423_v58 = vld [vmem:[%s1495_s27 + $0x164] ss:$8 sps:$4 sm:$0x1f]   ;;  %v1422_v59 = vld [vmem:[%s1495_s27 + $0xa0] ss:$8 sps:$4 sm:$0xff]   ;;  %vm1078_vm3 = vmand %vm1076_vm1, %vm1077_vm2 }
  0x1f   : > { %v1425_v60 = vld [vmem:[%s1495_s27 + $0x160] ss:$8 sps:$4 sm:$0x1f]   ;;  %v1426_v61 = vld [vmem:[%s1495_s27 + $0xb4] ss:$8 sps:$4 sm:$0xff]  }
  0x20   : > { %v1428_v62 = vld [vmem:[%s1495_s27 + $0xb0] ss:$8 sps:$4 sm:$0xff]   ;;  %v1603_v63 = vld [vmem:[%s1754_s2] ss:$0 sm:$0xff]  ;;  %s1611_s27 = scalar_lea.vmem %s1755_s3, %s1334_s28 }
  0x21   : > { %594 = vmatpush1.bf16.msra.mxu0 %v1349_v7  ;;  %1322 = vmatpush1.bf16.msra.mxu1 %v1349_v7 }
  0x22   : > { %595 = vmatprep.subr.bf16.mxu0 %v1437_v1  ;;  %1307 = vmatprep.subr.bf16.mxu1 %v1437_v1 }
  0x25   : > { %596 = vmatpush1.bf16.msra.mxu0 %v1350_v9  ;;  %1323 = vmatpush1.bf16.msra.mxu1 %v1350_v9 }
  0x26   : > { %597 = vmatprep.subr.bf16.mxu0 %v1437_v1  ;;  %1308 = vmatprep.subr.bf16.mxu1 %v1437_v1 }
  0x29   : > { %598 = vmatpush1.bf16.msra.mxu0 %v1351_v10  ;;  %1324 = vmatpush1.bf16.msra.mxu1 %v1351_v10 }
  0x2a   : > { %599 = vmatprep.subr.bf16.mxu0 %v1437_v1  ;;  %1309 = vmatprep.subr.bf16.mxu1 %v1437_v1 }
  0x2d   : > { %600 = vmatpush2.bf16.msra.mxu0 %v1352_v11  ;;  %1325 = vmatpush2.bf16.msra.mxu1 %v1352_v11 }
  0x2e   : > { %601 = vmatprep.subr.bf16.mxu0 %v1437_v1  ;;  %1310 = vmatprep.subr.bf16.mxu1 %v1437_v1 }
  0x31   : > { %602 = vmatpush2.bf16.msra.mxu0 %v1353_v12  ;;  %1326 = vmatpush2.bf16.msra.mxu1 %v1353_v12 }
  0x32   : > { %603 = vmatprep.subr.bf16.mxu0 %v1437_v1  ;;  %1311 = vmatprep.subr.bf16.mxu1 %v1437_v1 }
  0x35   : > { %604 = vmatpush2.bf16.msra.mxu0 %v1354_v13  ;;  %1327 = vmatpush2.bf16.msra.mxu1 %v1354_v13 }
  0x36   : > { %605 = vmatprep.subr.bf16.mxu0 %v1437_v1  ;;  %1312 = vmatprep.subr.bf16.mxu1 %v1437_v1 }
  0x39   : > { %606 = vmatpush2.bf16.msra.mxu0 %v1355_v14  ;;  %1328 = vmatpush2.bf16.msra.mxu1 %v1355_v14 }
  0x3a   : > { %607 = vmatprep.subr.bf16.mxu0 %v1437_v1  ;;  %1313 = vmatprep.subr.bf16.mxu1 %v1437_v1 }
  0x3d   : > { %608 = vmatpush2.bf16.msra.mxu0 %v1356_v15  ;;  %1329 = vmatpush2.bf16.msra.mxu1 %v1356_v15 }
  0x3e   : > { %609 = vmatprep.subr.bf16.mxu0 %v1437_v1  ;;  %1314 = vmatprep.subr.bf16.mxu1 %v1437_v1 }
  0x41   : > { %610 = vmatpush2.bf16.msra.mxu0 %v1357_v16  ;;  %1330 = vmatpush2.bf16.msra.mxu1 %v1357_v16 }
  0x42   : > { %611 = vmatprep.subr.bf16.mxu0 %v1437_v1  ;;  %1315 = vmatprep.subr.bf16.mxu1 %v1437_v1 }
  0x45   : > { %612 = vmatpush2.bf16.msra.mxu0 %v1358_v17  ;;  %1331 = vmatpush2.bf16.msra.mxu1 %v1358_v17 }
  0x46   : > { %613 = vmatprep.subr.bf16.mxu0 %v1437_v1  ;;  %1316 = vmatprep.subr.bf16.mxu1 %v1437_v1 }
  0x49   : > { %614 = vmatpush2.bf16.msra.mxu0 %v1359_v18  ;;  %1332 = vmatpush2.bf16.msra.mxu1 %v1359_v18 }
  0x4c   : > { %616 = vmatmul.mubr.bf16.vlgmr.msra.gmra.mxu0 %v1360_v19  ;;  %712 = vmatmul.mubr.bf16.vlgmr.msra.gmra.mxu1 %v1363_v20 }
  0x4d   : > { %623 = vmatprep.mubr.bf16.mxu0 %v1366_v21  ;;  %719 = vmatprep.mubr.bf16.mxu1 %v1369_v22 }
  0x54   : > { %624 = vmatmul.mubr.bf16.gmra.mxu0 %v1368_v23  ;;  %720 = vmatmul.mubr.bf16.gmra.mxu1 %v1371_v24 }
  0x55   : > { %631 = vmatprep.mubr.bf16.mxu0 %v1372_v25  ;;  %727 = vmatprep.mubr.bf16.mxu1 %v1375_v26 }
  0x5c   : > { %632 = vmatmul.mubr.bf16.gmra.mxu0 %v1374_v27  ;;  %728 = vmatmul.mubr.bf16.gmra.mxu1 %v1377_v28 }
  0x5d   : > { %639 = vmatprep.mubr.bf16.mxu0 %v1378_v29  ;;  %735 = vmatprep.mubr.bf16.mxu1 %v1381_v30 }
  0x64   : > { %640 = vmatmul.mubr.bf16.gmra.mxu0 %v1380_v31  ;;  %736 = vmatmul.mubr.bf16.gmra.mxu1 %v1383_v32 }
  0x65   : > { %647 = vmatprep.mubr.bf16.mxu0 %v1384_v33  ;;  %743 = vmatprep.mubr.bf16.mxu1 %v1387_v34 }
  0x6c   : > { %648 = vmatmul.mubr.bf16.gmra.mxu0 %v1386_v35  ;;  %744 = vmatmul.mubr.bf16.gmra.mxu1 %v1389_v36 }
  0x6d   : > { %655 = vmatprep.mubr.bf16.mxu0 %v1390_v37  ;;  %751 = vmatprep.mubr.bf16.mxu1 %v1393_v38 }
  0x74   : > { %656 = vmatmul.mubr.bf16.gmra.mxu0 %v1392_v39  ;;  %752 = vmatmul.mubr.bf16.gmra.mxu1 %v1395_v40 }
  0x75   : > { %663 = vmatprep.mubr.bf16.mxu0 %v1396_v41  ;;  %759 = vmatprep.mubr.bf16.mxu1 %v1399_v42 }
  0x7c   : > { %664 = vmatmul.mubr.bf16.gmra.mxu0 %v1398_v43  ;;  %760 = vmatmul.mubr.bf16.gmra.mxu1 %v1401_v44 }
  0x7d   : > { %671 = vmatprep.mubr.bf16.mxu0 %v1402_v45  ;;  %767 = vmatprep.mubr.bf16.mxu1 %v1405_v46 }
  0x84   : > { %672 = vmatmul.mubr.bf16.gmra.mxu0 %v1404_v47  ;;  %768 = vmatmul.mubr.bf16.gmra.mxu1 %v1407_v48 }
  0x85   : > { %679 = vmatprep.mubr.bf16.mxu0 %v1408_v49  ;;  %775 = vmatprep.mubr.bf16.mxu1 %v1411_v50 }
  0x8c   : > { %680 = vmatmul.mubr.bf16.gmra.mxu0 %v1410_v51  ;;  %776 = vmatmul.mubr.bf16.gmra.mxu1 %v1413_v52 }
  0x8d   : > { %687 = vmatprep.mubr.bf16.mxu0 %v1414_v53  ;;  %783 = vmatprep.mubr.bf16.mxu1 %v1417_v54 }
  0x94   : > { %688 = vmatmul.mubr.bf16.gmra.mxu0 %v1416_v55  ;;  %784 = vmatmul.mubr.bf16.gmra.mxu1 %v1419_v56 }
  0x95   : > { %695 = vmatprep.mubr.bf16.mxu0 %v1420_v57  ;;  %791 = vmatprep.mubr.bf16.mxu1 %v1423_v58 }
  0x9c   : > { %696 = vmatmul.mubr.bf16.gmra.mxu0 %v1422_v59  ;;  %792 = vmatmul.mubr.bf16.gmra.mxu1 %v1425_v60 }
  0x9d   : > { %703 = vmatprep.mubr.bf16.mxu0 %v1426_v61 }
  0xa4   : > { %704 = vmatmul.mubr.bf16.gmra.mxu0 %v1428_v62 }
 0x10c   : > { %v617_v0 = vpop.f32.mrf.mxu0  ;;  %v713_v1 = vpop.f32.mrf.mxu1 }
 0x10d   : > { %v618_v2 = vadd.f32 %v1603_v63, %v617_v0  ;;  %v714_v3 = vadd.f32 %v1603_v63, %v713_v1 }
 0x10e   : > { %v619_v4 = vpop.f32.mrf.mxu0  ;;  %v715_v5 = vpop.f32.mrf.mxu1 }
 0x10f   : > { %v800_v6 = vmax.f32 %v618_v2, 0.0  ;;  %v824_v7 = vmax.f32 %v714_v3, 0.0 }
 0x110   : > { %v620_v8 = vpop.f32.mrf.mxu0  ;;  %v716_v9 = vpop.f32.mrf.mxu1 }
 0x111   : > { %v1255_v10 = vpack.c.bf16 %v800_v6, %v800_v6  ;;  %v1279_v11 = vpack.c.bf16 %v824_v7, %v824_v7  ;;  %v621_v12 = vadd.f32 %v1603_v63, %v620_v8  ;;  %v717_v13 = vadd.f32 %v1603_v63, %v716_v9 }
 0x112   : > { %v622_v14 = vpop.f32.mrf.mxu0  ;;  %v718_v15 = vpop.f32.mrf.mxu1 }
 0x113   : > { %1031 = vst.msk [vmem:[%s1611_s27] sm:$0xf] %vm1030_vm0, %v1255_v10  ;;  %1055 = vst.msk [vmem:[%s1611_s27 + $0x60] sm:$0xf] %vm1030_vm0, %v1279_v11  ;;  %v801_v16 = vmax.f32 %v621_v12, 0.0  ;;  %v825_v17 = vmax.f32 %v717_v13, 0.0 }
 0x114   : > { %v625_v18 = vpop.f32.mrf.mxu0  ;;  %v721_v19 = vpop.f32.mrf.mxu1 }
 0x115   : > { %v1256_v20 = vpack.c.bf16 %v801_v16, %v801_v16  ;;  %v1280_v21 = vpack.c.bf16 %v825_v17, %v825_v17  ;;  %v626_v22 = vadd.f32 %v1603_v63, %v625_v18  ;;  %v722_v23 = vadd.f32 %v1603_v63, %v721_v19 }
 0x116   : > { %v627_v24 = vpop.f32.mrf.mxu0  ;;  %v723_v25 = vpop.f32.mrf.mxu1 }
 0x117   : > { %1032 = vst.msk [vmem:[%s1611_s27 + $0x4] sm:$0xf] %vm1030_vm0, %v1256_v20  ;;  %1056 = vst.msk [vmem:[%s1611_s27 + $0x64] sm:$0xf] %vm1030_vm0, %v1280_v21  ;;  %v802_v26 = vmax.f32 %v626_v22, 0.0  ;;  %v826_v27 = vmax.f32 %v722_v23, 0.0 }
 0x118   : > { %v628_v28 = vpop.f32.mrf.mxu0  ;;  %v724_v29 = vpop.f32.mrf.mxu1 }
 0x119   : > { %v1257_v30 = vpack.c.bf16 %v802_v26, %v802_v26  ;;  %v1281_v31 = vpack.c.bf16 %v826_v27, %v826_v27  ;;  %v629_v32 = vadd.f32 %v1603_v63, %v628_v28  ;;  %v725_v33 = vadd.f32 %v1603_v63, %v724_v29 }
 0x11a   : > { %v630_v34 = vpop.f32.mrf.mxu0  ;;  %v726_v35 = vpop.f32.mrf.mxu1 }
 0x11b   : > { %1033 = vst.msk [vmem:[%s1611_s27 + $0x8] sm:$0xf] %vm1030_vm0, %v1257_v30  ;;  %1057 = vst.msk [vmem:[%s1611_s27 + $0x68] sm:$0xf] %vm1030_vm0, %v1281_v31  ;;  %v803_v36 = vmax.f32 %v629_v32, 0.0  ;;  %v827_v37 = vmax.f32 %v725_v33, 0.0 }
 0x11c   : > { %v633_v38 = vpop.f32.mrf.mxu0  ;;  %v729_v39 = vpop.f32.mrf.mxu1 }
 0x11d   : > { %v1258_v40 = vpack.c.bf16 %v803_v36, %v803_v36  ;;  %v1282_v41 = vpack.c.bf16 %v827_v37, %v827_v37  ;;  %v634_v42 = vadd.f32 %v1603_v63, %v633_v38  ;;  %v730_v43 = vadd.f32 %v1603_v63, %v729_v39 }
 0x11e   : > { %v635_v44 = vpop.f32.mrf.mxu0  ;;  %v731_v45 = vpop.f32.mrf.mxu1 }
 0x11f   : > { %1034 = vst.msk [vmem:[%s1611_s27 + $0xc] sm:$0xf] %vm1030_vm0, %v1258_v40  ;;  %1058 = vst.msk [vmem:[%s1611_s27 + $0x6c] sm:$0xf] %vm1030_vm0, %v1282_v41  ;;  %v804_v46 = vmax.f32 %v634_v42, 0.0  ;;  %v828_v47 = vmax.f32 %v730_v43, 0.0 }
 0x120   : > { %v636_v48 = vpop.f32.mrf.mxu0  ;;  %v732_v49 = vpop.f32.mrf.mxu1 }
 0x121   : > { %v1259_v50 = vpack.c.bf16 %v804_v46, %v804_v46  ;;  %v1283_v51 = vpack.c.bf16 %v828_v47, %v828_v47  ;;  %v637_v52 = vadd.f32 %v1603_v63, %v636_v48  ;;  %v733_v53 = vadd.f32 %v1603_v63, %v732_v49 }
 0x122   : > { %v638_v54 = vpop.f32.mrf.mxu0  ;;  %v734_v55 = vpop.f32.mrf.mxu1 }
 0x123   : > { %1035 = vst.msk [vmem:[%s1611_s27 + $0x10] sm:$0xf] %vm1030_vm0, %v1259_v50  ;;  %1059 = vst.msk [vmem:[%s1611_s27 + $0x70] sm:$0xf] %vm1030_vm0, %v1283_v51  ;;  %v805_v56 = vmax.f32 %v637_v52, 0.0  ;;  %v829_v57 = vmax.f32 %v733_v53, 0.0 }
 0x124   : > { %v641_v58 = vpop.f32.mrf.mxu0  ;;  %v737_v59 = vpop.f32.mrf.mxu1 }
 0x125   : > { %v1260_v60 = vpack.c.bf16 %v805_v56, %v805_v56  ;;  %v1284_v61 = vpack.c.bf16 %v829_v57, %v829_v57  ;;  %v642_v62 = vadd.f32 %v1603_v63, %v641_v58  ;;  %v738_v0 = vadd.f32 %v1603_v63, %v737_v59 }
 0x126   : > { %v643_v1 = vpop.f32.mrf.mxu0  ;;  %v739_v2 = vpop.f32.mrf.mxu1 }
 0x127   : > { %1036 = vst.msk [vmem:[%s1611_s27 + $0x14] sm:$0xf] %vm1030_vm0, %v1260_v60  ;;  %1060 = vst.msk [vmem:[%s1611_s27 + $0x74] sm:$0xf] %vm1030_vm0, %v1284_v61  ;;  %v806_v3 = vmax.f32 %v642_v62, 0.0  ;;  %v830_v4 = vmax.f32 %v738_v0, 0.0 }
 0x128   : > { %v644_v5 = vpop.f32.mrf.mxu0  ;;  %v740_v6 = vpop.f32.mrf.mxu1 }
 0x129   : > { %v1261_v7 = vpack.c.bf16 %v806_v3, %v806_v3  ;;  %v1285_v8 = vpack.c.bf16 %v830_v4, %v830_v4  ;;  %v645_v9 = vadd.f32 %v1603_v63, %v644_v5  ;;  %v741_v10 = vadd.f32 %v1603_v63, %v740_v6 }
 0x12a   : > { %v646_v11 = vpop.f32.mrf.mxu0  ;;  %v742_v12 = vpop.f32.mrf.mxu1 }
 0x12b   : > { %1037 = vst.msk [vmem:[%s1611_s27 + $0x18] sm:$0xf] %vm1030_vm0, %v1261_v7  ;;  %1061 = vst.msk [vmem:[%s1611_s27 + $0x78] sm:$0xf] %vm1030_vm0, %v1285_v8  ;;  %v807_v13 = vmax.f32 %v645_v9, 0.0  ;;  %v831_v14 = vmax.f32 %v741_v10, 0.0 }
 0x12c   : > { %v649_v15 = vpop.f32.mrf.mxu0  ;;  %v745_v16 = vpop.f32.mrf.mxu1 }
 0x12d   : > { %v1262_v17 = vpack.c.bf16 %v807_v13, %v807_v13  ;;  %v1286_v18 = vpack.c.bf16 %v831_v14, %v831_v14  ;;  %v650_v19 = vadd.f32 %v1603_v63, %v649_v15  ;;  %v746_v20 = vadd.f32 %v1603_v63, %v745_v16 }
 0x12e   : > { %v651_v21 = vpop.f32.mrf.mxu0  ;;  %v747_v22 = vpop.f32.mrf.mxu1 }
 0x12f   : > { %1038 = vst.msk [vmem:[%s1611_s27 + $0x1c] sm:$0xf] %vm1030_vm0, %v1262_v17  ;;  %1062 = vst.msk [vmem:[%s1611_s27 + $0x7c] sm:$0xf] %vm1030_vm0, %v1286_v18  ;;  %v808_v23 = vmax.f32 %v650_v19, 0.0  ;;  %v832_v24 = vmax.f32 %v746_v20, 0.0 }
 0x130   : > { %v652_v25 = vpop.f32.mrf.mxu0  ;;  %v748_v26 = vpop.f32.mrf.mxu1 }
 0x131   : > { %v1263_v27 = vpack.c.bf16 %v808_v23, %v808_v23  ;;  %v1287_v28 = vpack.c.bf16 %v832_v24, %v832_v24  ;;  %v653_v29 = vadd.f32 %v1603_v63, %v652_v25  ;;  %v749_v30 = vadd.f32 %v1603_v63, %v748_v26 }
 0x132   : > { %v654_v31 = vpop.f32.mrf.mxu0  ;;  %v750_v32 = vpop.f32.mrf.mxu1 }
 0x133   : > { %1039 = vst.msk [vmem:[%s1611_s27 + $0x20] sm:$0xf] %vm1030_vm0, %v1263_v27  ;;  %1063 = vst.msk [vmem:[%s1611_s27 + $0x80] sm:$0xf] %vm1030_vm0, %v1287_v28  ;;  %v809_v33 = vmax.f32 %v653_v29, 0.0  ;;  %v833_v34 = vmax.f32 %v749_v30, 0.0 }
 0x134   : > { %v657_v35 = vpop.f32.mrf.mxu0  ;;  %v753_v36 = vpop.f32.mrf.mxu1 }
 0x135   : > { %v1264_v37 = vpack.c.bf16 %v809_v33, %v809_v33  ;;  %v1288_v38 = vpack.c.bf16 %v833_v34, %v833_v34  ;;  %v658_v39 = vadd.f32 %v1603_v63, %v657_v35  ;;  %v754_v40 = vadd.f32 %v1603_v63, %v753_v36 }
 0x136   : > { %v659_v41 = vpop.f32.mrf.mxu0  ;;  %v755_v42 = vpop.f32.mrf.mxu1 }
 0x137   : > { %1040 = vst.msk [vmem:[%s1611_s27 + $0x24] sm:$0xf] %vm1030_vm0, %v1264_v37  ;;  %1064 = vst.msk [vmem:[%s1611_s27 + $0x84] sm:$0xf] %vm1030_vm0, %v1288_v38  ;;  %v810_v43 = vmax.f32 %v658_v39, 0.0  ;;  %v834_v44 = vmax.f32 %v754_v40, 0.0 }
 0x138   : > { %v660_v45 = vpop.f32.mrf.mxu0  ;;  %v756_v46 = vpop.f32.mrf.mxu1 }
 0x139   : > { %v1265_v47 = vpack.c.bf16 %v810_v43, %v810_v43  ;;  %v1289_v48 = vpack.c.bf16 %v834_v44, %v834_v44  ;;  %v661_v49 = vadd.f32 %v1603_v63, %v660_v45  ;;  %v757_v50 = vadd.f32 %v1603_v63, %v756_v46 }
 0x13a   : > { %v662_v51 = vpop.f32.mrf.mxu0  ;;  %v758_v52 = vpop.f32.mrf.mxu1 }
 0x13b   : > { %1041 = vst.msk [vmem:[%s1611_s27 + $0x28] sm:$0xf] %vm1030_vm0, %v1265_v47  ;;  %1065 = vst.msk [vmem:[%s1611_s27 + $0x88] sm:$0xf] %vm1030_vm0, %v1289_v48  ;;  %v811_v53 = vmax.f32 %v661_v49, 0.0  ;;  %v835_v54 = vmax.f32 %v757_v50, 0.0 }
 0x13c   : > { %v665_v55 = vpop.f32.mrf.mxu0  ;;  %v761_v56 = vpop.f32.mrf.mxu1 }
 0x13d   : > { %v1266_v57 = vpack.c.bf16 %v811_v53, %v811_v53  ;;  %v1290_v58 = vpack.c.bf16 %v835_v54, %v835_v54  ;;  %v666_v59 = vadd.f32 %v1603_v63, %v665_v55  ;;  %v762_v60 = vadd.f32 %v1603_v63, %v761_v56 }
 0x13e   : > { %v667_v61 = vpop.f32.mrf.mxu0  ;;  %v763_v62 = vpop.f32.mrf.mxu1 }
 0x13f   : > { %1042 = vst.msk [vmem:[%s1611_s27 + $0x2c] sm:$0xf] %vm1030_vm0, %v1266_v57  ;;  %1066 = vst.msk [vmem:[%s1611_s27 + $0x8c] sm:$0xf] %vm1030_vm0, %v1290_v58  ;;  %v812_v0 = vmax.f32 %v666_v59, 0.0  ;;  %v836_v1 = vmax.f32 %v762_v60, 0.0 }
 0x140   : > { %v668_v2 = vpop.f32.mrf.mxu0  ;;  %v764_v3 = vpop.f32.mrf.mxu1 }
 0x141   : > { %v1267_v4 = vpack.c.bf16 %v812_v0, %v812_v0  ;;  %v1291_v5 = vpack.c.bf16 %v836_v1, %v836_v1  ;;  %v669_v6 = vadd.f32 %v1603_v63, %v668_v2  ;;  %v765_v7 = vadd.f32 %v1603_v63, %v764_v3 }
 0x142   : > { %v670_v8 = vpop.f32.mrf.mxu0  ;;  %v766_v9 = vpop.f32.mrf.mxu1 }
 0x143   : > { %1043 = vst.msk [vmem:[%s1611_s27 + $0x30] sm:$0xf] %vm1030_vm0, %v1267_v4  ;;  %1067 = vst.msk [vmem:[%s1611_s27 + $0x90] sm:$0xf] %vm1030_vm0, %v1291_v5  ;;  %v813_v10 = vmax.f32 %v669_v6, 0.0  ;;  %v837_v11 = vmax.f32 %v765_v7, 0.0 }
 0x144   : > { %v673_v12 = vpop.f32.mrf.mxu0  ;;  %v769_v13 = vpop.f32.mrf.mxu1 }
 0x145   : > { %v1268_v14 = vpack.c.bf16 %v813_v10, %v813_v10  ;;  %v1292_v15 = vpack.c.bf16 %v837_v11, %v837_v11  ;;  %v674_v16 = vadd.f32 %v1603_v63, %v673_v12  ;;  %v770_v17 = vadd.f32 %v1603_v63, %v769_v13 }
 0x146   : > { %v675_v18 = vpop.f32.mrf.mxu0  ;;  %v771_v19 = vpop.f32.mrf.mxu1 }
 0x147   : > { %1044 = vst.msk [vmem:[%s1611_s27 + $0x34] sm:$0xf] %vm1030_vm0, %v1268_v14  ;;  %1068 = vst.msk [vmem:[%s1611_s27 + $0x94] sm:$0xf] %vm1030_vm0, %v1292_v15  ;;  %v814_v20 = vmax.f32 %v674_v16, 0.0  ;;  %v838_v21 = vmax.f32 %v770_v17, 0.0 }
 0x148   : > { %v676_v22 = vpop.f32.mrf.mxu0  ;;  %v772_v23 = vpop.f32.mrf.mxu1 }
 0x149   : > { %v1269_v24 = vpack.c.bf16 %v814_v20, %v814_v20  ;;  %v1293_v25 = vpack.c.bf16 %v838_v21, %v838_v21  ;;  %v677_v26 = vadd.f32 %v1603_v63, %v676_v22  ;;  %v773_v27 = vadd.f32 %v1603_v63, %v772_v23 }
 0x14a   : > { %v678_v28 = vpop.f32.mrf.mxu0  ;;  %v774_v29 = vpop.f32.mrf.mxu1 }
 0x14b   : > { %1045 = vst.msk [vmem:[%s1611_s27 + $0x38] sm:$0xf] %vm1030_vm0, %v1269_v24  ;;  %1069 = vst.msk [vmem:[%s1611_s27 + $0x98] sm:$0xf] %vm1030_vm0, %v1293_v25  ;;  %v815_v30 = vmax.f32 %v677_v26, 0.0  ;;  %v839_v31 = vmax.f32 %v773_v27, 0.0 }
 0x14c   : > { %v681_v32 = vpop.f32.mrf.mxu0  ;;  %v777_v33 = vpop.f32.mrf.mxu1  ;;  %v1079_v29 = vld [vmem:[%s1611_s27 + $0xb4] sm:$0x1] }
 0x14d   : > { %v1270_v34 = vpack.c.bf16 %v815_v30, %v815_v30  ;;  %v1294_v35 = vpack.c.bf16 %v839_v31, %v839_v31  ;;  %v682_v36 = vadd.f32 %v1603_v63, %v681_v32  ;;  %v778_v37 = vadd.f32 %v1603_v63, %v777_v33 }
 0x14e   : > { %v683_v38 = vpop.f32.mrf.mxu0  ;;  %v779_v39 = vpop.f32.mrf.mxu1 }
 0x14f   : > { %1046 = vst.msk [vmem:[%s1611_s27 + $0x3c] sm:$0xf] %vm1030_vm0, %v1270_v34  ;;  %1070 = vst.msk [vmem:[%s1611_s27 + $0x9c] sm:$0xf] %vm1030_vm0, %v1294_v35  ;;  %v816_v40 = vmax.f32 %v682_v36, 0.0  ;;  %v840_v41 = vmax.f32 %v778_v37, 0.0 }
 0x150   : > { %v684_v42 = vpop.f32.mrf.mxu0  ;;  %v780_v43 = vpop.f32.mrf.mxu1 }
 0x151   : > { %v1271_v44 = vpack.c.bf16 %v816_v40, %v816_v40  ;;  %v1295_v45 = vpack.c.bf16 %v840_v41, %v840_v41  ;;  %v685_v46 = vadd.f32 %v1603_v63, %v684_v42  ;;  %v781_v47 = vadd.f32 %v1603_v63, %v780_v43 }
 0x152   : > { %v686_v48 = vpop.f32.mrf.mxu0  ;;  %v782_v49 = vpop.f32.mrf.mxu1 }
 0x153   : > { %1047 = vst.msk [vmem:[%s1611_s27 + $0x40] sm:$0xf] %vm1030_vm0, %v1271_v44  ;;  %1071 = vst.msk [vmem:[%s1611_s27 + $0xa0] sm:$0xf] %vm1030_vm0, %v1295_v45  ;;  %v817_v50 = vmax.f32 %v685_v46, 0.0  ;;  %v841_v51 = vmax.f32 %v781_v47, 0.0 }
 0x154   : > { %v689_v52 = vpop.f32.mrf.mxu0  ;;  %v785_v53 = vpop.f32.mrf.mxu1 }
 0x155   : > { %v1272_v54 = vpack.c.bf16 %v817_v50, %v817_v50  ;;  %v1296_v55 = vpack.c.bf16 %v841_v51, %v841_v51  ;;  %v690_v56 = vadd.f32 %v1603_v63, %v689_v52  ;;  %v786_v57 = vadd.f32 %v1603_v63, %v785_v53 }
 0x156   : > { %v691_v58 = vpop.f32.mrf.mxu0  ;;  %v787_v59 = vpop.f32.mrf.mxu1 }
 0x157   : > { %1048 = vst.msk [vmem:[%s1611_s27 + $0x44] sm:$0xf] %vm1030_vm0, %v1272_v54  ;;  %1072 = vst.msk [vmem:[%s1611_s27 + $0xa4] sm:$0xf] %vm1030_vm0, %v1296_v55  ;;  %v818_v60 = vmax.f32 %v690_v56, 0.0  ;;  %v842_v61 = vmax.f32 %v786_v57, 0.0 }
 0x158   : > { %v692_v62 = vpop.f32.mrf.mxu0  ;;  %v788_v0 = vpop.f32.mrf.mxu1 }
 0x159   : > { %v1273_v1 = vpack.c.bf16 %v818_v60, %v818_v60  ;;  %v1297_v2 = vpack.c.bf16 %v842_v61, %v842_v61  ;;  %v693_v3 = vadd.f32 %v1603_v63, %v692_v62  ;;  %v789_v4 = vadd.f32 %v1603_v63, %v788_v0 }
 0x15a   : > { %v694_v5 = vpop.f32.mrf.mxu0  ;;  %v790_v6 = vpop.f32.mrf.mxu1 }
 0x15b   : > { %1049 = vst.msk [vmem:[%s1611_s27 + $0x48] sm:$0xf] %vm1030_vm0, %v1273_v1  ;;  %1073 = vst.msk [vmem:[%s1611_s27 + $0xa8] sm:$0xf] %vm1030_vm0, %v1297_v2  ;;  %v819_v7 = vmax.f32 %v693_v3, 0.0  ;;  %v843_v8 = vmax.f32 %v789_v4, 0.0 }
 0x15c   : > { %v697_v9 = vpop.f32.mrf.mxu0  ;;  %v793_v10 = vpop.f32.mrf.mxu1 }
 0x15d   : > { %v1274_v11 = vpack.c.bf16 %v819_v7, %v819_v7  ;;  %v1298_v12 = vpack.c.bf16 %v843_v8, %v843_v8  ;;  %v698_v13 = vadd.f32 %v1603_v63, %v697_v9  ;;  %v794_v14 = vadd.f32 %v1603_v63, %v793_v10 }
 0x15e   : > { %v699_v15 = vpop.f32.mrf.mxu0  ;;  %v795_v16 = vpop.f32.mrf.mxu1 }
 0x15f   : > { %1050 = vst.msk [vmem:[%s1611_s27 + $0x4c] sm:$0xf] %vm1030_vm0, %v1274_v11  ;;  %1074 = vst.msk [vmem:[%s1611_s27 + $0xac] sm:$0xf] %vm1030_vm0, %v1298_v12  ;;  %v820_v17 = vmax.f32 %v698_v13, 0.0  ;;  %v844_v18 = vmax.f32 %v794_v14, 0.0 }
 0x160   : > { %v700_v19 = vpop.f32.mrf.mxu0  ;;  %v796_v20 = vpop.f32.mrf.mxu1 }
 0x161   : > { %v1275_v21 = vpack.c.bf16 %v820_v17, %v820_v17  ;;  %v1299_v22 = vpack.c.bf16 %v844_v18, %v844_v18  ;;  %v701_v23 = vadd.f32 %v1603_v63, %v700_v19  ;;  %v797_v24 = vadd.f32 %v1603_v63, %v796_v20 }
 0x162   : > { %v702_v25 = vpop.f32.mrf.mxu0  ;;  %v798_v26 = vpop.f32.mrf.mxu1 }
 0x163   : > { %1051 = vst.msk [vmem:[%s1611_s27 + $0x50] sm:$0xf] %vm1030_vm0, %v1275_v21  ;;  %1075 = vst.msk [vmem:[%s1611_s27 + $0xb0] sm:$0xf] %vm1030_vm0, %v1299_v22  ;;  %v821_v27 = vmax.f32 %v701_v23, 0.0  ;;  %v845_v28 = vmax.f32 %v797_v24, 0.0 }
 0x164   : > { %v705_v30 = vpop.f32.mrf.mxu0 }
 0x165   : > { %v1276_v31 = vpack.c.bf16 %v821_v27, %v821_v27  ;;  %v1300_v32 = vpack.c.bf16 %v845_v28, %v845_v28  ;;  %v706_v33 = vadd.f32 %v1603_v63, %v705_v30 }
 0x166   : > { %v707_v34 = vpop.f32.mrf.mxu0 }
 0x167   : > { %1052 = vst.msk [vmem:[%s1611_s27 + $0x54] sm:$0xf] %vm1030_vm0, %v1276_v31  ;;  %v1080_v35 = vsel %vm1078_vm3, %v1300_v32, %v1079_v29  ;;  %v822_v36 = vmax.f32 %v706_v33, 0.0 }
 0x168   : > { %1081 = vst [vmem:[%s1611_s27 + $0xb4] sm:$0x1] %v1080_v35  ;;  %v708_v37 = vpop.f32.mrf.mxu0 }
 0x169   : > { %v1277_v38 = vpack.c.bf16 %v822_v36, %v822_v36  ;;  %v709_v39 = vadd.f32 %v1603_v63, %v708_v37 }
 0x16a   : > { %v710_v40 = vpop.f32.mrf.mxu0 }
 0x16b   : > { %1053 = vst.msk [vmem:[%s1611_s27 + $0x58] sm:$0xf] %vm1030_vm0, %v1277_v38  ;;  %v823_v41 = vmax.f32 %v709_v39, 0.0 }
 0x16d   : > { %v1278_v42 = vpack.c.bf16 %v823_v41, %v823_v41 }
 0x16f   : > { %1054 = vst.msk [vmem:[%s1611_s27 + $0x5c] sm:$0xf] %vm1030_vm0, %v1278_v42 }
 0x170 PF: > { %s13_s12 = sadd.s32 1, %s1435_s12  }
 0x171   : > { %p10_p4 = scmp.ge.s32.totalorder %s13_s12, 4  }
 0x173   :  { %12 = sbr.rel (!%p10_p4) target bundleno = 1 (0x1), region = 62 }

// kernel: dqn_forward.5
= control target key start
LH: loop header
LB: loop body
LE: loop exit
PB: predicated region body
PF: predicated region fallthrough
CT: control target
= control target key end

     0   :  { %s917_s12 = smov 0   ;;  %s1052_s0 = inlined_call_operand.vmem [shape: bf16[2,36,512], index: 0, kind: input, shape index: {}]   ;;  %s1053_s1 = inlined_call_operand.vmem [shape: bf16[512,64], index: 1, kind: input, shape index: {}]   ;;  %s1054_s2 = inlined_call_operand.vmem [shape: f32[1,64], index: 2, kind: input, shape index: {}]   ;;  %s1055_s3 = inlined_call_operand.vmem [shape: bf16[2,36,64], index: 3, kind: output, shape index: {}]  }
   0x1 LB: > { %s699_s13 = sadd.s32 4294967295, %s895_s12   ;;  %p703_p0 = scmp.ge.s32.totalorder %s895_s12, 1  ;;  %s895_s12 = sphi %s917_s12, %s13_s12  }
   0x2   : > { %p137_p1 = scmp.lt.s32.totalorder %s895_s12, 3 }
   0x4   : > { %p138_p2 = pnand %p703_p0, %p137_p1 }
   0x5   : > { %p161_p3 = scmp.lt.s32.totalorder (!%p138_p2), %s699_s13, 1 }
   0x6   : > { %141 = sbr.rel (%p138_p2) target bundleno = 267 (0x10b), region = 32 }
   0xb   : > { %v841_v0 = vld [vmem:[%s1053_s1 + $0x78] sm:$0xff]   ;;  %v845_v4 = vld [vmem:[%s1053_s1 + $0x70] sm:$0xff]   ;;  %v849_v8 = vld [vmem:[%s1053_s1 + $0x68] sm:$0xff]   ;;  %s1057_s13 = smov (!%p161_p3, %s699_s13), 1  ;;  %vm637_vm0 = vcmask 519168   ;;  %vm642_vm1 = vcmask 517120  }
   0xc   : > { %v842_v1 = vld [vmem:[%s1053_s1 + $0xf8] sm:$0xff]   ;;  %763 = vmatprep.subr.bf16.mxu0 %v841_v0  ;;  %v846_v5 = vld [vmem:[%s1053_s1 + $0xf0] sm:$0xff]   ;;  %v850_v9 = vld [vmem:[%s1053_s1 + $0xe8] sm:$0xff]   ;;  %s831_s16 = smul.u32 80, %s1057_s13 }
   0xd   : > { %v843_v2 = vld [vmem:[%s1053_s1 + $0x38] sm:$0xff]   ;;  %797 = vmatprep.subr.bf16.mxu1 %v842_v1  ;;  %v847_v6 = vld [vmem:[%s1053_s1 + $0x30] sm:$0xff]   ;;  %v851_v10 = vld [vmem:[%s1053_s1 + $0x28] sm:$0xff]   ;;  %s832_s7 = smul.u32 20, %s1057_s13 }
   0xe   : > { %v844_v3 = vld [vmem:[%s1053_s1 + $0xb8] sm:$0xff]   ;;  %764 = vmatpush3.bf16.msra.mxu0 %v843_v2  ;;  %v848_v7 = vld [vmem:[%s1053_s1 + $0xb0] sm:$0xff]   ;;  %v852_v11 = vld [vmem:[%s1053_s1 + $0xa8] sm:$0xff]   ;;  %s165_s27 = scalar_lea.vmem %s1052_s0, %s831_s16 }
   0xf   : > { %798 = vmatpush3.bf16.msra.mxu1 %v844_v3  ;;  %765 = vmatprep.subr.bf16.mxu0 %v845_v4  ;;  %v853_v12 = vld [vmem:[%s1053_s1 + $0x60] sm:$0xff]   ;;  %v857_v16 = vld [vmem:[%s1053_s1 + $0x58] sm:$0xff]   ;;  %v861_v20 = vld [vmem:[%s1053_s1 + $0x50] sm:$0xff]   ;;  %s1038_s10 = scalar_lea.vmem %s1055_s3, %s832_s7 }
  0x10   : > { %799 = vmatprep.subr.bf16.mxu1 %v846_v5  ;;  %v854_v13 = vld [vmem:[%s1053_s1 + $0xe0] sm:$0xff]   ;;  %v858_v17 = vld [vmem:[%s1053_s1 + $0xd8] sm:$0xff]   ;;  %v862_v21 = vld [vmem:[%s1053_s1 + $0xd0] sm:$0xff]  }
  0x11   : > { %v855_v14 = vld [vmem:[%s1053_s1 + $0x20] sm:$0xff]   ;;  %v859_v18 = vld [vmem:[%s1053_s1 + $0x18] sm:$0xff]   ;;  %v863_v22 = vld [vmem:[%s1053_s1 + $0x10] sm:$0xff]  }
  0x12   : > { %766 = vmatpush3.bf16.msra.mxu0 %v847_v6  ;;  %v856_v15 = vld [vmem:[%s1053_s1 + $0xa0] sm:$0xff]   ;;  %v860_v19 = vld [vmem:[%s1053_s1 + $0x98] sm:$0xff]   ;;  %v864_v23 = vld [vmem:[%s1053_s1 + $0x90] sm:$0xff]  }
  0x13   : > { %800 = vmatpush3.bf16.msra.mxu1 %v848_v7  ;;  %767 = vmatprep.subr.bf16.mxu0 %v849_v8  ;;  %v865_v24 = vld [vmem:[%s1053_s1 + $0x48] sm:$0xff]   ;;  %v869_v28 = vld [vmem:[%s1053_s1 + $0x40] sm:$0xff]  }
  0x14   : > { %801 = vmatprep.subr.bf16.mxu1 %v850_v9  ;;  %v866_v25 = vld [vmem:[%s1053_s1 + $0xc8] sm:$0xff]   ;;  %v870_v29 = vld [vmem:[%s1053_s1 + $0xc0] sm:$0xff]  }
  0x15   : > { %v867_v26 = vld [vmem:[%s1053_s1 + $0x8] sm:$0xff]   ;;  %v871_v30 = vld [vmem:[%s1053_s1] sm:$0xff]  }
  0x16   : > { %768 = vmatpush3.bf16.msra.mxu0 %v851_v10  ;;  %v868_v27 = vld [vmem:[%s1053_s1 + $0x88] sm:$0xff]   ;;  %v872_v31 = vld [vmem:[%s1053_s1 + $0x80] sm:$0xff]  }
  0x17   : > { %802 = vmatpush3.bf16.msra.mxu1 %v852_v11  ;;  %769 = vmatprep.subr.bf16.mxu0 %v853_v12  ;;  %v873_v32 = vld [vmem:[%s165_s27] ss:$16 sps:$4 sm:$0xff]   ;;  %v875_v33 = vld [vmem:[%s165_s27 + $0x4] ss:$16 sps:$4 sm:$0xff]   ;;  %v876_v34 = vld [vmem:[%s165_s27 + $0x8] ss:$16 sps:$4 sm:$0xff]  }
  0x18   : > { %803 = vmatprep.subr.bf16.mxu1 %v854_v13  ;;  %v878_v35 = vld [vmem:[%s165_s27 + $0xc] ss:$16 sps:$4 sm:$0xff]   ;;  %531 = vmatprep.mubr.bf16.mxu0 %v875_v33  ;;  %v879_v36 = vld [vmem:[%s165_s27 + $0x24] ss:$16 sps:$4 sm:$0xff]   ;;  %v883_v40 = vld [vmem:[%s165_s27 + $0x20] ss:$16 sps:$4 sm:$0xff]  }
  0x19   : > { %587 = vmatprep.mubr.bf16.mxu1 %v878_v35  ;;  %v881_v37 = vld [vmem:[%s165_s27 + $0x2c] ss:$16 sps:$4 sm:$0xff]   ;;  %v180_v38 = vld [vmem:[%s165_s27 + $0x40] sm:$0x33]  ;;  %v884_v41 = vld [vmem:[%s165_s27 + $0x28] ss:$16 sps:$4 sm:$0xff]  }
  0x1a   : > { %770 = vmatpush3.bf16.msra.mxu0 %v855_v14  ;;  %v181_v39 = vld [vmem:[%s165_s27 + $0x48] sm:$0x33]  ;;  %v716_v42 = vcombine.high %v180_v38, %v180_v38  ;;  %v715_v44 = vcombine.low %v180_v38, %v180_v38  ;;  %v706_v48 = vld [vmem:[%s1054_s2] ss:$0 sm:$0xff] }
  0x1b   : > { %804 = vmatpush3.bf16.msra.mxu1 %v856_v15  ;;  %771 = vmatprep.subr.bf16.mxu0 %v857_v16  ;;  %v718_v43 = vcombine.high %v181_v39, %v181_v39  ;;  %v717_v45 = vcombine.low %v181_v39, %v181_v39 }
  0x1c   : > { %805 = vmatprep.subr.bf16.mxu1 %v858_v17 }
  0x1e   : > { %772 = vmatpush3.bf16.msra.mxu0 %v859_v18 }
  0x1f   : > { %806 = vmatpush3.bf16.msra.mxu1 %v860_v19  ;;  %773 = vmatprep.subr.bf16.mxu0 %v861_v20 }
  0x20   : > { %807 = vmatprep.subr.bf16.mxu1 %v862_v21 }
  0x22   : > { %774 = vmatpush3.bf16.msra.mxu0 %v863_v22 }
  0x23   : > { %808 = vmatpush3.bf16.msra.mxu1 %v864_v23  ;;  %775 = vmatprep.subr.bf16.mxu0 %v865_v24 }
  0x24   : > { %809 = vmatprep.subr.bf16.mxu1 %v866_v25 }
  0x26   : > { %776 = vmatpush3.bf16.msra.mxu0 %v867_v26 }
  0x27   : > { %810 = vmatpush3.bf16.msra.mxu1 %v868_v27  ;;  %777 = vmatprep.subr.bf16.mxu0 %v869_v28 }
  0x28   : > { %811 = vmatprep.subr.bf16.mxu1 %v870_v29 }
  0x2a   : > { %778 = vmatpush3.bf16.msra.mxu0 %v871_v30 }
  0x2b   : > { %812 = vmatpush3.bf16.msra.mxu1 %v872_v31 }
  0x2d   : > { %532 = vmatmul.mubr.bf16.vlgmr.msra.gmra.mxu0 %v873_v32 }
  0x2e   : > { %588 = vmatmul.mubr.bf16.vlgmr.msra.gmra.mxu1 %v876_v34  ;;  %539 = vmatprep.mubr.bf16.mxu0 %v879_v36 }
  0x2f   : > { %595 = vmatprep.mubr.bf16.mxu1 %v881_v37 }
  0x35   : > { %540 = vmatmul.mubr.bf16.gmra.mxu0 %v883_v40 }
  0x36   : > { %596 = vmatmul.mubr.bf16.gmra.mxu1 %v884_v41  ;;  %547 = vmatprep.mubr.bf16.mxu0 %v716_v42 }
  0x37   : > { %603 = vmatprep.mubr.bf16.mxu1 %v718_v43 }
  0x3d   : > { %548 = vmatmul.mubr.bf16.gmra.mxu0 %v715_v44 }
  0x3e   : > { %604 = vmatmul.mubr.bf16.gmra.mxu1 %v717_v45 }
  0xed   : > { %v779_v46 = vpop.f32.mrf.mxu0 }
  0xee   : > { %v813_v47 = vpop.f32.mrf.mxu1 }
  0xef   : > { %v780_v49 = vpop.f32.mrf.mxu0 }
  0xf0   : > { %v781_v50 = vadd.f32 %v780_v49, %v779_v46  ;;  %v814_v51 = vpop.f32.mrf.mxu1 }
  0xf1   : > { %v782_v52 = vpop.f32.mrf.mxu0  ;;  %v815_v54 = vadd.f32 %v814_v51, %v813_v47 }
  0xf2   : > { %v534_v53 = vadd.f32 %v781_v50, %v706_v48  ;;  %v816_v55 = vpop.f32.mrf.mxu1 }
  0xf3   : > { %v783_v56 = vpop.f32.mrf.mxu0 }
  0xf4   : > { %v590_v57 = vadd.f32 %v815_v54, %v534_v53  ;;  %v784_v58 = vadd.f32 %v783_v56, %v782_v52  ;;  %v817_v59 = vpop.f32.mrf.mxu1 }
  0xf5   : > { %v785_v60 = vpop.f32.mrf.mxu0  ;;  %v818_v63 = vadd.f32 %v817_v59, %v816_v55 }
  0xf6   : > { %v611_v61 = vmax.f32 %v590_v57, 0.0  ;;  %v537_v62 = vadd.f32 %v784_v58, %v706_v48  ;;  %v819_v0 = vpop.f32.mrf.mxu1 }
  0xf7   : > { %v786_v1 = vpop.f32.mrf.mxu0 }
  0xf8   : > { %v758_v2 = vpack.c.bf16 %v611_v61, %v611_v61  ;;  %v593_v3 = vadd.f32 %v818_v63, %v537_v62  ;;  %v787_v4 = vadd.f32 %v786_v1, %v785_v60  ;;  %v820_v5 = vpop.f32.mrf.mxu1 }
  0xf9   : > { %v788_v6 = vpop.f32.mrf.mxu0  ;;  %v821_v9 = vadd.f32 %v820_v5, %v819_v0 }
  0xfa   : > { %638 = vst.msk [vmem:[%s1038_s10] sm:$0xf] %vm637_vm0, %v758_v2  ;;  %v612_v7 = vmax.f32 %v593_v3, 0.0  ;;  %v542_v8 = vadd.f32 %v787_v4, %v706_v48  ;;  %v822_v10 = vpop.f32.mrf.mxu1 }
  0xfb   : > { %v789_v11 = vpop.f32.mrf.mxu0 }
  0xfc   : > { %v759_v12 = vpack.c.bf16 %v612_v7, %v612_v7  ;;  %v598_v13 = vadd.f32 %v821_v9, %v542_v8  ;;  %v790_v14 = vadd.f32 %v789_v11, %v788_v6  ;;  %v823_v15 = vpop.f32.mrf.mxu1 }
  0xfd   : > { %v791_v16 = vpop.f32.mrf.mxu0  ;;  %v824_v19 = vadd.f32 %v823_v15, %v822_v10 }
  0xfe   : > { %639 = vst.msk [vmem:[%s1038_s10 + $0x4] sm:$0xf] %vm637_vm0, %v759_v12  ;;  %v613_v17 = vmax.f32 %v598_v13, 0.0  ;;  %v545_v18 = vadd.f32 %v790_v14, %v706_v48  ;;  %v825_v20 = vpop.f32.mrf.mxu1 }
  0xff   : > { %v792_v21 = vpop.f32.mrf.mxu0 }
 0x100   : > { %v760_v22 = vpack.c.bf16 %v613_v17, %v613_v17  ;;  %v601_v23 = vadd.f32 %v824_v19, %v545_v18  ;;  %v793_v24 = vadd.f32 %v792_v21, %v791_v16  ;;  %v826_v25 = vpop.f32.mrf.mxu1 }
 0x101   : > { %v794_v26 = vpop.f32.mrf.mxu0  ;;  %v827_v29 = vadd.f32 %v826_v25, %v825_v20 }
 0x102   : > { %640 = vst.msk [vmem:[%s1038_s10 + $0x8] sm:$0xf] %vm637_vm0, %v760_v22  ;;  %v614_v27 = vmax.f32 %v601_v23, 0.0  ;;  %v550_v28 = vadd.f32 %v793_v24, %v706_v48  ;;  %v828_v30 = vpop.f32.mrf.mxu1 }
 0x103   : > { %v795_v31 = vpop.f32.mrf.mxu0 }
 0x104   : > { %v761_v32 = vpack.c.bf16 %v614_v27, %v614_v27  ;;  %v606_v33 = vadd.f32 %v827_v29, %v550_v28  ;;  %v829_v34 = vpop.f32.mrf.mxu1 }
 0x106   : > { %641 = vst.msk [vmem:[%s1038_s10 + $0xc] sm:$0xf] %vm637_vm0, %v761_v32  ;;  %v615_v35 = vmax.f32 %v606_v33, 0.0 }
 0x108   : > { %v762_v36 = vpack.c.bf16 %v615_v35, %v615_v35 }
 0x10a   : > { %643 = vst.msk [vmem:[%s1038_s10 + $0x10] sm:$0x3] %vm642_vm1, %v762_v36 }
 0x10b PF: > { %s13_s12 = sadd.s32 1, %s895_s12  }
 0x10c   : > { %p10_p4 = scmp.ge.s32.totalorder %s13_s12, 4  }
 0x10e   :  { %12 = sbr.rel (!%p10_p4) target bundleno = 1 (0x1), region = 62 }

// kernel: dqn_forward.6
= control target key start
LH: loop header
LB: loop body
LE: loop exit
PB: predicated region body
PF: predicated region fallthrough
CT: control target
= control target key end

     0   :  { %s900_s12 = smov 0   ;;  %s1043_s0 = inlined_call_operand.vmem [shape: bf16[2,16,576], index: 0, kind: input, shape index: {}]   ;;  %s1044_s1 = inlined_call_operand.vmem [shape: bf16[576,128], index: 1, kind: input, shape index: {}]   ;;  %s1045_s2 = inlined_call_operand.vmem [shape: f32[1,128], index: 2, kind: input, shape index: {}]   ;;  %s1046_s3 = inlined_call_operand.vmem [shape: bf16[2,16,128], index: 3, kind: output, shape index: {}]  }
   0x1 LB: > { %s692_s13 = sadd.s32 4294967295, %s876_s12   ;;  %p696_p0 = scmp.ge.s32.totalorder %s876_s12, 1  ;;  %s876_s12 = sphi %s900_s12, %s13_s12  }
   0x2   : > { %p137_p1 = scmp.lt.s32.totalorder %s876_s12, 3 }
   0x4   : > { %p138_p2 = pnand %p696_p0, %p137_p1 }
   0x5   : > { %p161_p3 = scmp.lt.s32.totalorder (!%p138_p2), %s692_s13, 1 }
   0x6   : > { %141 = sbr.rel (%p138_p2) target bundleno = 264 (0x108), region = 32 }
   0xb   : > { %v827_v0 = vld [vmem:[%s1044_s1 + $0x78] sm:$0xff]   ;;  %v831_v4 = vld [vmem:[%s1044_s1 + $0x70] sm:$0xff]   ;;  %v835_v8 = vld [vmem:[%s1044_s1 + $0x68] sm:$0xff]   ;;  %s1048_s13 = smov (!%p161_p3, %s692_s13), 1  ;;  %v878_v33 = vmov 0.0   ;;  %vm879_vm0 = vmmov 0  }
   0xc   : > { %v828_v1 = vld [vmem:[%s1044_s1 + $0x38] sm:$0xff]   ;;  %755 = vmatprep.subr.bf16.mxu0 %v827_v0  ;;  %v832_v5 = vld [vmem:[%s1044_s1 + $0x30] sm:$0xff]   ;;  %v836_v9 = vld [vmem:[%s1044_s1 + $0x28] sm:$0xff]   ;;  %s816_s14 = smul.u32 40, %s1048_s13  ;;  %vm498_vm1 = vcmask 523264   ;;  %s747_s17 = sshll.u32 %s1048_s13, 3 }
   0xd   : > { %v829_v2 = vld [vmem:[%s1044_s1 + $0xf8] sm:$0xff]   ;;  %756 = vmatpush3.bf16.msra.mxu0 %v828_v1  ;;  %v833_v6 = vld [vmem:[%s1044_s1 + $0xf0] sm:$0xff]   ;;  %v837_v10 = vld [vmem:[%s1044_s1 + $0xe8] sm:$0xff]   ;;  %s170_s20 = scalar_lea.vmem %s1046_s3, %s747_s17 }
   0xe   : > { %v830_v3 = vld [vmem:[%s1044_s1 + $0xb8] sm:$0xff]   ;;  %777 = vmatprep.subr.bf16.mxu1 %v829_v2  ;;  %757 = vmatprep.subr.bf16.mxu0 %v831_v4  ;;  %v834_v7 = vld [vmem:[%s1044_s1 + $0xb0] sm:$0xff]   ;;  %v838_v11 = vld [vmem:[%s1044_s1 + $0xa8] sm:$0xff]   ;;  %s1005_s25 = scalar_lea.vmem %s1043_s0, %s816_s14 }
   0xf   : > { %778 = vmatpush3.bf16.msra.mxu1 %v830_v3  ;;  %v839_v12 = vld [vmem:[%s1044_s1 + $0x60] sm:$0xff]   ;;  %v843_v16 = vld [vmem:[%s1044_s1 + $0x58] sm:$0xff]   ;;  %v847_v20 = vld [vmem:[%s1044_s1 + $0x50] sm:$0xff]  }
  0x10   : > { %779 = vmatprep.subr.bf16.mxu1 %v833_v6  ;;  %v840_v13 = vld [vmem:[%s1044_s1 + $0x20] sm:$0xff]   ;;  %v844_v17 = vld [vmem:[%s1044_s1 + $0x18] sm:$0xff]   ;;  %v848_v21 = vld [vmem:[%s1044_s1 + $0x10] sm:$0xff]  }
  0x11   : > { %758 = vmatpush3.bf16.msra.mxu0 %v832_v5  ;;  %v841_v14 = vld [vmem:[%s1044_s1 + $0xe0] sm:$0xff]   ;;  %v845_v18 = vld [vmem:[%s1044_s1 + $0xd8] sm:$0xff]   ;;  %v849_v22 = vld [vmem:[%s1044_s1 + $0xd0] sm:$0xff]  }
  0x12   : > { %759 = vmatprep.subr.bf16.mxu0 %v835_v8  ;;  %v842_v15 = vld [vmem:[%s1044_s1 + $0xa0] sm:$0xff]   ;;  %v846_v19 = vld [vmem:[%s1044_s1 + $0x98] sm:$0xff]   ;;  %v850_v23 = vld [vmem:[%s1044_s1 + $0x90] sm:$0xff]  }
  0x13   : > { %780 = vmatpush3.bf16.msra.mxu1 %v834_v7  ;;  %v851_v24 = vld [vmem:[%s1044_s1 + $0x48] sm:$0xff]   ;;  %v855_v28 = vld [vmem:[%s1044_s1 + $0x40] sm:$0xff]   ;;  %v865_v37 = vld [vmem:[%s1044_s1 + $0x118] sm:$0xff]  }
  0x14   : > { %781 = vmatprep.subr.bf16.mxu1 %v837_v10  ;;  %v852_v25 = vld [vmem:[%s1044_s1 + $0x8] sm:$0xff]   ;;  %v856_v29 = vld [vmem:[%s1044_s1] sm:$0xff]   ;;  %v866_v38 = vld [vmem:[%s1044_s1 + $0x110] sm:$0xff]  }
  0x15   : > { %760 = vmatpush3.bf16.msra.mxu0 %v836_v9  ;;  %v853_v26 = vld [vmem:[%s1044_s1 + $0xc8] sm:$0xff]   ;;  %v857_v30 = vld [vmem:[%s1044_s1 + $0xc0] sm:$0xff]  }
  0x16   : > { %761 = vmatprep.subr.bf16.mxu0 %v839_v12  ;;  %v854_v27 = vld [vmem:[%s1044_s1 + $0x88] sm:$0xff]   ;;  %v858_v31 = vld [vmem:[%s1005_s25] ss:$20 sps:$4 sm:$0xff]   ;;  %v860_v32 = vld [vmem:[%s1005_s25 + $0x4] ss:$20 sps:$4 sm:$0xff]  }
  0x17   : > { %782 = vmatpush3.bf16.msra.mxu1 %v838_v11  ;;  %v861_v34 = vld [vmem:[%s1044_s1 + $0x80] sm:$0xff]   ;;  %534 = vmatprep.mubr.bf16.mxu0 %v860_v32  ;;  %v862_v35 = vld [vmem:[%s1005_s25 + $0x8] ss:$20 sps:$4 sm:$0xff]  }
  0x18   : > { %783 = vmatprep.subr.bf16.mxu1 %v841_v14  ;;  %v864_v36 = vld [vmem:[%s1005_s25 + $0xc] ss:$20 sps:$4 sm:$0xff]   ;;  %v869_v41 = vld [vmem:[%s1005_s25 + $0x10] ss:$20 sps:$4 sm:$0xff]  }
  0x19   : > { %762 = vmatpush3.bf16.msra.mxu0 %v840_v13  ;;  %575 = vmatprep.mubr.bf16.mxu1 %v864_v36  ;;  %v867_v39 = vld [vmem:[%s1044_s1 + $0x108] sm:$0xff]   ;;  %v868_v40 = vld [vmem:[%s1044_s1 + $0x100] sm:$0xff]  }
  0x1a   : > { %763 = vmatprep.subr.bf16.mxu0 %v843_v16  ;;  %v700_v50 = vld [vmem:[%s1045_s2] ss:$0 sm:$0xff] }
  0x1b   : > { %784 = vmatpush3.bf16.msra.mxu1 %v842_v15 }
  0x1c   : > { %785 = vmatprep.subr.bf16.mxu1 %v845_v18 }
  0x1d   : > { %764 = vmatpush3.bf16.msra.mxu0 %v844_v17 }
  0x1e   : > { %765 = vmatprep.subr.bf16.mxu0 %v847_v20 }
  0x1f   : > { %786 = vmatpush3.bf16.msra.mxu1 %v846_v19 }
  0x20   : > { %787 = vmatprep.subr.bf16.mxu1 %v849_v22 }
  0x21   : > { %766 = vmatpush3.bf16.msra.mxu0 %v848_v21 }
  0x22   : > { %767 = vmatprep.subr.bf16.mxu0 %v851_v24 }
  0x23   : > { %788 = vmatpush3.bf16.msra.mxu1 %v850_v23 }
  0x24   : > { %789 = vmatprep.subr.bf16.mxu1 %v853_v26 }
  0x25   : > { %768 = vmatpush3.bf16.msra.mxu0 %v852_v25 }
  0x26   : > { %769 = vmatprep.subr.bf16.mxu0 %v855_v28 }
  0x27   : > { %790 = vmatpush3.bf16.msra.mxu1 %v854_v27 }
  0x28   : > { %791 = vmatprep.subr.bf16.mxu1 %v857_v30 }
  0x29   : > { %770 = vmatpush3.bf16.msra.mxu0 %v856_v29 }
  0x2a   : > { %804 = vmatprep.subr.bf16.mxu0 %v878_v33 }
  0x2b   : > { %792 = vmatpush3.bf16.msra.mxu1 %v861_v34 }
  0x2c   : > { %535 = vmatmul.mubr.bf16.vlgmr.msra.gmra.mxu0 %v858_v31 }
  0x2d   : > { %812 = vmatprep.mubr.msk.bf16.mxu0 %vm879_vm0, %v878_v33  ;;  %805 = vmatpush3.bf16.msra.mxu0 %v865_v37 }
  0x2e   : > { %576 = vmatmul.mubr.bf16.vlgmr.msra.gmra.mxu1 %v862_v35  ;;  %806 = vmatprep.subr.bf16.mxu0 %v878_v33 }
  0x31   : > { %807 = vmatpush3.bf16.msra.mxu0 %v866_v38 }
  0x32   : > { %808 = vmatprep.subr.bf16.mxu0 %v878_v33 }
  0x35   : > { %809 = vmatpush3.bf16.msra.mxu0 %v867_v39 }
  0x36   : > { %810 = vmatprep.subr.bf16.mxu0 %v878_v33 }
  0x39   : > { %811 = vmatpush3.bf16.msra.mxu0 %v868_v40 }
  0x3c   : > { %813 = vmatmul.mubr.msk.bf16.vlgmr.msra.gmra.mxu0 %vm498_vm1, %v869_v41 }
  0xec   : > { %v771_v42 = vpop.f32.mrf.mxu0 }
  0xee   : > { %v772_v43 = vpop.f32.mrf.mxu0  ;;  %v793_v44 = vpop.f32.mrf.mxu1 }
  0xef   : > { %v773_v49 = vadd.f32 %v772_v43, %v771_v42 }
  0xf0   : > { %v774_v45 = vpop.f32.mrf.mxu0  ;;  %v794_v46 = vpop.f32.mrf.mxu1 }
  0xf1   : > { %v537_v53 = vadd.f32 %v773_v49, %v700_v50  ;;  %v795_v54 = vadd.f32 %v794_v46, %v793_v44 }
  0xf2   : > { %v775_v47 = vpop.f32.mrf.mxu0  ;;  %v796_v48 = vpop.f32.mrf.mxu1 }
  0xf3   : > { %v776_v51 = vadd.f32 %v775_v47, %v774_v45  ;;  %v578_v58 = vadd.f32 %v795_v54, %v537_v53 }
  0xf4   : > { %v797_v52 = vpop.f32.mrf.mxu1 }
  0xf5   : > { %v540_v55 = vadd.f32 %v776_v51, %v700_v50  ;;  %v798_v56 = vadd.f32 %v797_v52, %v796_v48 }
  0xf7   : > { %v581_v61 = vadd.f32 %v798_v56, %v540_v55 }
  0xfc   : > { %v618_v57 = vpop.f32.mrf.mxu0 }
  0xfd   : > { %v619_v60 = vadd.f32 %v618_v57, %v578_v58 }
  0xfe   : > { %v814_v59 = vpop.f32.mrf.mxu0 }
  0xff   : > { %v625_v1 = vmax.f32 %v619_v60, 0.0 }
 0x100   : > { %v621_v62 = vpop.f32.mrf.mxu0 }
 0x101   : > { %v622_v63 = vadd.f32 %v621_v62, %v581_v61 }
 0x102   : > { %v815_v0 = vpop.f32.mrf.mxu0 }
 0x103   : > { %v626_v2 = vmax.f32 %v622_v63, 0.0 }
 0x105   : > { %v753_v3 = vpack.c.bf16 %v626_v2, %v625_v1 }
 0x107   : > { %754 = vst [vmem:[%s170_s20] sm:$0xff] %v753_v3  }
 0x108 PF: > { %s13_s12 = sadd.s32 1, %s876_s12  }
 0x109   : > { %p10_p4 = scmp.ge.s32.totalorder %s13_s12, 4  }
 0x10b   :  { %12 = sbr.rel (!%p10_p4) target bundleno = 1 (0x1), region = 62 }

// kernel: dqn_forward.7
= control target key start
LH: loop header
LB: loop body
LE: loop exit
PB: predicated region body
PF: predicated region fallthrough
CT: control target
= control target key end

     0   :  { %v544_v36 = vlaneseq  ;;  %v5840_v37 = vmov 1966171168   ;;  %s7709_s0 = inlined_call_operand.vmem [shape: bf16[2,2048], index: 0, kind: input, shape index: {}]   ;;  %s7710_s1 = inlined_call_operand.vmem [shape: bf16[2048,512], index: 1, kind: input, shape index: {}]   ;;  %s7711_s2 = inlined_call_operand.vmem [shape: f32[1,512], index: 2, kind: input, shape index: {}]   ;;  %s7712_s3 = inlined_call_operand.vmem [shape: bf16[512,128], index: 3, kind: input, shape index: {}]   ;;  %s7713_s4 = inlined_call_operand.vmem [shape: f32[1,128], index: 4, kind: input, shape index: {}]   ;;  %s7714_s5 = inlined_call_operand.vmem [shape: bf16[128,6], index: 5, kind: input, shape index: {}]   ;;  %s7715_s6 = inlined_call_operand.vmem [shape: f32[1,6], index: 6, kind: input, shape index: {}]   ;;  %s7716_s7 = inlined_call_operand.hbm [shape: f32[2,6], index: 7, kind: output, shape index: {}]  }
   0x1   :  { %v5007_v0 = vld [vmem:[%s7710_s1 + $0xe4] ss:$16 sps:$4 sm:$0xff]   ;;  %v5011_v2 = vld [vmem:[%s7710_s1 + $0xe0] ss:$16 sps:$4 sm:$0xff]   ;;  %v568_v38 = vunpack.c.l.s4 %v5840_v37 }
   0x2   :  { %v5009_v1 = vld [vmem:[%s7710_s1 + $0x2e4] ss:$16 sps:$4 sm:$0xff]   ;;  %3240 = vmatprep.subr.bf16.mxu0 %v5007_v0  ;;  %v5012_v3 = vld [vmem:[%s7710_s1 + $0x2e0] ss:$16 sps:$4 sm:$0xff]   ;;  %v6001_v42 = vshrl.u32 %v544_v36, 7 }
   0x3   :  { %3281 = vmatprep.subr.bf16.mxu1 %v5009_v1  ;;  %v5013_v4 = vld [vmem:[%s7710_s1 + $0xc4] ss:$16 sps:$4 sm:$0xff]   ;;  %3241 = vmatpush1.bf16.msra.mxu0 %v5011_v2  ;;  %v5017_v6 = vld [vmem:[%s7710_s1 + $0xc0] ss:$16 sps:$4 sm:$0xff]   ;;  %v569_v43 = vunpack.c.0.s8 %v568_v38 }
   0x4   :  { %3282 = vmatpush1.bf16.msra.mxu1 %v5012_v3  ;;  %v5015_v5 = vld [vmem:[%s7710_s1 + $0x2c4] ss:$16 sps:$4 sm:$0xff]   ;;  %3242 = vmatprep.subr.bf16.mxu0 %v5013_v4  ;;  %v5018_v7 = vld [vmem:[%s7710_s1 + $0x2c0] ss:$16 sps:$4 sm:$0xff]  }
   0x5   :  { %3283 = vmatprep.subr.bf16.mxu1 %v5015_v5  ;;  %v5019_v8 = vld [vmem:[%s7710_s1 + $0xa4] ss:$16 sps:$4 sm:$0xff]   ;;  %v5023_v10 = vld [vmem:[%s7710_s1 + $0xa0] ss:$16 sps:$4 sm:$0xff]   ;;  %v6019_v49 = vsub.s32 %v569_v43, %v6001_v42 }
   0x6   :  { %v5021_v9 = vld [vmem:[%s7710_s1 + $0x2a4] ss:$16 sps:$4 sm:$0xff]   ;;  %v5024_v11 = vld [vmem:[%s7710_s1 + $0x2a0] ss:$16 sps:$4 sm:$0xff]  }
   0x7   :  { %3243 = vmatpush1.bf16.msra.mxu0 %v5017_v6  ;;  %v5025_v12 = vld [vmem:[%s7710_s1 + $0x84] ss:$16 sps:$4 sm:$0xff]   ;;  %v5029_v14 = vld [vmem:[%s7710_s1 + $0x80] ss:$16 sps:$4 sm:$0xff]  }
   0x8   :  { %3284 = vmatpush1.bf16.msra.mxu1 %v5018_v7  ;;  %3244 = vmatprep.subr.bf16.mxu0 %v5019_v8  ;;  %v5027_v13 = vld [vmem:[%s7710_s1 + $0x284] ss:$16 sps:$4 sm:$0xff]   ;;  %v5030_v15 = vld [vmem:[%s7710_s1 + $0x280] ss:$16 sps:$4 sm:$0xff]  }
   0x9   :  { %3285 = vmatprep.subr.bf16.mxu1 %v5021_v9  ;;  %v5031_v16 = vld [vmem:[%s7710_s1 + $0x64] ss:$16 sps:$4 sm:$0xff]   ;;  %v5035_v18 = vld [vmem:[%s7710_s1 + $0x60] ss:$16 sps:$4 sm:$0xff]  }
   0xa   :  { %v5033_v17 = vld [vmem:[%s7710_s1 + $0x264] ss:$16 sps:$4 sm:$0xff]   ;;  %v5036_v19 = vld [vmem:[%s7710_s1 + $0x260] ss:$16 sps:$4 sm:$0xff]  }
   0xb   :  { %3245 = vmatpush1.bf16.msra.mxu0 %v5023_v10  ;;  %v5037_v20 = vld [vmem:[%s7710_s1 + $0x44] ss:$16 sps:$4 sm:$0xff]   ;;  %v5041_v22 = vld [vmem:[%s7710_s1 + $0x40] ss:$16 sps:$4 sm:$0xff]  }
   0xc   :  { %3286 = vmatpush1.bf16.msra.mxu1 %v5024_v11  ;;  %3246 = vmatprep.subr.bf16.mxu0 %v5025_v12  ;;  %v5039_v21 = vld [vmem:[%s7710_s1 + $0x244] ss:$16 sps:$4 sm:$0xff]   ;;  %v5042_v23 = vld [vmem:[%s7710_s1 + $0x240] ss:$16 sps:$4 sm:$0xff]  }
   0xd   :  { %3287 = vmatprep.subr.bf16.mxu1 %v5027_v13  ;;  %v5043_v24 = vld [vmem:[%s7710_s1 + $0x24] ss:$16 sps:$4 sm:$0xff]   ;;  %v5047_v26 = vld [vmem:[%s7710_s1 + $0x20] ss:$16 sps:$4 sm:$0xff]  }
   0xe   :  { %v5045_v25 = vld [vmem:[%s7710_s1 + $0x224] ss:$16 sps:$4 sm:$0xff]   ;;  %v5048_v27 = vld [vmem:[%s7710_s1 + $0x220] ss:$16 sps:$4 sm:$0xff]  }
   0xf   :  { %3247 = vmatpush1.bf16.msra.mxu0 %v5029_v14  ;;  %v5049_v28 = vld [vmem:[%s7710_s1 + $0x4] ss:$16 sps:$4 sm:$0xff]   ;;  %v5053_v30 = vld [vmem:[%s7710_s1] ss:$16 sps:$4 sm:$0xff]  }
  0x10   :  { %3288 = vmatpush1.bf16.msra.mxu1 %v5030_v15  ;;  %3248 = vmatprep.subr.bf16.mxu0 %v5031_v16  ;;  %v5051_v29 = vld [vmem:[%s7710_s1 + $0x204] ss:$16 sps:$4 sm:$0xff]   ;;  %v5054_v31 = vld [vmem:[%s7710_s1 + $0x200] ss:$16 sps:$4 sm:$0xff]  }
  0x11   :  { %3289 = vmatprep.subr.bf16.mxu1 %v5033_v17  ;;  %v5055_v32 = vld [vmem:[%s7710_s1 + $0x1e4] ss:$16 sps:$4 sm:$0xff]   ;;  %v5059_v34 = vld [vmem:[%s7710_s1 + $0x1e0] ss:$16 sps:$4 sm:$0xff]  }
  0x12   :  { %v5057_v33 = vld [vmem:[%s7710_s1 + $0x3e4] ss:$16 sps:$4 sm:$0xff]   ;;  %v5060_v35 = vld [vmem:[%s7710_s1 + $0x3e0] ss:$16 sps:$4 sm:$0xff]  }
  0x13   :  { %3249 = vmatpush1.bf16.msra.mxu0 %v5035_v18  ;;  %v5061_v39 = vld [vmem:[%s7710_s1 + $0x1c4] ss:$16 sps:$4 sm:$0xff]   ;;  %v5065_v41 = vld [vmem:[%s7710_s1 + $0x1c0] ss:$16 sps:$4 sm:$0xff]  }
  0x14   :  { %3290 = vmatpush1.bf16.msra.mxu1 %v5036_v19  ;;  %3250 = vmatprep.subr.bf16.mxu0 %v5037_v20  ;;  %v5063_v40 = vld [vmem:[%s7710_s1 + $0x3c4] ss:$16 sps:$4 sm:$0xff]   ;;  %v5066_v44 = vld [vmem:[%s7710_s1 + $0x3c0] ss:$16 sps:$4 sm:$0xff]  }
  0x15   :  { %3291 = vmatprep.subr.bf16.mxu1 %v5039_v21  ;;  %v5067_v45 = vld [vmem:[%s7710_s1 + $0x1a4] ss:$16 sps:$4 sm:$0xff]   ;;  %v5071_v47 = vld [vmem:[%s7710_s1 + $0x1a0] ss:$16 sps:$4 sm:$0xff]  }
  0x16   :  { %v5069_v46 = vld [vmem:[%s7710_s1 + $0x3a4] ss:$16 sps:$4 sm:$0xff]   ;;  %v5072_v48 = vld [vmem:[%s7710_s1 + $0x3a0] ss:$16 sps:$4 sm:$0xff]  }
  0x17   :  { %3251 = vmatpush1.bf16.msra.mxu0 %v5041_v22  ;;  %v5073_v50 = vld [vmem:[%s7710_s1 + $0x184] ss:$16 sps:$4 sm:$0xff]   ;;  %v5077_v53 = vld [vmem:[%s7710_s1 + $0x180] ss:$16 sps:$4 sm:$0xff]  }
  0x18   :  { %3292 = vmatpush1.bf16.msra.mxu1 %v5042_v23  ;;  %3252 = vmatprep.subr.bf16.mxu0 %v5043_v24  ;;  %v5075_v51 = vld [vmem:[%s7710_s1 + $0x384] ss:$16 sps:$4 sm:$0xff]   ;;  %v5078_v55 = vld [vmem:[%s7710_s1 + $0x380] ss:$16 sps:$4 sm:$0xff]  }
  0x19   :  { %3293 = vmatprep.subr.bf16.mxu1 %v5045_v25  ;;  %v28_v52 = vld [vmem:[%s7709_s0] sm:$0xff] }
  0x1a   :  { %v573_v54 = vrot.slane %v28_v52, %v6019_v49  ;;  %v5079_v56 = vld [vmem:[%s7710_s1 + $0x164] ss:$16 sps:$4 sm:$0xff]   ;;  %v5083_v59 = vld [vmem:[%s7710_s1 + $0x160] ss:$16 sps:$4 sm:$0xff]   ;;  %v566_v1 = vcombine.high %v28_v52, %v28_v52 }
  0x1b   :  { %3253 = vmatpush1.bf16.msra.mxu0 %v5047_v26  ;;  %v5081_v57 = vld [vmem:[%s7710_s1 + $0x364] ss:$16 sps:$4 sm:$0xff]   ;;  %v5084_v61 = vld [vmem:[%s7710_s1 + $0x360] ss:$16 sps:$4 sm:$0xff]  }
  0x1c   :  { %3294 = vmatpush1.bf16.msra.mxu1 %v5048_v27  ;;  %3254 = vmatprep.subr.bf16.mxu0 %v5049_v28  ;;  %v581_v58 = vcombine.high %v573_v54, %v573_v54  ;;  %v5085_v62 = vld [vmem:[%s7710_s1 + $0x144] ss:$16 sps:$4 sm:$0xff]   ;;  %v5089_v2 = vld [vmem:[%s7710_s1 + $0x140] ss:$16 sps:$4 sm:$0xff]   ;;  %v6077_v6 = vrot.slane %v566_v1, %v6019_v49  ;;  %v6097_v13 = vrot.slane %v573_v54, %v6019_v49 }
  0x1d   :  { %3295 = vmatprep.subr.bf16.mxu1 %v5051_v29  ;;  %v5087_v63 = vld [vmem:[%s7710_s1 + $0x344] ss:$16 sps:$4 sm:$0xff]   ;;  %v5090_v3 = vld [vmem:[%s7710_s1 + $0x340] ss:$16 sps:$4 sm:$0xff]  }
  0x1e   :  { %v6047_v60 = vrot.slane %v581_v58, %v6019_v49  ;;  %v5091_v4 = vld [vmem:[%s7710_s1 + $0x124] ss:$16 sps:$4 sm:$0xff]   ;;  %v5095_v7 = vld [vmem:[%s7710_s1 + $0x120] ss:$16 sps:$4 sm:$0xff]   ;;  %v582_v11 = vcombine.high %v6077_v6, %v6077_v6  ;;  %v6113_v18 = vcombine.high %v6097_v13, %v6097_v13 }
  0x1f   :  { %3255 = vmatpush1.bf16.msra.mxu0 %v5053_v30  ;;  %v5093_v5 = vld [vmem:[%s7710_s1 + $0x324] ss:$16 sps:$4 sm:$0xff]   ;;  %v5096_v8 = vld [vmem:[%s7710_s1 + $0x320] ss:$16 sps:$4 sm:$0xff]  }
  0x20   :  { %3296 = vmatpush1.bf16.msra.mxu1 %v5054_v31  ;;  %3256 = vmatprep.subr.bf16.mxu0 %v5055_v32  ;;  %v6060_v0 = vcombine.high %v6047_v60, %v6047_v60  ;;  %v5097_v9 = vld [vmem:[%s7710_s1 + $0x104] ss:$16 sps:$4 sm:$0xff]   ;;  %v5101_v12 = vld [vmem:[%s7710_s1 + $0x100] ss:$16 sps:$4 sm:$0xff]   ;;  %v6109_v17 = vrot.slane %v582_v11, %v6019_v49 }
  0x21   :  { %3297 = vmatprep.subr.bf16.mxu1 %v5057_v33  ;;  %3272 = vmatprep.mubr.bf16.mxu0 %v6047_v60  ;;  %v5099_v10 = vld [vmem:[%s7710_s1 + $0x304] ss:$16 sps:$4 sm:$0xff]   ;;  %v5102_v14 = vld [vmem:[%s7710_s1 + $0x300] ss:$16 sps:$4 sm:$0xff]  }
  0x22   :  { %3313 = vmatprep.mubr.bf16.mxu1 %v6060_v0  ;;  %v5105_v15 = vld [vmem:[%s7710_s1 + $0x4e4] ss:$16 sps:$4 sm:$0xff]   ;;  %v5103_v19 = vld [vmem:[%s7710_s1 + $0x4e0] ss:$16 sps:$4 sm:$0xff]   ;;  %v6129_v23 = vcombine.high %v6109_v17, %v6109_v17 }
  0x23   :  { %3257 = vmatpush2.bf16.msra.mxu0 %v5059_v34  ;;  %v5108_v16 = vld [vmem:[%s7710_s1 + $0x6e4] ss:$16 sps:$4 sm:$0xff]   ;;  %v5106_v20 = vld [vmem:[%s7710_s1 + $0x6e0] ss:$16 sps:$4 sm:$0xff]  }
  0x24   :  { %3298 = vmatpush2.bf16.msra.mxu1 %v5060_v35  ;;  %3258 = vmatprep.subr.bf16.mxu0 %v5061_v39  ;;  %v5111_v21 = vld [vmem:[%s7710_s1 + $0x4c4] ss:$16 sps:$4 sm:$0xff]   ;;  %v5109_v24 = vld [vmem:[%s7710_s1 + $0x4c0] ss:$16 sps:$4 sm:$0xff]  }
  0x25   :  { %3299 = vmatprep.subr.bf16.mxu1 %v5063_v40  ;;  %v5114_v22 = vld [vmem:[%s7710_s1 + $0x6c4] ss:$16 sps:$4 sm:$0xff]   ;;  %v5112_v25 = vld [vmem:[%s7710_s1 + $0x6c0] ss:$16 sps:$4 sm:$0xff]  }
  0x26   :  { %v5117_v26 = vld [vmem:[%s7710_s1 + $0x4a4] ss:$16 sps:$4 sm:$0xff]   ;;  %v5115_v28 = vld [vmem:[%s7710_s1 + $0x4a0] ss:$16 sps:$4 sm:$0xff]  }
  0x27   :  { %3259 = vmatpush2.bf16.msra.mxu0 %v5065_v41  ;;  %v5120_v27 = vld [vmem:[%s7710_s1 + $0x6a4] ss:$16 sps:$4 sm:$0xff]   ;;  %v5118_v29 = vld [vmem:[%s7710_s1 + $0x6a0] ss:$16 sps:$4 sm:$0xff]  }
  0x28   :  { %3300 = vmatpush2.bf16.msra.mxu1 %v5066_v44  ;;  %3260 = vmatprep.subr.bf16.mxu0 %v5067_v45  ;;  %v5123_v30 = vld [vmem:[%s7710_s1 + $0x484] ss:$16 sps:$4 sm:$0xff]   ;;  %v5121_v32 = vld [vmem:[%s7710_s1 + $0x480] ss:$16 sps:$4 sm:$0xff]  }
  0x29   :  { %3301 = vmatprep.subr.bf16.mxu1 %v5069_v46  ;;  %v5126_v31 = vld [vmem:[%s7710_s1 + $0x684] ss:$16 sps:$4 sm:$0xff]   ;;  %v5124_v33 = vld [vmem:[%s7710_s1 + $0x680] ss:$16 sps:$4 sm:$0xff]  }
  0x2a   :  { %v5129_v34 = vld [vmem:[%s7710_s1 + $0x464] ss:$16 sps:$4 sm:$0xff]   ;;  %v5127_v36 = vld [vmem:[%s7710_s1 + $0x460] ss:$16 sps:$4 sm:$0xff]  }
  0x2b   :  { %3261 = vmatpush2.bf16.msra.mxu0 %v5071_v47  ;;  %v5132_v35 = vld [vmem:[%s7710_s1 + $0x664] ss:$16 sps:$4 sm:$0xff]   ;;  %v5130_v37 = vld [vmem:[%s7710_s1 + $0x660] ss:$16 sps:$4 sm:$0xff]  }
  0x2c   :  { %3302 = vmatpush2.bf16.msra.mxu1 %v5072_v48  ;;  %3262 = vmatprep.subr.bf16.mxu0 %v5073_v50  ;;  %v5135_v38 = vld [vmem:[%s7710_s1 + $0x444] ss:$16 sps:$4 sm:$0xff]   ;;  %v5133_v40 = vld [vmem:[%s7710_s1 + $0x440] ss:$16 sps:$4 sm:$0xff]  }
  0x2d   :  { %3303 = vmatprep.subr.bf16.mxu1 %v5075_v51  ;;  %v5138_v39 = vld [vmem:[%s7710_s1 + $0x644] ss:$16 sps:$4 sm:$0xff]   ;;  %v5136_v41 = vld [vmem:[%s7710_s1 + $0x640] ss:$16 sps:$4 sm:$0xff]  }
  0x2e   :  { %v5141_v43 = vld [vmem:[%s7710_s1 + $0x424] ss:$16 sps:$4 sm:$0xff]   ;;  %v5139_v45 = vld [vmem:[%s7710_s1 + $0x420] ss:$16 sps:$4 sm:$0xff]  }
  0x2f   :  { %3263 = vmatpush2.bf16.msra.mxu0 %v5077_v53  ;;  %v5144_v44 = vld [vmem:[%s7710_s1 + $0x624] ss:$16 sps:$4 sm:$0xff]   ;;  %v5142_v46 = vld [vmem:[%s7710_s1 + $0x620] ss:$16 sps:$4 sm:$0xff]  }
  0x30   :  { %3304 = vmatpush2.bf16.msra.mxu1 %v5078_v55  ;;  %3264 = vmatprep.subr.bf16.mxu0 %v5079_v56  ;;  %v5147_v47 = vld [vmem:[%s7710_s1 + $0x404] ss:$16 sps:$4 sm:$0xff]   ;;  %v5145_v50 = vld [vmem:[%s7710_s1 + $0x400] ss:$16 sps:$4 sm:$0xff]  }
  0x31   :  { %3305 = vmatprep.subr.bf16.mxu1 %v5081_v57  ;;  %v5150_v48 = vld [vmem:[%s7710_s1 + $0x604] ss:$16 sps:$4 sm:$0xff]   ;;  %v5148_v51 = vld [vmem:[%s7710_s1 + $0x600] ss:$16 sps:$4 sm:$0xff]  }
  0x32   :  { %v5153_v52 = vld [vmem:[%s7710_s1 + $0x5e4] ss:$16 sps:$4 sm:$0xff]   ;;  %v5151_v54 = vld [vmem:[%s7710_s1 + $0x5e0] ss:$16 sps:$4 sm:$0xff]  }
  0x33   :  { %3265 = vmatpush2.bf16.msra.mxu0 %v5083_v59  ;;  %v5156_v53 = vld [vmem:[%s7710_s1 + $0x7e4] ss:$16 sps:$4 sm:$0xff]   ;;  %v5154_v55 = vld [vmem:[%s7710_s1 + $0x7e0] ss:$16 sps:$4 sm:$0xff]  }
  0x34   :  { %3306 = vmatpush2.bf16.msra.mxu1 %v5084_v61  ;;  %3266 = vmatprep.subr.bf16.mxu0 %v5085_v62  ;;  %v5159_v56 = vld [vmem:[%s7710_s1 + $0x5c4] ss:$16 sps:$4 sm:$0xff]   ;;  %v5157_v58 = vld [vmem:[%s7710_s1 + $0x5c0] ss:$16 sps:$4 sm:$0xff]  }
  0x35   :  { %3307 = vmatprep.subr.bf16.mxu1 %v5087_v63  ;;  %v5162_v57 = vld [vmem:[%s7710_s1 + $0x7c4] ss:$16 sps:$4 sm:$0xff]   ;;  %v5160_v59 = vld [vmem:[%s7710_s1 + $0x7c0] ss:$16 sps:$4 sm:$0xff]  }
  0x36   :  { %v5165_v61 = vld [vmem:[%s7710_s1 + $0x5a4] ss:$16 sps:$4 sm:$0xff]   ;;  %v5163_v63 = vld [vmem:[%s7710_s1 + $0x5a0] ss:$16 sps:$4 sm:$0xff]  }
  0x37   :  { %3267 = vmatpush2.bf16.msra.mxu0 %v5089_v2  ;;  %v5168_v62 = vld [vmem:[%s7710_s1 + $0x7a4] ss:$16 sps:$4 sm:$0xff]   ;;  %v5166_v1 = vld [vmem:[%s7710_s1 + $0x7a0] ss:$16 sps:$4 sm:$0xff]  }
  0x38   :  { %3308 = vmatpush2.bf16.msra.mxu1 %v5090_v3  ;;  %3268 = vmatprep.subr.bf16.mxu0 %v5091_v4  ;;  %v5171_v2 = vld [vmem:[%s7710_s1 + $0x584] ss:$16 sps:$4 sm:$0xff]   ;;  %v5169_v4 = vld [vmem:[%s7710_s1 + $0x580] ss:$16 sps:$4 sm:$0xff]  }
  0x39   :  { %3309 = vmatprep.subr.bf16.mxu1 %v5093_v5  ;;  %v5174_v3 = vld [vmem:[%s7710_s1 + $0x784] ss:$16 sps:$4 sm:$0xff]   ;;  %v5172_v5 = vld [vmem:[%s7710_s1 + $0x780] ss:$16 sps:$4 sm:$0xff]  }
  0x3a   :  { %v5183_v11 = vld [vmem:[%s7710_s1 + $0x544] ss:$16 sps:$4 sm:$0xff]  }
  0x3b   :  { %3269 = vmatpush2.bf16.msra.mxu0 %v5095_v7  ;;  %v5177_v7 = vld [vmem:[%s7710_s1 + $0x564] ss:$16 sps:$4 sm:$0xff]  }
  0x3c   :  { %3310 = vmatpush2.bf16.msra.mxu1 %v5096_v8  ;;  %3270 = vmatprep.subr.bf16.mxu0 %v5097_v9  ;;  %v5180_v8 = vld [vmem:[%s7710_s1 + $0x764] ss:$16 sps:$4 sm:$0xff]   ;;  %v5175_v9 = vld [vmem:[%s7710_s1 + $0x560] ss:$16 sps:$4 sm:$0xff]  }
  0x3d   :  { %3311 = vmatprep.subr.bf16.mxu1 %v5099_v10  ;;  %v5178_v10 = vld [vmem:[%s7710_s1 + $0x760] ss:$16 sps:$4 sm:$0xff]  }
  0x3f   :  { %3271 = vmatpush2.bf16.msra.mxu0 %v5101_v12  ;;  %v5186_v12 = vld [vmem:[%s7710_s1 + $0x744] ss:$16 sps:$4 sm:$0xff]  }
  0x40   :  { %3312 = vmatpush2.bf16.msra.mxu1 %v5102_v14  ;;  %3322 = vmatprep.subr.bf16.mxu0 %v5105_v15  ;;  %v5181_v14 = vld [vmem:[%s7710_s1 + $0x540] ss:$16 sps:$4 sm:$0xff]  }
  0x41   :  { %3363 = vmatprep.subr.bf16.mxu1 %v5108_v16  ;;  %v5184_v15 = vld [vmem:[%s7710_s1 + $0x740] ss:$16 sps:$4 sm:$0xff]   ;;  %v5189_v16 = vld [vmem:[%s7710_s1 + $0x524] ss:$16 sps:$4 sm:$0xff]  }
  0x42   :  { %3273 = vmatmul.mubr.bf16.vlgmr.msra.gmra.mxu0 %v6097_v13 }
  0x43   :  { %3314 = vmatmul.mubr.bf16.vlgmr.msra.gmra.mxu1 %v6113_v18  ;;  %3323 = vmatpush1.bf16.msra.mxu0 %v5103_v19  ;;  %v5192_v19 = vld [vmem:[%s7710_s1 + $0x724] ss:$16 sps:$4 sm:$0xff]  }
  0x44   :  { %3364 = vmatpush1.bf16.msra.mxu1 %v5106_v20  ;;  %3324 = vmatprep.subr.bf16.mxu0 %v5111_v21  ;;  %v5187_v20 = vld [vmem:[%s7710_s1 + $0x520] ss:$16 sps:$4 sm:$0xff]  }
  0x45   :  { %3365 = vmatprep.subr.bf16.mxu1 %v5114_v22  ;;  %3354 = vmatprep.mubr.bf16.mxu0 %v6109_v17  ;;  %v5190_v21 = vld [vmem:[%s7710_s1 + $0x720] ss:$16 sps:$4 sm:$0xff]   ;;  %v5195_v22 = vld [vmem:[%s7710_s1 + $0x504] ss:$16 sps:$4 sm:$0xff]  }
  0x46   :  { %3395 = vmatprep.mubr.bf16.mxu1 %v6129_v23 }
  0x47   :  { %3325 = vmatpush1.bf16.msra.mxu0 %v5109_v24  ;;  %v5198_v24 = vld [vmem:[%s7710_s1 + $0x704] ss:$16 sps:$4 sm:$0xff]  }
  0x48   :  { %3366 = vmatpush1.bf16.msra.mxu1 %v5112_v25  ;;  %3326 = vmatprep.subr.bf16.mxu0 %v5117_v26  ;;  %v5193_v25 = vld [vmem:[%s7710_s1 + $0x500] ss:$16 sps:$4 sm:$0xff]   ;;  %v6308_v26 = vrot.slane %v6077_v6, %v6019_v49 }
  0x49   :  { %3367 = vmatprep.subr.bf16.mxu1 %v5120_v27  ;;  %v5196_v27 = vld [vmem:[%s7710_s1 + $0x700] ss:$16 sps:$4 sm:$0xff]  }
  0x4a   :  { %v6321_v6 = vcombine.high %v6308_v26, %v6308_v26 }
  0x4b   :  { %3327 = vmatpush1.bf16.msra.mxu0 %v5115_v28  ;;  %v5202_v28 = vld [vmem:[%s7710_s1 + $0x8e4] ss:$16 sps:$4 sm:$0xff]  }
  0x4c   :  { %3368 = vmatpush1.bf16.msra.mxu1 %v5118_v29  ;;  %3328 = vmatprep.subr.bf16.mxu0 %v5123_v30  ;;  %v5205_v29 = vld [vmem:[%s7710_s1 + $0xae4] ss:$16 sps:$4 sm:$0xff]   ;;  %v5200_v30 = vld [vmem:[%s7710_s1 + $0x8e0] ss:$16 sps:$4 sm:$0xff]  }
  0x4d   :  { %3369 = vmatprep.subr.bf16.mxu1 %v5126_v31  ;;  %v5203_v31 = vld [vmem:[%s7710_s1 + $0xae0] ss:$16 sps:$4 sm:$0xff]  }
  0x4f   :  { %3329 = vmatpush1.bf16.msra.mxu0 %v5121_v32  ;;  %v6332_v32 = vld [vmem:[%s7709_s0 + $0x8] sm:$0xff] }
  0x50   :  { %3370 = vmatpush1.bf16.msra.mxu1 %v5124_v33  ;;  %3330 = vmatprep.subr.bf16.mxu0 %v5129_v34  ;;  %v5208_v33 = vld [vmem:[%s7710_s1 + $0x8c4] ss:$16 sps:$4 sm:$0xff]  }
  0x51   :  { %3371 = vmatprep.subr.bf16.mxu1 %v5132_v35  ;;  %v5211_v34 = vld [vmem:[%s7710_s1 + $0xac4] ss:$16 sps:$4 sm:$0xff]   ;;  %v6342_v35 = vrot.slane %v6332_v32, %v6019_v49 }
  0x53   :  { %3331 = vmatpush1.bf16.msra.mxu0 %v5127_v36  ;;  %v630_v36 = vcombine.high %v6342_v35, %v6342_v35 }
  0x54   :  { %3372 = vmatpush1.bf16.msra.mxu1 %v5130_v37  ;;  %3332 = vmatprep.subr.bf16.mxu0 %v5135_v38  ;;  %v5206_v37 = vld [vmem:[%s7710_s1 + $0x8c0] ss:$16 sps:$4 sm:$0xff]  }
  0x55   :  { %3373 = vmatprep.subr.bf16.mxu1 %v5138_v39  ;;  %v5209_v38 = vld [vmem:[%s7710_s1 + $0xac0] ss:$16 sps:$4 sm:$0xff]   ;;  %v5214_v39 = vld [vmem:[%s7710_s1 + $0x8a4] ss:$16 sps:$4 sm:$0xff]  }
  0x57   :  { %3333 = vmatpush1.bf16.msra.mxu0 %v5133_v40  ;;  %v5217_v40 = vld [vmem:[%s7710_s1 + $0xaa4] ss:$16 sps:$4 sm:$0xff]  }
  0x58   :  { %3374 = vmatpush1.bf16.msra.mxu1 %v5136_v41  ;;  %3334 = vmatprep.subr.bf16.mxu0 %v5141_v43  ;;  %v6361_v41 = vrot.slane %v630_v36, %v6019_v49  ;;  %v5278_v36 = vld [vmem:[%s7710_s1 + $0x940] ss:$16 sps:$4 sm:$0xff]  }
  0x59   :  { %3375 = vmatprep.subr.bf16.mxu1 %v5144_v44  ;;  %v5212_v44 = vld [vmem:[%s7710_s1 + $0x8a0] ss:$16 sps:$4 sm:$0xff]  }
  0x5a   :  { %v6366_v43 = vcombine.high %v6361_v41, %v6361_v41 }
  0x5b   :  { %3335 = vmatpush1.bf16.msra.mxu0 %v5139_v45  ;;  %v5215_v45 = vld [vmem:[%s7710_s1 + $0xaa0] ss:$16 sps:$4 sm:$0xff]  }
  0x5c   :  { %3376 = vmatpush1.bf16.msra.mxu1 %v5142_v46  ;;  %3336 = vmatprep.subr.bf16.mxu0 %v5147_v47  ;;  %v5220_v46 = vld [vmem:[%s7710_s1 + $0x884] ss:$16 sps:$4 sm:$0xff]  }
  0x5d   :  { %3377 = vmatprep.subr.bf16.mxu1 %v5150_v48  ;;  %v5223_v47 = vld [vmem:[%s7710_s1 + $0xa84] ss:$16 sps:$4 sm:$0xff]   ;;  %v5218_v48 = vld [vmem:[%s7710_s1 + $0x880] ss:$16 sps:$4 sm:$0xff]  }
  0x5f   :  { %3337 = vmatpush1.bf16.msra.mxu0 %v5145_v50  ;;  %v5221_v50 = vld [vmem:[%s7710_s1 + $0xa80] ss:$16 sps:$4 sm:$0xff]  }
  0x60   :  { %3378 = vmatpush1.bf16.msra.mxu1 %v5148_v51  ;;  %3338 = vmatprep.subr.bf16.mxu0 %v5153_v52  ;;  %v5226_v51 = vld [vmem:[%s7710_s1 + $0x864] ss:$16 sps:$4 sm:$0xff]  }
  0x61   :  { %3379 = vmatprep.subr.bf16.mxu1 %v5156_v53  ;;  %v5229_v52 = vld [vmem:[%s7710_s1 + $0xa64] ss:$16 sps:$4 sm:$0xff]   ;;  %v5224_v53 = vld [vmem:[%s7710_s1 + $0x860] ss:$16 sps:$4 sm:$0xff]  }
  0x63   :  { %3339 = vmatpush2.bf16.msra.mxu0 %v5151_v54  ;;  %v5227_v54 = vld [vmem:[%s7710_s1 + $0xa60] ss:$16 sps:$4 sm:$0xff]  }
  0x64   :  { %3380 = vmatpush2.bf16.msra.mxu1 %v5154_v55  ;;  %3340 = vmatprep.subr.bf16.mxu0 %v5159_v56  ;;  %v5232_v55 = vld [vmem:[%s7710_s1 + $0x844] ss:$16 sps:$4 sm:$0xff]  }
  0x65   :  { %3381 = vmatprep.subr.bf16.mxu1 %v5162_v57  ;;  %v5235_v56 = vld [vmem:[%s7710_s1 + $0xa44] ss:$16 sps:$4 sm:$0xff]   ;;  %v5230_v57 = vld [vmem:[%s7710_s1 + $0x840] ss:$16 sps:$4 sm:$0xff]  }
  0x67   :  { %3341 = vmatpush2.bf16.msra.mxu0 %v5157_v58  ;;  %v5233_v58 = vld [vmem:[%s7710_s1 + $0xa40] ss:$16 sps:$4 sm:$0xff]  }
  0x68   :  { %3382 = vmatpush2.bf16.msra.mxu1 %v5160_v59  ;;  %3342 = vmatprep.subr.bf16.mxu0 %v5165_v61  ;;  %v5238_v59 = vld [vmem:[%s7710_s1 + $0x824] ss:$16 sps:$4 sm:$0xff]  }
  0x69   :  { %3383 = vmatprep.subr.bf16.mxu1 %v5168_v62  ;;  %v5241_v61 = vld [vmem:[%s7710_s1 + $0xa24] ss:$16 sps:$4 sm:$0xff]   ;;  %v5236_v62 = vld [vmem:[%s7710_s1 + $0x820] ss:$16 sps:$4 sm:$0xff]  }
  0x6b   :  { %3343 = vmatpush2.bf16.msra.mxu0 %v5163_v63  ;;  %v5239_v63 = vld [vmem:[%s7710_s1 + $0xa20] ss:$16 sps:$4 sm:$0xff]  }
  0x6c   :  { %3384 = vmatpush2.bf16.msra.mxu1 %v5166_v1  ;;  %3344 = vmatprep.subr.bf16.mxu0 %v5171_v2  ;;  %v5244_v1 = vld [vmem:[%s7710_s1 + $0x804] ss:$16 sps:$4 sm:$0xff]  }
  0x6d   :  { %3385 = vmatprep.subr.bf16.mxu1 %v5174_v3  ;;  %v5247_v2 = vld [vmem:[%s7710_s1 + $0xa04] ss:$16 sps:$4 sm:$0xff]   ;;  %v5242_v3 = vld [vmem:[%s7710_s1 + $0x800] ss:$16 sps:$4 sm:$0xff]  }
  0x6f   :  { %3345 = vmatpush2.bf16.msra.mxu0 %v5169_v4  ;;  %v5245_v4 = vld [vmem:[%s7710_s1 + $0xa00] ss:$16 sps:$4 sm:$0xff]  }
  0x70   :  { %3386 = vmatpush2.bf16.msra.mxu1 %v5172_v5  ;;  %3346 = vmatprep.subr.bf16.mxu0 %v5177_v7  ;;  %v5250_v5 = vld [vmem:[%s7710_s1 + $0x9e4] ss:$16 sps:$4 sm:$0xff]  }
  0x71   :  { %3387 = vmatprep.subr.bf16.mxu1 %v5180_v8  ;;  %v5253_v7 = vld [vmem:[%s7710_s1 + $0xbe4] ss:$16 sps:$4 sm:$0xff]   ;;  %v5248_v8 = vld [vmem:[%s7710_s1 + $0x9e0] ss:$16 sps:$4 sm:$0xff]  }
  0x73   :  { %3347 = vmatpush2.bf16.msra.mxu0 %v5175_v9  ;;  %v5251_v9 = vld [vmem:[%s7710_s1 + $0xbe0] ss:$16 sps:$4 sm:$0xff]  }
  0x74   :  { %3388 = vmatpush2.bf16.msra.mxu1 %v5178_v10  ;;  %3348 = vmatprep.subr.bf16.mxu0 %v5183_v11  ;;  %v5256_v10 = vld [vmem:[%s7710_s1 + $0x9c4] ss:$16 sps:$4 sm:$0xff]  }
  0x75   :  { %3389 = vmatprep.subr.bf16.mxu1 %v5186_v12  ;;  %v5259_v11 = vld [vmem:[%s7710_s1 + $0xbc4] ss:$16 sps:$4 sm:$0xff]   ;;  %v5254_v12 = vld [vmem:[%s7710_s1 + $0x9c0] ss:$16 sps:$4 sm:$0xff]  }
  0x77   :  { %3349 = vmatpush2.bf16.msra.mxu0 %v5181_v14  ;;  %v5257_v14 = vld [vmem:[%s7710_s1 + $0xbc0] ss:$16 sps:$4 sm:$0xff]  }
  0x78   :  { %3390 = vmatpush2.bf16.msra.mxu1 %v5184_v15  ;;  %3350 = vmatprep.subr.bf16.mxu0 %v5189_v16  ;;  %v5262_v15 = vld [vmem:[%s7710_s1 + $0x9a4] ss:$16 sps:$4 sm:$0xff]  }
  0x79   :  { %3391 = vmatprep.subr.bf16.mxu1 %v5192_v19  ;;  %v5265_v16 = vld [vmem:[%s7710_s1 + $0xba4] ss:$16 sps:$4 sm:$0xff]   ;;  %v5260_v19 = vld [vmem:[%s7710_s1 + $0x9a0] ss:$16 sps:$4 sm:$0xff]  }
  0x7b   :  { %3351 = vmatpush2.bf16.msra.mxu0 %v5187_v20  ;;  %v5263_v20 = vld [vmem:[%s7710_s1 + $0xba0] ss:$16 sps:$4 sm:$0xff]  }
  0x7c   :  { %3392 = vmatpush2.bf16.msra.mxu1 %v5190_v21  ;;  %3352 = vmatprep.subr.bf16.mxu0 %v5195_v22  ;;  %v5268_v21 = vld [vmem:[%s7710_s1 + $0x984] ss:$16 sps:$4 sm:$0xff]  }
  0x7d   :  { %3393 = vmatprep.subr.bf16.mxu1 %v5198_v24  ;;  %v5271_v22 = vld [vmem:[%s7710_s1 + $0xb84] ss:$16 sps:$4 sm:$0xff]   ;;  %v5266_v24 = vld [vmem:[%s7710_s1 + $0x980] ss:$16 sps:$4 sm:$0xff]  }
  0x7f   :  { %3353 = vmatpush2.bf16.msra.mxu0 %v5193_v25  ;;  %v5269_v25 = vld [vmem:[%s7710_s1 + $0xb80] ss:$16 sps:$4 sm:$0xff]  }
  0x80   :  { %3394 = vmatpush2.bf16.msra.mxu1 %v5196_v27  ;;  %3404 = vmatprep.subr.bf16.mxu0 %v5202_v28  ;;  %v5274_v27 = vld [vmem:[%s7710_s1 + $0x964] ss:$16 sps:$4 sm:$0xff]  }
  0x81   :  { %3445 = vmatprep.subr.bf16.mxu1 %v5205_v29  ;;  %v5277_v28 = vld [vmem:[%s7710_s1 + $0xb64] ss:$16 sps:$4 sm:$0xff]   ;;  %v5272_v29 = vld [vmem:[%s7710_s1 + $0x960] ss:$16 sps:$4 sm:$0xff]  }
  0x82   :  { %3355 = vmatmul.mubr.bf16.vlgmr.msra.gmra.mxu0 %v6308_v26 }
  0x83   :  { %3396 = vmatmul.mubr.bf16.vlgmr.msra.gmra.mxu1 %v6321_v6  ;;  %3405 = vmatpush1.bf16.msra.mxu0 %v5200_v30  ;;  %v5275_v30 = vld [vmem:[%s7710_s1 + $0xb60] ss:$16 sps:$4 sm:$0xff]  }
  0x84   :  { %3446 = vmatpush1.bf16.msra.mxu1 %v5203_v31  ;;  %3406 = vmatprep.subr.bf16.mxu0 %v5208_v33  ;;  %v5280_v31 = vld [vmem:[%s7710_s1 + $0x944] ss:$16 sps:$4 sm:$0xff]  }
  0x85   :  { %3447 = vmatprep.subr.bf16.mxu1 %v5211_v34  ;;  %3436 = vmatprep.mubr.bf16.mxu0 %v6361_v41  ;;  %v5283_v33 = vld [vmem:[%s7710_s1 + $0xb44] ss:$16 sps:$4 sm:$0xff]   ;;  %v615_v34 = vcombine.high %v6332_v32, %v6332_v32 }
  0x86   :  { %3477 = vmatprep.mubr.bf16.mxu1 %v6366_v43  ;;  %v5289_v32 = vld [vmem:[%s7710_s1 + $0xb24] ss:$16 sps:$4 sm:$0xff]  }
  0x87   :  { %3407 = vmatpush1.bf16.msra.mxu0 %v5206_v37  ;;  %v5281_v37 = vld [vmem:[%s7710_s1 + $0xb40] ss:$16 sps:$4 sm:$0xff]  }
  0x88   :  { %3448 = vmatpush1.bf16.msra.mxu1 %v5209_v38  ;;  %3408 = vmatprep.subr.bf16.mxu0 %v5214_v39  ;;  %v5286_v38 = vld [vmem:[%s7710_s1 + $0x924] ss:$16 sps:$4 sm:$0xff]   ;;  %v6516_v39 = vrot.slane %v615_v34, %v6019_v49  ;;  %v5347_v34 = vld [vmem:[%s7710_s1 + $0xfe0] ss:$16 sps:$4 sm:$0xff]  }
  0x89   :  { %3449 = vmatprep.subr.bf16.mxu1 %v5217_v40  ;;  %v5284_v40 = vld [vmem:[%s7710_s1 + $0x920] ss:$16 sps:$4 sm:$0xff]  }
  0x8b   :  { %3409 = vmatpush1.bf16.msra.mxu0 %v5212_v44  ;;  %v5287_v44 = vld [vmem:[%s7710_s1 + $0xb20] ss:$16 sps:$4 sm:$0xff]  }
  0x8c   :  { %3450 = vmatpush1.bf16.msra.mxu1 %v5215_v45  ;;  %3410 = vmatprep.subr.bf16.mxu0 %v5220_v46  ;;  %v5292_v45 = vld [vmem:[%s7710_s1 + $0x904] ss:$16 sps:$4 sm:$0xff]  }
  0x8d   :  { %3451 = vmatprep.subr.bf16.mxu1 %v5223_v47  ;;  %v5295_v46 = vld [vmem:[%s7710_s1 + $0xb04] ss:$16 sps:$4 sm:$0xff]   ;;  %v631_v47 = vcombine.high %v6516_v39, %v6516_v39 }
  0x8f   :  { %3411 = vmatpush1.bf16.msra.mxu0 %v5218_v48  ;;  %v5290_v48 = vld [vmem:[%s7710_s1 + $0x900] ss:$16 sps:$4 sm:$0xff]  }
  0x90   :  { %3452 = vmatpush1.bf16.msra.mxu1 %v5221_v50  ;;  %3412 = vmatprep.subr.bf16.mxu0 %v5226_v51  ;;  %v6537_v50 = vrot.slane %v6342_v35, %v6019_v49  ;;  %v5293_v51 = vld [vmem:[%s7710_s1 + $0xb00] ss:$16 sps:$4 sm:$0xff]  }
  0x91   :  { %3453 = vmatprep.subr.bf16.mxu1 %v5229_v52  ;;  %v5298_v52 = vld [vmem:[%s7710_s1 + $0xce4] ss:$16 sps:$4 sm:$0xff]  }
  0x92   :  { %v6553_v35 = vcombine.high %v6537_v50, %v6537_v50 }
  0x93   :  { %3413 = vmatpush1.bf16.msra.mxu0 %v5224_v53  ;;  %v5301_v53 = vld [vmem:[%s7710_s1 + $0xee4] ss:$16 sps:$4 sm:$0xff]  }
  0x94   :  { %3454 = vmatpush1.bf16.msra.mxu1 %v5227_v54  ;;  %3414 = vmatprep.subr.bf16.mxu0 %v5232_v55  ;;  %v6549_v54 = vrot.slane %v631_v47, %v6019_v49  ;;  %v5296_v55 = vld [vmem:[%s7710_s1 + $0xce0] ss:$16 sps:$4 sm:$0xff]   ;;  %v5364_v47 = vld [vmem:[%s7710_s1 + $0xd84] ss:$16 sps:$4 sm:$0xff]  }
  0x95   :  { %3455 = vmatprep.subr.bf16.mxu1 %v5235_v56  ;;  %v5299_v56 = vld [vmem:[%s7710_s1 + $0xee0] ss:$16 sps:$4 sm:$0xff]  }
  0x97   :  { %3415 = vmatpush1.bf16.msra.mxu0 %v5230_v57  ;;  %v5304_v57 = vld [vmem:[%s7710_s1 + $0xcc4] ss:$16 sps:$4 sm:$0xff]  }
  0x98   :  { %3456 = vmatpush1.bf16.msra.mxu1 %v5233_v58  ;;  %3416 = vmatprep.subr.bf16.mxu0 %v5238_v59  ;;  %v5307_v58 = vld [vmem:[%s7710_s1 + $0xec4] ss:$16 sps:$4 sm:$0xff]   ;;  %v6569_v59 = vcombine.high %v6549_v54, %v6549_v54 }
  0x99   :  { %3457 = vmatprep.subr.bf16.mxu1 %v5241_v61  ;;  %v5302_v61 = vld [vmem:[%s7710_s1 + $0xcc0] ss:$16 sps:$4 sm:$0xff]  }
  0x9b   :  { %3417 = vmatpush1.bf16.msra.mxu0 %v5236_v62  ;;  %v5305_v62 = vld [vmem:[%s7710_s1 + $0xec0] ss:$16 sps:$4 sm:$0xff]  }
  0x9c   :  { %3458 = vmatpush1.bf16.msra.mxu1 %v5239_v63  ;;  %3418 = vmatprep.subr.bf16.mxu0 %v5244_v1  ;;  %v5310_v63 = vld [vmem:[%s7710_s1 + $0xca4] ss:$16 sps:$4 sm:$0xff]  }
  0x9d   :  { %3459 = vmatprep.subr.bf16.mxu1 %v5247_v2  ;;  %v5313_v1 = vld [vmem:[%s7710_s1 + $0xea4] ss:$16 sps:$4 sm:$0xff]   ;;  %v5308_v2 = vld [vmem:[%s7710_s1 + $0xca0] ss:$16 sps:$4 sm:$0xff]  }
  0x9f   :  { %3419 = vmatpush1.bf16.msra.mxu0 %v5242_v3  ;;  %v5311_v3 = vld [vmem:[%s7710_s1 + $0xea0] ss:$16 sps:$4 sm:$0xff]  }
  0xa0   :  { %3460 = vmatpush1.bf16.msra.mxu1 %v5245_v4  ;;  %3420 = vmatprep.subr.bf16.mxu0 %v5250_v5  ;;  %v5316_v4 = vld [vmem:[%s7710_s1 + $0xc84] ss:$16 sps:$4 sm:$0xff]  }
  0xa1   :  { %3461 = vmatprep.subr.bf16.mxu1 %v5253_v7  ;;  %v5319_v5 = vld [vmem:[%s7710_s1 + $0xe84] ss:$16 sps:$4 sm:$0xff]   ;;  %v5314_v7 = vld [vmem:[%s7710_s1 + $0xc80] ss:$16 sps:$4 sm:$0xff]  }
  0xa3   :  { %3421 = vmatpush2.bf16.msra.mxu0 %v5248_v8  ;;  %v5317_v8 = vld [vmem:[%s7710_s1 + $0xe80] ss:$16 sps:$4 sm:$0xff]  }
  0xa4   :  { %3462 = vmatpush2.bf16.msra.mxu1 %v5251_v9  ;;  %3422 = vmatprep.subr.bf16.mxu0 %v5256_v10  ;;  %v5322_v9 = vld [vmem:[%s7710_s1 + $0xc64] ss:$16 sps:$4 sm:$0xff]  }
  0xa5   :  { %3463 = vmatprep.subr.bf16.mxu1 %v5259_v11  ;;  %v5325_v10 = vld [vmem:[%s7710_s1 + $0xe64] ss:$16 sps:$4 sm:$0xff]   ;;  %v5320_v11 = vld [vmem:[%s7710_s1 + $0xc60] ss:$16 sps:$4 sm:$0xff]  }
  0xa7   :  { %3423 = vmatpush2.bf16.msra.mxu0 %v5254_v12  ;;  %v5323_v12 = vld [vmem:[%s7710_s1 + $0xe60] ss:$16 sps:$4 sm:$0xff]  }
  0xa8   :  { %3464 = vmatpush2.bf16.msra.mxu1 %v5257_v14  ;;  %3424 = vmatprep.subr.bf16.mxu0 %v5262_v15  ;;  %v5328_v14 = vld [vmem:[%s7710_s1 + $0xc44] ss:$16 sps:$4 sm:$0xff]  }
  0xa9   :  { %3465 = vmatprep.subr.bf16.mxu1 %v5265_v16  ;;  %v5331_v15 = vld [vmem:[%s7710_s1 + $0xe44] ss:$16 sps:$4 sm:$0xff]   ;;  %v5326_v16 = vld [vmem:[%s7710_s1 + $0xc40] ss:$16 sps:$4 sm:$0xff]  }
  0xab   :  { %3425 = vmatpush2.bf16.msra.mxu0 %v5260_v19  ;;  %v5329_v19 = vld [vmem:[%s7710_s1 + $0xe40] ss:$16 sps:$4 sm:$0xff]  }
  0xac   :  { %3466 = vmatpush2.bf16.msra.mxu1 %v5263_v20  ;;  %3426 = vmatprep.subr.bf16.mxu0 %v5268_v21  ;;  %v5334_v20 = vld [vmem:[%s7710_s1 + $0xc24] ss:$16 sps:$4 sm:$0xff]  }
  0xad   :  { %3467 = vmatprep.subr.bf16.mxu1 %v5271_v22  ;;  %v5337_v21 = vld [vmem:[%s7710_s1 + $0xe24] ss:$16 sps:$4 sm:$0xff]   ;;  %v5332_v22 = vld [vmem:[%s7710_s1 + $0xc20] ss:$16 sps:$4 sm:$0xff]  }
  0xaf   :  { %3427 = vmatpush2.bf16.msra.mxu0 %v5266_v24  ;;  %v5335_v24 = vld [vmem:[%s7710_s1 + $0xe20] ss:$16 sps:$4 sm:$0xff]  }
  0xb0   :  { %3468 = vmatpush2.bf16.msra.mxu1 %v5269_v25  ;;  %3428 = vmatprep.subr.bf16.mxu0 %v5274_v27  ;;  %v5340_v25 = vld [vmem:[%s7710_s1 + $0xc04] ss:$16 sps:$4 sm:$0xff]  }
  0xb1   :  { %3469 = vmatprep.subr.bf16.mxu1 %v5277_v28  ;;  %v5343_v27 = vld [vmem:[%s7710_s1 + $0xe04] ss:$16 sps:$4 sm:$0xff]   ;;  %v5338_v28 = vld [vmem:[%s7710_s1 + $0xc00] ss:$16 sps:$4 sm:$0xff]  }
  0xb3   :  { %3429 = vmatpush2.bf16.msra.mxu0 %v5272_v29  ;;  %v5341_v29 = vld [vmem:[%s7710_s1 + $0xe00] ss:$16 sps:$4 sm:$0xff]  }
  0xb4   :  { %3470 = vmatpush2.bf16.msra.mxu1 %v5275_v30  ;;  %3430 = vmatprep.subr.bf16.mxu0 %v5280_v31  ;;  %v5346_v30 = vld [vmem:[%s7710_s1 + $0xde4] ss:$16 sps:$4 sm:$0xff]  }
  0xb5   :  { %3471 = vmatprep.subr.bf16.mxu1 %v5283_v33  ;;  %v5349_v31 = vld [vmem:[%s7710_s1 + $0xfe4] ss:$16 sps:$4 sm:$0xff]   ;;  %v5344_v33 = vld [vmem:[%s7710_s1 + $0xde0] ss:$16 sps:$4 sm:$0xff]  }
  0xb7   :  { %3431 = vmatpush2.bf16.msra.mxu0 %v5278_v36  ;;  %v5352_v36 = vld [vmem:[%s7710_s1 + $0xdc4] ss:$16 sps:$4 sm:$0xff]  }
  0xb8   :  { %3472 = vmatpush2.bf16.msra.mxu1 %v5281_v37  ;;  %3432 = vmatprep.subr.bf16.mxu0 %v5286_v38  ;;  %v5355_v37 = vld [vmem:[%s7710_s1 + $0xfc4] ss:$16 sps:$4 sm:$0xff]   ;;  %v5350_v38 = vld [vmem:[%s7710_s1 + $0xdc0] ss:$16 sps:$4 sm:$0xff]  }
  0xb9   :  { %3473 = vmatprep.subr.bf16.mxu1 %v5289_v32  ;;  %v5353_v32 = vld [vmem:[%s7710_s1 + $0xfc0] ss:$16 sps:$4 sm:$0xff]  }
  0xbb   :  { %3433 = vmatpush2.bf16.msra.mxu0 %v5284_v40  ;;  %v5358_v40 = vld [vmem:[%s7710_s1 + $0xda4] ss:$16 sps:$4 sm:$0xff]  }
  0xbc   :  { %3474 = vmatpush2.bf16.msra.mxu1 %v5287_v44  ;;  %3434 = vmatprep.subr.bf16.mxu0 %v5292_v45  ;;  %v5361_v44 = vld [vmem:[%s7710_s1 + $0xfa4] ss:$16 sps:$4 sm:$0xff]   ;;  %v5356_v45 = vld [vmem:[%s7710_s1 + $0xda0] ss:$16 sps:$4 sm:$0xff]  }
  0xbd   :  { %3475 = vmatprep.subr.bf16.mxu1 %v5295_v46  ;;  %v5359_v46 = vld [vmem:[%s7710_s1 + $0xfa0] ss:$16 sps:$4 sm:$0xff]  }
  0xbf   :  { %3435 = vmatpush2.bf16.msra.mxu0 %v5290_v48  ;;  %v5367_v48 = vld [vmem:[%s7710_s1 + $0xf84] ss:$16 sps:$4 sm:$0xff]  }
  0xc0   :  { %3476 = vmatpush2.bf16.msra.mxu1 %v5293_v51  ;;  %3486 = vmatprep.subr.bf16.mxu0 %v5298_v52  ;;  %v5362_v51 = vld [vmem:[%s7710_s1 + $0xd80] ss:$16 sps:$4 sm:$0xff]  }
  0xc1   :  { %3527 = vmatprep.subr.bf16.mxu1 %v5301_v53  ;;  %v5365_v52 = vld [vmem:[%s7710_s1 + $0xf80] ss:$16 sps:$4 sm:$0xff]   ;;  %v5370_v53 = vld [vmem:[%s7710_s1 + $0xd64] ss:$16 sps:$4 sm:$0xff]  }
  0xc2   :  { %3437 = vmatmul.mubr.bf16.vlgmr.msra.gmra.mxu0 %v6537_v50 }
  0xc3   :  { %3478 = vmatmul.mubr.bf16.vlgmr.msra.gmra.mxu1 %v6553_v35  ;;  %3487 = vmatpush1.bf16.msra.mxu0 %v5296_v55  ;;  %v5373_v55 = vld [vmem:[%s7710_s1 + $0xf64] ss:$16 sps:$4 sm:$0xff]  }
  0xc4   :  { %3528 = vmatpush1.bf16.msra.mxu1 %v5299_v56  ;;  %3488 = vmatprep.subr.bf16.mxu0 %v5304_v57  ;;  %v5368_v56 = vld [vmem:[%s7710_s1 + $0xd60] ss:$16 sps:$4 sm:$0xff]  }
  0xc5   :  { %3529 = vmatprep.subr.bf16.mxu1 %v5307_v58  ;;  %3518 = vmatprep.mubr.bf16.mxu0 %v6549_v54  ;;  %v5371_v57 = vld [vmem:[%s7710_s1 + $0xf60] ss:$16 sps:$4 sm:$0xff]   ;;  %v5376_v58 = vld [vmem:[%s7710_s1 + $0xd44] ss:$16 sps:$4 sm:$0xff]  }
  0xc6   :  { %3559 = vmatprep.mubr.bf16.mxu1 %v6569_v59 }
  0xc7   :  { %3489 = vmatpush1.bf16.msra.mxu0 %v5302_v61  ;;  %v5379_v61 = vld [vmem:[%s7710_s1 + $0xf44] ss:$16 sps:$4 sm:$0xff]  }
  0xc8   :  { %3530 = vmatpush1.bf16.msra.mxu1 %v5305_v62  ;;  %3490 = vmatprep.subr.bf16.mxu0 %v5310_v63  ;;  %v5374_v62 = vld [vmem:[%s7710_s1 + $0xd40] ss:$16 sps:$4 sm:$0xff]  }
  0xc9   :  { %3531 = vmatprep.subr.bf16.mxu1 %v5313_v1  ;;  %v5377_v63 = vld [vmem:[%s7710_s1 + $0xf40] ss:$16 sps:$4 sm:$0xff]   ;;  %v5382_v1 = vld [vmem:[%s7710_s1 + $0xd24] ss:$16 sps:$4 sm:$0xff]  }
  0xcb   :  { %3491 = vmatpush1.bf16.msra.mxu0 %v5308_v2  ;;  %v5385_v2 = vld [vmem:[%s7710_s1 + $0xf24] ss:$16 sps:$4 sm:$0xff]  }
  0xcc   :  { %3532 = vmatpush1.bf16.msra.mxu1 %v5311_v3  ;;  %3492 = vmatprep.subr.bf16.mxu0 %v5316_v4  ;;  %v5380_v3 = vld [vmem:[%s7710_s1 + $0xd20] ss:$16 sps:$4 sm:$0xff]  }
  0xcd   :  { %3533 = vmatprep.subr.bf16.mxu1 %v5319_v5  ;;  %v5383_v4 = vld [vmem:[%s7710_s1 + $0xf20] ss:$16 sps:$4 sm:$0xff]   ;;  %v5388_v5 = vld [vmem:[%s7710_s1 + $0xd04] ss:$16 sps:$4 sm:$0xff]  }
  0xcf   :  { %3493 = vmatpush1.bf16.msra.mxu0 %v5314_v7  ;;  %v5391_v7 = vld [vmem:[%s7710_s1 + $0xf04] ss:$16 sps:$4 sm:$0xff]  }
  0xd0   :  { %3534 = vmatpush1.bf16.msra.mxu1 %v5317_v8  ;;  %3494 = vmatprep.subr.bf16.mxu0 %v5322_v9  ;;  %v5386_v8 = vld [vmem:[%s7710_s1 + $0xd00] ss:$16 sps:$4 sm:$0xff]  }
  0xd1   :  { %3535 = vmatprep.subr.bf16.mxu1 %v5325_v10  ;;  %v5389_v9 = vld [vmem:[%s7710_s1 + $0xf00] ss:$16 sps:$4 sm:$0xff]   ;;  %v6751_v10 = vrot.slane %v6516_v39, %v6019_v49  ;;  %v550_v49 = vsub.s32 1, %v6001_v42 }
  0xd3   :  { %3495 = vmatpush1.bf16.msra.mxu0 %v5320_v11  ;;  %v542_v11 = vld [vmem:[%s7711_s2] sm:$0xf]  ;;  %v6766_v39 = vcombine.high %v6751_v10, %v6751_v10 }
  0xd4   :  { %3536 = vmatpush1.bf16.msra.mxu1 %v5323_v12  ;;  %3496 = vmatprep.subr.bf16.mxu0 %v5328_v14  ;;  %v546_v12 = vsub.s32 0, %v6001_v42  ;;  %v5395_v14 = vld [vmem:[%s7710_s1 + $0xec] ss:$16 sps:$4 sm:$0xff]  }
  0xd5   :  { %3537 = vmatprep.subr.bf16.mxu1 %v5331_v15  ;;  %v5398_v15 = vld [vmem:[%s7710_s1 + $0x2ec] ss:$16 sps:$4 sm:$0xff]  }
  0xd7   :  { %3497 = vmatpush1.bf16.msra.mxu0 %v5326_v16  ;;  %v5393_v16 = vld [vmem:[%s7710_s1 + $0xe8] ss:$16 sps:$4 sm:$0xff]  }
  0xd8   :  { %3538 = vmatpush1.bf16.msra.mxu1 %v5329_v19  ;;  %3498 = vmatprep.subr.bf16.mxu0 %v5334_v20  ;;  %v547_v19 = vrot.slane %v542_v11, %v546_v12  ;;  %v5396_v20 = vld [vmem:[%s7710_s1 + $0x2e8] ss:$16 sps:$4 sm:$0xff]   ;;  %v5446_v12 = vld [vmem:[%s7710_s1 + $0x3ec] ss:$16 sps:$4 sm:$0xff]  }
  0xd9   :  { %3539 = vmatprep.subr.bf16.mxu1 %v5337_v21  ;;  %v5401_v21 = vld [vmem:[%s7710_s1 + $0xcc] ss:$16 sps:$4 sm:$0xff]  }
  0xdb   :  { %3499 = vmatpush1.bf16.msra.mxu0 %v5332_v22  ;;  %v5404_v22 = vld [vmem:[%s7710_s1 + $0x2cc] ss:$16 sps:$4 sm:$0xff]  }
  0xdc   :  { %3540 = vmatpush1.bf16.msra.mxu1 %v5335_v24  ;;  %3500 = vmatprep.subr.bf16.mxu0 %v5340_v25  ;;  %v551_v24 = vrot.slane %v542_v11, %v550_v49  ;;  %v5443_v11 = vld [vmem:[%s7710_s1 + $0x1ec] ss:$16 sps:$4 sm:$0xff]  }
  0xdd   :  { %3541 = vmatprep.subr.bf16.mxu1 %v5343_v27  ;;  %v5449_v49 = vld [vmem:[%s7710_s1 + $0x1cc] ss:$16 sps:$4 sm:$0xff]  }
  0xdf   :  { %3501 = vmatpush1.bf16.msra.mxu0 %v5338_v28  ;;  %v5399_v28 = vld [vmem:[%s7710_s1 + $0xc8] ss:$16 sps:$4 sm:$0xff]  }
  0xe0   :  { %3542 = vmatpush1.bf16.msra.mxu1 %v5341_v29  ;;  %3502 = vmatprep.subr.bf16.mxu0 %v5346_v30  ;;  %v5402_v29 = vld [vmem:[%s7710_s1 + $0x2c8] ss:$16 sps:$4 sm:$0xff]  }
  0xe1   :  { %3543 = vmatprep.subr.bf16.mxu1 %v5349_v31 }
  0xe3   :  { %3503 = vmatpush2.bf16.msra.mxu0 %v5344_v33 }
  0xe4   :  { %3544 = vmatpush2.bf16.msra.mxu1 %v5347_v34  ;;  %3504 = vmatprep.subr.bf16.mxu0 %v5352_v36  ;;  %v5407_v34 = vld [vmem:[%s7710_s1 + $0xac] ss:$16 sps:$4 sm:$0xff]  }
  0xe5   :  { %3545 = vmatprep.subr.bf16.mxu1 %v5355_v37  ;;  %v5410_v36 = vld [vmem:[%s7710_s1 + $0x2ac] ss:$16 sps:$4 sm:$0xff]  }
  0xe7   :  { %3505 = vmatpush2.bf16.msra.mxu0 %v5350_v38 }
  0xe8   :  { %3546 = vmatpush2.bf16.msra.mxu1 %v5353_v32  ;;  %3506 = vmatprep.subr.bf16.mxu0 %v5358_v40  ;;  %v5405_v32 = vld [vmem:[%s7710_s1 + $0xa8] ss:$16 sps:$4 sm:$0xff]  }
  0xe9   :  { %3547 = vmatprep.subr.bf16.mxu1 %v5361_v44  ;;  %v5408_v40 = vld [vmem:[%s7710_s1 + $0x2a8] ss:$16 sps:$4 sm:$0xff]  }
  0xeb   :  { %3507 = vmatpush2.bf16.msra.mxu0 %v5356_v45 }
  0xec   :  { %3548 = vmatpush2.bf16.msra.mxu1 %v5359_v46  ;;  %3508 = vmatprep.subr.bf16.mxu0 %v5364_v47 }
  0xed   :  { %3549 = vmatprep.subr.bf16.mxu1 %v5367_v48 }
  0xef   :  { %3509 = vmatpush2.bf16.msra.mxu0 %v5362_v51  ;;  %v5413_v51 = vld [vmem:[%s7710_s1 + $0x8c] ss:$16 sps:$4 sm:$0xff]  }
  0xf0   :  { %3550 = vmatpush2.bf16.msra.mxu1 %v5365_v52  ;;  %3510 = vmatprep.subr.bf16.mxu0 %v5370_v53  ;;  %v5414_v52 = vld [vmem:[%s7710_s1 + $0x288] ss:$16 sps:$4 sm:$0xff]   ;;  %v5419_v53 = vld [vmem:[%s7710_s1 + $0x6c] ss:$16 sps:$4 sm:$0xff]  }
  0xf1   :  { %3551 = vmatprep.subr.bf16.mxu1 %v5373_v55  ;;  %v5422_v55 = vld [vmem:[%s7710_s1 + $0x26c] ss:$16 sps:$4 sm:$0xff]  }
  0xf3   :  { %3511 = vmatpush2.bf16.msra.mxu0 %v5368_v56  ;;  %v5417_v56 = vld [vmem:[%s7710_s1 + $0x68] ss:$16 sps:$4 sm:$0xff]  }
  0xf4   :  { %3552 = vmatpush2.bf16.msra.mxu1 %v5371_v57  ;;  %3512 = vmatprep.subr.bf16.mxu0 %v5376_v58  ;;  %v5420_v57 = vld [vmem:[%s7710_s1 + $0x268] ss:$16 sps:$4 sm:$0xff]   ;;  %v5425_v58 = vld [vmem:[%s7710_s1 + $0x4c] ss:$16 sps:$4 sm:$0xff]  }
  0xf5   :  { %3553 = vmatprep.subr.bf16.mxu1 %v5379_v61  ;;  %v5428_v61 = vld [vmem:[%s7710_s1 + $0x24c] ss:$16 sps:$4 sm:$0xff]  }
  0xf7   :  { %3513 = vmatpush2.bf16.msra.mxu0 %v5374_v62  ;;  %v5423_v62 = vld [vmem:[%s7710_s1 + $0x48] ss:$16 sps:$4 sm:$0xff]  }
  0xf8   :  { %3554 = vmatpush2.bf16.msra.mxu1 %v5377_v63  ;;  %3514 = vmatprep.subr.bf16.mxu0 %v5382_v1  ;;  %v5426_v63 = vld [vmem:[%s7710_s1 + $0x248] ss:$16 sps:$4 sm:$0xff]   ;;  %v5431_v1 = vld [vmem:[%s7710_s1 + $0x2c] ss:$16 sps:$4 sm:$0xff]  }
  0xf9   :  { %3555 = vmatprep.subr.bf16.mxu1 %v5385_v2  ;;  %v5434_v2 = vld [vmem:[%s7710_s1 + $0x22c] ss:$16 sps:$4 sm:$0xff]  }
  0xfb   :  { %3515 = vmatpush2.bf16.msra.mxu0 %v5380_v3  ;;  %v5429_v3 = vld [vmem:[%s7710_s1 + $0x28] ss:$16 sps:$4 sm:$0xff]  }
  0xfc   :  { %3556 = vmatpush2.bf16.msra.mxu1 %v5383_v4  ;;  %3516 = vmatprep.subr.bf16.mxu0 %v5388_v5  ;;  %v5432_v4 = vld [vmem:[%s7710_s1 + $0x228] ss:$16 sps:$4 sm:$0xff]   ;;  %v5437_v5 = vld [vmem:[%s7710_s1 + $0xc] ss:$16 sps:$4 sm:$0xff]  }
  0xfd   :  { %3557 = vmatprep.subr.bf16.mxu1 %v5391_v7  ;;  %v5440_v7 = vld [vmem:[%s7710_s1 + $0x20c] ss:$16 sps:$4 sm:$0xff]  }
  0xff   :  { %3517 = vmatpush2.bf16.msra.mxu0 %v5386_v8  ;;  %v5435_v8 = vld [vmem:[%s7710_s1 + $0x8] ss:$16 sps:$4 sm:$0xff]  }
 0x100   :  { %3558 = vmatpush2.bf16.msra.mxu1 %v5389_v9  ;;  %3568 = vmatprep.subr.bf16.mxu0 %v5395_v14  ;;  %v5438_v9 = vld [vmem:[%s7710_s1 + $0x208] ss:$16 sps:$4 sm:$0xff]  }
 0x101   :  { %3609 = vmatprep.subr.bf16.mxu1 %v5398_v15  ;;  %v5441_v14 = vld [vmem:[%s7710_s1 + $0x1e8] ss:$16 sps:$4 sm:$0xff]  }
 0x102   :  { %v3274_v25 = vpop.f32.mrf.mxu0  ;;  %3519 = vmatmul.mubr.bf16.vlgmr.msra.gmra.mxu0 %v6751_v10  ;;  %v5444_v15 = vld [vmem:[%s7710_s1 + $0x3e8] ss:$16 sps:$4 sm:$0xff]  }
 0x103   :  { %v3315_v27 = vpop.f32.mrf.mxu1  ;;  %3560 = vmatmul.mubr.bf16.vlgmr.msra.gmra.mxu1 %v6766_v39  ;;  %v3275_v30 = vadd.f32 %v3274_v25, %v547_v19  ;;  %3569 = vmatpush1.bf16.msra.mxu0 %v5393_v16  ;;  %v5452_v16 = vld [vmem:[%s7710_s1 + $0x3cc] ss:$16 sps:$4 sm:$0xff]   ;;  %v5447_v19 = vld [vmem:[%s7710_s1 + $0x1c8] ss:$16 sps:$4 sm:$0xff]  }
 0x104   :  { %3610 = vmatpush1.bf16.msra.mxu1 %v5396_v20  ;;  %v3276_v31 = vpop.f32.mrf.mxu0  ;;  %3570 = vmatprep.subr.bf16.mxu0 %v5401_v21  ;;  %v5450_v20 = vld [vmem:[%s7710_s1 + $0x3c8] ss:$16 sps:$4 sm:$0xff]   ;;  %v5455_v21 = vld [vmem:[%s7710_s1 + $0x1ac] ss:$16 sps:$4 sm:$0xff]  }
 0x105   :  { %v3317_v33 = vpop.f32.mrf.mxu1  ;;  %3611 = vmatprep.subr.bf16.mxu1 %v5404_v22  ;;  %v6794_v37 = vadd.f32 %v3315_v27, %v3275_v30  ;;  %v3277_v38 = vadd.f32 %v3276_v31, %v551_v24  ;;  %3600 = vmatprep.mubr.bf16.mxu0 %v6047_v60  ;;  %v5416_v60 = vld [vmem:[%s7710_s1 + $0x28c] ss:$16 sps:$4 sm:$0xff]   ;;  %v5453_v24 = vld [vmem:[%s7710_s1 + $0x1a8] ss:$16 sps:$4 sm:$0xff]  }
 0x106   :  { %3641 = vmatprep.mubr.bf16.mxu1 %v6060_v0  ;;  %v3278_v44 = vpop.f32.mrf.mxu0  ;;  %v5411_v0 = vld [vmem:[%s7710_s1 + $0x88] ss:$16 sps:$4 sm:$0xff]   ;;  %v5458_v22 = vld [vmem:[%s7710_s1 + $0x3ac] ss:$16 sps:$4 sm:$0xff]  }
 0x107   :  { %v3319_v45 = vpop.f32.mrf.mxu1  ;;  %v6804_v46 = vadd.f32 %v3317_v33, %v3277_v38  ;;  %3571 = vmatpush1.bf16.msra.mxu0 %v5399_v28  ;;  %v5456_v25 = vld [vmem:[%s7710_s1 + $0x3a8] ss:$16 sps:$4 sm:$0xff]   ;;  %v5461_v27 = vld [vmem:[%s7710_s1 + $0x18c] ss:$16 sps:$4 sm:$0xff]  }
 0x108   :  { %3612 = vmatpush1.bf16.msra.mxu1 %v5402_v29  ;;  %v3279_v47 = vpop.f32.mrf.mxu0  ;;  %3572 = vmatprep.subr.bf16.mxu0 %v5407_v34  ;;  %v5464_v28 = vld [vmem:[%s7710_s1 + $0x38c] ss:$16 sps:$4 sm:$0xff]   ;;  %v5459_v29 = vld [vmem:[%s7710_s1 + $0x188] ss:$16 sps:$4 sm:$0xff]  }
 0x109   :  { %v3320_v48 = vpop.f32.mrf.mxu1  ;;  %3613 = vmatprep.subr.bf16.mxu1 %v5410_v36  ;;  %v5462_v30 = vld [vmem:[%s7710_s1 + $0x388] ss:$16 sps:$4 sm:$0xff]   ;;  %v5467_v31 = vld [vmem:[%s7710_s1 + $0x16c] ss:$16 sps:$4 sm:$0xff]  }
 0x10a   :  { %v5470_v33 = vld [vmem:[%s7710_s1 + $0x36c] ss:$16 sps:$4 sm:$0xff]   ;;  %v5465_v34 = vld [vmem:[%s7710_s1 + $0x168] ss:$16 sps:$4 sm:$0xff]  }
 0x10b   :  { %3573 = vmatpush1.bf16.msra.mxu0 %v5405_v32  ;;  %v5468_v36 = vld [vmem:[%s7710_s1 + $0x368] ss:$16 sps:$4 sm:$0xff]   ;;  %v5473_v38 = vld [vmem:[%s7710_s1 + $0x14c] ss:$16 sps:$4 sm:$0xff]  }
 0x10c   :  { %3614 = vmatpush1.bf16.msra.mxu1 %v5408_v40  ;;  %3574 = vmatprep.subr.bf16.mxu0 %v5413_v51  ;;  %v5476_v32 = vld [vmem:[%s7710_s1 + $0x34c] ss:$16 sps:$4 sm:$0xff]   ;;  %v5471_v40 = vld [vmem:[%s7710_s1 + $0x148] ss:$16 sps:$4 sm:$0xff]  }
 0x10d   :  { %3615 = vmatprep.subr.bf16.mxu1 %v5416_v60  ;;  %v5474_v44 = vld [vmem:[%s7710_s1 + $0x348] ss:$16 sps:$4 sm:$0xff]   ;;  %v5479_v45 = vld [vmem:[%s7710_s1 + $0x12c] ss:$16 sps:$4 sm:$0xff]  }
 0x10e   :  { %v5482_v47 = vld [vmem:[%s7710_s1 + $0x32c] ss:$16 sps:$4 sm:$0xff]   ;;  %v5477_v48 = vld [vmem:[%s7710_s1 + $0x128] ss:$16 sps:$4 sm:$0xff]  }
 0x10f   :  { %3575 = vmatpush1.bf16.msra.mxu0 %v5411_v0  ;;  %v5480_v51 = vld [vmem:[%s7710_s1 + $0x328] ss:$16 sps:$4 sm:$0xff]   ;;  %v5485_v60 = vld [vmem:[%s7710_s1 + $0x10c] ss:$16 sps:$4 sm:$0xff]  }
 0x110   :  { %3616 = vmatpush1.bf16.msra.mxu1 %v5414_v52  ;;  %3576 = vmatprep.subr.bf16.mxu0 %v5419_v53  ;;  %v5488_v0 = vld [vmem:[%s7710_s1 + $0x30c] ss:$16 sps:$4 sm:$0xff]   ;;  %v5483_v52 = vld [vmem:[%s7710_s1 + $0x108] ss:$16 sps:$4 sm:$0xff]  }
 0x111   :  { %3617 = vmatprep.subr.bf16.mxu1 %v5422_v55  ;;  %v5486_v53 = vld [vmem:[%s7710_s1 + $0x308] ss:$16 sps:$4 sm:$0xff]   ;;  %v5491_v55 = vld [vmem:[%s7710_s1 + $0x4ec] ss:$16 sps:$4 sm:$0xff]  }
 0x113   :  { %3577 = vmatpush1.bf16.msra.mxu0 %v5417_v56  ;;  %v5494_v56 = vld [vmem:[%s7710_s1 + $0x6ec] ss:$16 sps:$4 sm:$0xff]  }
 0x114   :  { %3618 = vmatpush1.bf16.msra.mxu1 %v5420_v57  ;;  %3578 = vmatprep.subr.bf16.mxu0 %v5425_v58  ;;  %v5489_v57 = vld [vmem:[%s7710_s1 + $0x4e8] ss:$16 sps:$4 sm:$0xff]  }
 0x115   :  { %3619 = vmatprep.subr.bf16.mxu1 %v5428_v61  ;;  %v5492_v58 = vld [vmem:[%s7710_s1 + $0x6e8] ss:$16 sps:$4 sm:$0xff]   ;;  %v5497_v61 = vld [vmem:[%s7710_s1 + $0x4cc] ss:$16 sps:$4 sm:$0xff]  }
 0x117   :  { %3579 = vmatpush1.bf16.msra.mxu0 %v5423_v62  ;;  %v5500_v62 = vld [vmem:[%s7710_s1 + $0x6cc] ss:$16 sps:$4 sm:$0xff]  }
 0x118   :  { %3620 = vmatpush1.bf16.msra.mxu1 %v5426_v63  ;;  %3580 = vmatprep.subr.bf16.mxu0 %v5431_v1  ;;  %v5495_v63 = vld [vmem:[%s7710_s1 + $0x4c8] ss:$16 sps:$4 sm:$0xff]  }
 0x119   :  { %3621 = vmatprep.subr.bf16.mxu1 %v5434_v2  ;;  %v5498_v1 = vld [vmem:[%s7710_s1 + $0x6c8] ss:$16 sps:$4 sm:$0xff]  }
 0x11b   :  { %3581 = vmatpush1.bf16.msra.mxu0 %v5429_v3 }
 0x11c   :  { %3622 = vmatpush1.bf16.msra.mxu1 %v5432_v4  ;;  %3582 = vmatprep.subr.bf16.mxu0 %v5437_v5 }
 0x11d   :  { %3623 = vmatprep.subr.bf16.mxu1 %v5440_v7 }
 0x11f   :  { %3583 = vmatpush1.bf16.msra.mxu0 %v5435_v8  ;;  %v5503_v8 = vld [vmem:[%s7710_s1 + $0x4ac] ss:$16 sps:$4 sm:$0xff]  }
 0x120   :  { %3624 = vmatpush1.bf16.msra.mxu1 %v5438_v9  ;;  %3584 = vmatprep.subr.bf16.mxu0 %v5443_v11  ;;  %v5506_v9 = vld [vmem:[%s7710_s1 + $0x6ac] ss:$16 sps:$4 sm:$0xff]  }
 0x121   :  { %3625 = vmatprep.subr.bf16.mxu1 %v5446_v12 }
 0x123   :  { %3585 = vmatpush2.bf16.msra.mxu0 %v5441_v14 }
 0x124   :  { %3626 = vmatpush2.bf16.msra.mxu1 %v5444_v15  ;;  %3586 = vmatprep.subr.bf16.mxu0 %v5449_v49 }
 0x125   :  { %3627 = vmatprep.subr.bf16.mxu1 %v5452_v16  ;;  %v5509_v16 = vld [vmem:[%s7710_s1 + $0x48c] ss:$16 sps:$4 sm:$0xff]  }
 0x127   :  { %3587 = vmatpush2.bf16.msra.mxu0 %v5447_v19  ;;  %v5510_v19 = vld [vmem:[%s7710_s1 + $0x688] ss:$16 sps:$4 sm:$0xff]  }
 0x128   :  { %3628 = vmatpush2.bf16.msra.mxu1 %v5450_v20  ;;  %3588 = vmatprep.subr.bf16.mxu0 %v5455_v21  ;;  %v5515_v20 = vld [vmem:[%s7710_s1 + $0x46c] ss:$16 sps:$4 sm:$0xff]  }
 0x129   :  { %3629 = vmatprep.subr.bf16.mxu1 %v5458_v22  ;;  %v5518_v21 = vld [vmem:[%s7710_s1 + $0x66c] ss:$16 sps:$4 sm:$0xff]   ;;  %v5513_v22 = vld [vmem:[%s7710_s1 + $0x468] ss:$16 sps:$4 sm:$0xff]  }
 0x12b   :  { %3589 = vmatpush2.bf16.msra.mxu0 %v5453_v24  ;;  %v5516_v24 = vld [vmem:[%s7710_s1 + $0x668] ss:$16 sps:$4 sm:$0xff]  }
 0x12c   :  { %3630 = vmatpush2.bf16.msra.mxu1 %v5456_v25  ;;  %3590 = vmatprep.subr.bf16.mxu0 %v5461_v27  ;;  %v5521_v25 = vld [vmem:[%s7710_s1 + $0x44c] ss:$16 sps:$4 sm:$0xff]  }
 0x12d   :  { %3631 = vmatprep.subr.bf16.mxu1 %v5464_v28  ;;  %v5524_v27 = vld [vmem:[%s7710_s1 + $0x64c] ss:$16 sps:$4 sm:$0xff]   ;;  %v5519_v28 = vld [vmem:[%s7710_s1 + $0x448] ss:$16 sps:$4 sm:$0xff]  }
 0x12f   :  { %3591 = vmatpush2.bf16.msra.mxu0 %v5459_v29  ;;  %v5522_v29 = vld [vmem:[%s7710_s1 + $0x648] ss:$16 sps:$4 sm:$0xff]  }
 0x130   :  { %3632 = vmatpush2.bf16.msra.mxu1 %v5462_v30  ;;  %3592 = vmatprep.subr.bf16.mxu0 %v5467_v31  ;;  %v5527_v30 = vld [vmem:[%s7710_s1 + $0x42c] ss:$16 sps:$4 sm:$0xff]  }
 0x131   :  { %3633 = vmatprep.subr.bf16.mxu1 %v5470_v33  ;;  %v5530_v31 = vld [vmem:[%s7710_s1 + $0x62c] ss:$16 sps:$4 sm:$0xff]   ;;  %v5525_v33 = vld [vmem:[%s7710_s1 + $0x428] ss:$16 sps:$4 sm:$0xff]  }
 0x133   :  { %3593 = vmatpush2.bf16.msra.mxu0 %v5465_v34  ;;  %v5528_v34 = vld [vmem:[%s7710_s1 + $0x628] ss:$16 sps:$4 sm:$0xff]  }
 0x134   :  { %3634 = vmatpush2.bf16.msra.mxu1 %v5468_v36  ;;  %3594 = vmatprep.subr.bf16.mxu0 %v5473_v38  ;;  %v5533_v36 = vld [vmem:[%s7710_s1 + $0x40c] ss:$16 sps:$4 sm:$0xff]  }
 0x135   :  { %3635 = vmatprep.subr.bf16.mxu1 %v5476_v32  ;;  %v5536_v38 = vld [vmem:[%s7710_s1 + $0x60c] ss:$16 sps:$4 sm:$0xff]   ;;  %v5531_v32 = vld [vmem:[%s7710_s1 + $0x408] ss:$16 sps:$4 sm:$0xff]  }
 0x137   :  { %3595 = vmatpush2.bf16.msra.mxu0 %v5471_v40  ;;  %v5534_v40 = vld [vmem:[%s7710_s1 + $0x608] ss:$16 sps:$4 sm:$0xff]  }
 0x138   :  { %3636 = vmatpush2.bf16.msra.mxu1 %v5474_v44  ;;  %3596 = vmatprep.subr.bf16.mxu0 %v5479_v45  ;;  %v5539_v44 = vld [vmem:[%s7710_s1 + $0x5ec] ss:$16 sps:$4 sm:$0xff]  }
 0x139   :  { %3637 = vmatprep.subr.bf16.mxu1 %v5482_v47  ;;  %v5542_v45 = vld [vmem:[%s7710_s1 + $0x7ec] ss:$16 sps:$4 sm:$0xff]   ;;  %v5537_v47 = vld [vmem:[%s7710_s1 + $0x5e8] ss:$16 sps:$4 sm:$0xff]  }
 0x13b   :  { %3597 = vmatpush2.bf16.msra.mxu0 %v5477_v48  ;;  %v5540_v48 = vld [vmem:[%s7710_s1 + $0x7e8] ss:$16 sps:$4 sm:$0xff]  }
 0x13c   :  { %3638 = vmatpush2.bf16.msra.mxu1 %v5480_v51  ;;  %3598 = vmatprep.subr.bf16.mxu0 %v5485_v60  ;;  %v5545_v51 = vld [vmem:[%s7710_s1 + $0x5cc] ss:$16 sps:$4 sm:$0xff]  }
 0x13d   :  { %3639 = vmatprep.subr.bf16.mxu1 %v5488_v0  ;;  %v5548_v60 = vld [vmem:[%s7710_s1 + $0x7cc] ss:$16 sps:$4 sm:$0xff]   ;;  %v5543_v0 = vld [vmem:[%s7710_s1 + $0x5c8] ss:$16 sps:$4 sm:$0xff]  }
 0x13f   :  { %3599 = vmatpush2.bf16.msra.mxu0 %v5483_v52  ;;  %v5546_v52 = vld [vmem:[%s7710_s1 + $0x7c8] ss:$16 sps:$4 sm:$0xff]  }
 0x140   :  { %3640 = vmatpush2.bf16.msra.mxu1 %v5486_v53  ;;  %3650 = vmatprep.subr.bf16.mxu0 %v5491_v55  ;;  %v5551_v53 = vld [vmem:[%s7710_s1 + $0x5ac] ss:$16 sps:$4 sm:$0xff]  }
 0x141   :  { %3691 = vmatprep.subr.bf16.mxu1 %v5494_v56  ;;  %v5554_v55 = vld [vmem:[%s7710_s1 + $0x7ac] ss:$16 sps:$4 sm:$0xff]   ;;  %v5549_v56 = vld [vmem:[%s7710_s1 + $0x5a8] ss:$16 sps:$4 sm:$0xff]  }
 0x142   :  { %v3356_v2 = vpop.f32.mrf.mxu0  ;;  %3601 = vmatmul.mubr.bf16.vlgmr.msra.gmra.mxu0 %v6097_v13 }
 0x143   :  { %v3397_v3 = vpop.f32.mrf.mxu1  ;;  %3642 = vmatmul.mubr.bf16.vlgmr.msra.gmra.mxu1 %v6113_v18  ;;  %v3357_v4 = vadd.f32 %v3356_v2, %v6794_v37  ;;  %3651 = vmatpush1.bf16.msra.mxu0 %v5489_v57  ;;  %v5501_v18 = vld [vmem:[%s7710_s1 + $0x4a8] ss:$16 sps:$4 sm:$0xff]  }
 0x144   :  { %3692 = vmatpush1.bf16.msra.mxu1 %v5492_v58  ;;  %v3358_v5 = vpop.f32.mrf.mxu0  ;;  %3652 = vmatprep.subr.bf16.mxu0 %v5497_v61  ;;  %v5504_v37 = vld [vmem:[%s7710_s1 + $0x6a8] ss:$16 sps:$4 sm:$0xff]   ;;  %v5557_v58 = vld [vmem:[%s7710_s1 + $0x58c] ss:$16 sps:$4 sm:$0xff]  }
 0x145   :  { %v3399_v7 = vpop.f32.mrf.mxu1  ;;  %3693 = vmatprep.subr.bf16.mxu1 %v5500_v62  ;;  %v6995_v11 = vadd.f32 %v3397_v3, %v3357_v4  ;;  %v3359_v13 = vadd.f32 %v3358_v5, %v6804_v46  ;;  %3682 = vmatprep.mubr.bf16.mxu0 %v6109_v17  ;;  %v5512_v17 = vld [vmem:[%s7710_s1 + $0x68c] ss:$16 sps:$4 sm:$0xff]   ;;  %v5552_v57 = vld [vmem:[%s7710_s1 + $0x7a8] ss:$16 sps:$4 sm:$0xff]  }
 0x146   :  { %3723 = vmatprep.mubr.bf16.mxu1 %v6129_v23  ;;  %v3360_v12 = vpop.f32.mrf.mxu0  ;;  %v5507_v23 = vld [vmem:[%s7710_s1 + $0x488] ss:$16 sps:$4 sm:$0xff]   ;;  %v5560_v61 = vld [vmem:[%s7710_s1 + $0x78c] ss:$16 sps:$4 sm:$0xff]  }
 0x147   :  { %v3401_v14 = vpop.f32.mrf.mxu1  ;;  %v7006_v15 = vadd.f32 %v3399_v7, %v3359_v13  ;;  %3653 = vmatpush1.bf16.msra.mxu0 %v5495_v63 }
 0x148   :  { %3694 = vmatpush1.bf16.msra.mxu1 %v5498_v1  ;;  %v3361_v49 = vpop.f32.mrf.mxu0  ;;  %3654 = vmatprep.subr.bf16.mxu0 %v5503_v8 }
 0x149   :  { %v3402_v46 = vpop.f32.mrf.mxu1  ;;  %3695 = vmatprep.subr.bf16.mxu1 %v5506_v9 }
 0x14b   :  { %3655 = vmatpush1.bf16.msra.mxu0 %v5501_v18 }
 0x14c   :  { %3696 = vmatpush1.bf16.msra.mxu1 %v5504_v37  ;;  %3656 = vmatprep.subr.bf16.mxu0 %v5509_v16 }
 0x14d   :  { %3697 = vmatprep.subr.bf16.mxu1 %v5512_v17 }
 0x14f   :  { %3657 = vmatpush1.bf16.msra.mxu0 %v5507_v23 }
 0x150   :  { %3698 = vmatpush1.bf16.msra.mxu1 %v5510_v19  ;;  %3658 = vmatprep.subr.bf16.mxu0 %v5515_v20 }
 0x151   :  { %3699 = vmatprep.subr.bf16.mxu1 %v5518_v21 }
 0x153   :  { %3659 = vmatpush1.bf16.msra.mxu0 %v5513_v22 }
 0x154   :  { %3700 = vmatpush1.bf16.msra.mxu1 %v5516_v24  ;;  %3660 = vmatprep.subr.bf16.mxu0 %v5521_v25 }
 0x155   :  { %3701 = vmatprep.subr.bf16.mxu1 %v5524_v27 }
 0x157   :  { %3661 = vmatpush1.bf16.msra.mxu0 %v5519_v28 }
 0x158   :  { %3702 = vmatpush1.bf16.msra.mxu1 %v5522_v29  ;;  %3662 = vmatprep.subr.bf16.mxu0 %v5527_v30 }
 0x159   :  { %3703 = vmatprep.subr.bf16.mxu1 %v5530_v31 }
 0x15b   :  { %3663 = vmatpush1.bf16.msra.mxu0 %v5525_v33 }
 0x15c   :  { %3704 = vmatpush1.bf16.msra.mxu1 %v5528_v34  ;;  %3664 = vmatprep.subr.bf16.mxu0 %v5533_v36 }
 0x15d   :  { %3705 = vmatprep.subr.bf16.mxu1 %v5536_v38 }
 0x15f   :  { %3665 = vmatpush1.bf16.msra.mxu0 %v5531_v32 }
 0x160   :  { %3706 = vmatpush1.bf16.msra.mxu1 %v5534_v40  ;;  %3666 = vmatprep.subr.bf16.mxu0 %v5539_v44 }
 0x161   :  { %3707 = vmatprep.subr.bf16.mxu1 %v5542_v45 }
 0x163   :  { %3667 = vmatpush2.bf16.msra.mxu0 %v5537_v47 }
 0x164   :  { %3708 = vmatpush2.bf16.msra.mxu1 %v5540_v48  ;;  %3668 = vmatprep.subr.bf16.mxu0 %v5545_v51 }
 0x165   :  { %3709 = vmatprep.subr.bf16.mxu1 %v5548_v60 }
 0x167   :  { %3669 = vmatpush2.bf16.msra.mxu0 %v5543_v0 }
 0x168   :  { %3710 = vmatpush2.bf16.msra.mxu1 %v5546_v52  ;;  %3670 = vmatprep.subr.bf16.mxu0 %v5551_v53 }
 0x169   :  { %3711 = vmatprep.subr.bf16.mxu1 %v5554_v55 }
 0x16a   :  { %12 = vsyncpa [#allocation3], 0  ;;  %v5555_v62 = vld [vmem:[%s7710_s1 + $0x588] ss:$16 sps:$4 sm:$0xff]   ;;  %v5563_v1 = vld [vmem:[%s7710_s1 + $0x56c] ss:$16 sps:$4 sm:$0xff]  }
 0x16b   :  { %3671 = vmatpush2.bf16.msra.mxu0 %v5549_v56  ;;  %v5558_v63 = vld [vmem:[%s7710_s1 + $0x788] ss:$16 sps:$4 sm:$0xff]   ;;  %v5566_v2 = vld [vmem:[%s7710_s1 + $0x76c] ss:$16 sps:$4 sm:$0xff]   ;;  %vm5842_vm0 = vmmov 0   ;;  %vm4360_vm1 = vcmask 41984  }
 0x16c   :  { %3712 = vmatpush2.bf16.msra.mxu1 %v5552_v57  ;;  %3672 = vmatprep.subr.bf16.mxu0 %v5557_v58  ;;  %v5561_v3 = vld [vmem:[%s7710_s1 + $0x568] ss:$16 sps:$4 sm:$0xff]   ;;  %v5569_v5 = vld [vmem:[%s7710_s1 + $0x54c] ss:$16 sps:$4 sm:$0xff]  }
 0x16d   :  { %3713 = vmatprep.subr.bf16.mxu1 %v5560_v61  ;;  %v5564_v4 = vld [vmem:[%s7710_s1 + $0x768] ss:$16 sps:$4 sm:$0xff]   ;;  %v5572_v7 = vld [vmem:[%s7710_s1 + $0x74c] ss:$16 sps:$4 sm:$0xff]  }
 0x16e   :  { %v5567_v8 = vld [vmem:[%s7710_s1 + $0x548] ss:$16 sps:$4 sm:$0xff]   ;;  %v5575_v13 = vld [vmem:[%s7710_s1 + $0x52c] ss:$16 sps:$4 sm:$0xff]  }
 0x16f   :  { %3673 = vmatpush2.bf16.msra.mxu0 %v5555_v62  ;;  %v5570_v9 = vld [vmem:[%s7710_s1 + $0x748] ss:$16 sps:$4 sm:$0xff]   ;;  %v5578_v18 = vld [vmem:[%s7710_s1 + $0x72c] ss:$16 sps:$4 sm:$0xff]  }
 0x170   :  { %3714 = vmatpush2.bf16.msra.mxu1 %v5558_v63  ;;  %3674 = vmatprep.subr.bf16.mxu0 %v5563_v1  ;;  %v5573_v37 = vld [vmem:[%s7710_s1 + $0x528] ss:$16 sps:$4 sm:$0xff]   ;;  %v5581_v14 = vld [vmem:[%s7710_s1 + $0x50c] ss:$16 sps:$4 sm:$0xff]  }
 0x171   :  { %3715 = vmatprep.subr.bf16.mxu1 %v5566_v2  ;;  %v5576_v12 = vld [vmem:[%s7710_s1 + $0x728] ss:$16 sps:$4 sm:$0xff]   ;;  %v5584_v49 = vld [vmem:[%s7710_s1 + $0x70c] ss:$16 sps:$4 sm:$0xff]  }
 0x172   :  { %v5579_v46 = vld [vmem:[%s7710_s1 + $0x508] ss:$16 sps:$4 sm:$0xff]   ;;  %v5587_v17 = vld [vmem:[%s7710_s1 + $0x8ec] ss:$16 sps:$4 sm:$0xff]  }
 0x173   :  { %3675 = vmatpush2.bf16.msra.mxu0 %v5561_v3  ;;  %v5582_v16 = vld [vmem:[%s7710_s1 + $0x708] ss:$16 sps:$4 sm:$0xff]   ;;  %v5590_v23 = vld [vmem:[%s7710_s1 + $0xaec] ss:$16 sps:$4 sm:$0xff]  }
 0x174   :  { %3716 = vmatpush2.bf16.msra.mxu1 %v5564_v4  ;;  %3676 = vmatprep.subr.bf16.mxu0 %v5569_v5  ;;  %v5585_v19 = vld [vmem:[%s7710_s1 + $0x8e8] ss:$16 sps:$4 sm:$0xff]   ;;  %v5593_v21 = vld [vmem:[%s7710_s1 + $0x8cc] ss:$16 sps:$4 sm:$0xff]  }
 0x175   :  { %3717 = vmatprep.subr.bf16.mxu1 %v5572_v7  ;;  %v5588_v20 = vld [vmem:[%s7710_s1 + $0xae8] ss:$16 sps:$4 sm:$0xff]   ;;  %v5596_v22 = vld [vmem:[%s7710_s1 + $0xacc] ss:$16 sps:$4 sm:$0xff]  }
 0x176   :  { %v5591_v28 = vld [vmem:[%s7710_s1 + $0x8c8] ss:$16 sps:$4 sm:$0xff]   ;;  %v5611_v48 = vld [vmem:[%s7710_s1 + $0x86c] ss:$16 sps:$4 sm:$0xff]  }
 0x177   :  { %3677 = vmatpush2.bf16.msra.mxu0 %v5567_v8  ;;  %v5594_v29 = vld [vmem:[%s7710_s1 + $0xac8] ss:$16 sps:$4 sm:$0xff]   ;;  %v5614_v51 = vld [vmem:[%s7710_s1 + $0xa6c] ss:$16 sps:$4 sm:$0xff]  }
 0x178   :  { %3718 = vmatpush2.bf16.msra.mxu1 %v5570_v9  ;;  %3678 = vmatprep.subr.bf16.mxu0 %v5575_v13  ;;  %v5597_v32 = vld [vmem:[%s7710_s1 + $0x8a8] ss:$16 sps:$4 sm:$0xff]   ;;  %v5617_v52 = vld [vmem:[%s7710_s1 + $0x84c] ss:$16 sps:$4 sm:$0xff]  }
 0x179   :  { %3719 = vmatprep.subr.bf16.mxu1 %v5578_v18  ;;  %v5600_v40 = vld [vmem:[%s7710_s1 + $0xaa8] ss:$16 sps:$4 sm:$0xff]   ;;  %v5620_v53 = vld [vmem:[%s7710_s1 + $0xa4c] ss:$16 sps:$4 sm:$0xff]  }
 0x17a   :  { %v5603_v45 = vld [vmem:[%s7710_s1 + $0x888] ss:$16 sps:$4 sm:$0xff]   ;;  %v5623_v57 = vld [vmem:[%s7710_s1 + $0x82c] ss:$16 sps:$4 sm:$0xff]  }
 0x17b   :  { %3679 = vmatpush2.bf16.msra.mxu0 %v5573_v37  ;;  %v5606_v47 = vld [vmem:[%s7710_s1 + $0xa88] ss:$16 sps:$4 sm:$0xff]   ;;  %v5626_v58 = vld [vmem:[%s7710_s1 + $0xa2c] ss:$16 sps:$4 sm:$0xff]  }
 0x17c   :  { %3720 = vmatpush2.bf16.msra.mxu1 %v5576_v12  ;;  %3680 = vmatprep.subr.bf16.mxu0 %v5581_v14  ;;  %v5609_v60 = vld [vmem:[%s7710_s1 + $0x868] ss:$16 sps:$4 sm:$0xff]   ;;  %v5629_v63 = vld [vmem:[%s7710_s1 + $0x80c] ss:$16 sps:$4 sm:$0xff]  }
 0x17d   :  { %3721 = vmatprep.subr.bf16.mxu1 %v5584_v49  ;;  %v5612_v0 = vld [vmem:[%s7710_s1 + $0xa68] ss:$16 sps:$4 sm:$0xff]   ;;  %v5632_v1 = vld [vmem:[%s7710_s1 + $0xa0c] ss:$16 sps:$4 sm:$0xff]  }
 0x17e   :  { %v5615_v55 = vld [vmem:[%s7710_s1 + $0x848] ss:$16 sps:$4 sm:$0xff]   ;;  %v5635_v4 = vld [vmem:[%s7710_s1 + $0x9ec] ss:$16 sps:$4 sm:$0xff]  }
 0x17f   :  { %3681 = vmatpush2.bf16.msra.mxu0 %v5579_v46  ;;  %v5618_v56 = vld [vmem:[%s7710_s1 + $0xa48] ss:$16 sps:$4 sm:$0xff]   ;;  %v5638_v5 = vld [vmem:[%s7710_s1 + $0xbec] ss:$16 sps:$4 sm:$0xff]  }
 0x180   :  { %3722 = vmatpush2.bf16.msra.mxu1 %v5582_v16  ;;  %3732 = vmatprep.subr.bf16.mxu0 %v5587_v17  ;;  %v5621_v61 = vld [vmem:[%s7710_s1 + $0x828] ss:$16 sps:$4 sm:$0xff]   ;;  %v5641_v9 = vld [vmem:[%s7710_s1 + $0x9cc] ss:$16 sps:$4 sm:$0xff]  }
 0x181   :  { %3773 = vmatprep.subr.bf16.mxu1 %v5590_v23  ;;  %v5624_v62 = vld [vmem:[%s7710_s1 + $0xa28] ss:$16 sps:$4 sm:$0xff]   ;;  %v5644_v13 = vld [vmem:[%s7710_s1 + $0xbcc] ss:$16 sps:$4 sm:$0xff]  }
 0x182   :  { %v3438_v24 = vpop.f32.mrf.mxu0  ;;  %3683 = vmatmul.mubr.bf16.vlgmr.msra.gmra.mxu0 %v6308_v26  ;;  %v5599_v26 = vld [vmem:[%s7710_s1 + $0x8ac] ss:$16 sps:$4 sm:$0xff]   ;;  %v5627_v2 = vld [vmem:[%s7710_s1 + $0x808] ss:$16 sps:$4 sm:$0xff]  }
 0x183   :  { %v3479_v25 = vpop.f32.mrf.mxu1  ;;  %3724 = vmatmul.mubr.bf16.vlgmr.msra.gmra.mxu1 %v6321_v6  ;;  %v3439_v27 = vadd.f32 %v3438_v24, %v6995_v11  ;;  %3733 = vmatpush1.bf16.msra.mxu0 %v5585_v19  ;;  %v5602_v6 = vld [vmem:[%s7710_s1 + $0xaac] ss:$16 sps:$4 sm:$0xff]   ;;  %v5630_v3 = vld [vmem:[%s7710_s1 + $0xa08] ss:$16 sps:$4 sm:$0xff]  }
 0x184   :  { %3774 = vmatpush1.bf16.msra.mxu1 %v5588_v20  ;;  %v3440_v30 = vpop.f32.mrf.mxu0  ;;  %3734 = vmatprep.subr.bf16.mxu0 %v5593_v21  ;;  %v5633_v7 = vld [vmem:[%s7710_s1 + $0x9e8] ss:$16 sps:$4 sm:$0xff]   ;;  %v5647_v12 = vld [vmem:[%s7710_s1 + $0x9ac] ss:$16 sps:$4 sm:$0xff]  }
 0x185   :  { %v3481_v31 = vpop.f32.mrf.mxu1  ;;  %3775 = vmatprep.subr.bf16.mxu1 %v5596_v22  ;;  %v7197_v11 = vadd.f32 %v3479_v25, %v3439_v27  ;;  %v3441_v33 = vadd.f32 %v3440_v30, %v7006_v15  ;;  %3764 = vmatprep.mubr.bf16.mxu0 %v6361_v41  ;;  %v5605_v41 = vld [vmem:[%s7710_s1 + $0x88c] ss:$16 sps:$4 sm:$0xff]   ;;  %v5636_v8 = vld [vmem:[%s7710_s1 + $0xbe8] ss:$16 sps:$4 sm:$0xff]  }
 0x186   :  { %3805 = vmatprep.mubr.bf16.mxu1 %v6366_v43  ;;  %v3442_v34 = vpop.f32.mrf.mxu0  ;;  %v5608_v43 = vld [vmem:[%s7710_s1 + $0xa8c] ss:$16 sps:$4 sm:$0xff]   ;;  %v5639_v18 = vld [vmem:[%s7710_s1 + $0x9c8] ss:$16 sps:$4 sm:$0xff]  }
 0x187   :  { %v3483_v36 = vpop.f32.mrf.mxu1  ;;  %v7202_v38 = vadd.f32 %v3481_v31, %v3441_v33  ;;  %3735 = vmatpush1.bf16.msra.mxu0 %v5591_v28  ;;  %v5642_v37 = vld [vmem:[%s7710_s1 + $0xbc8] ss:$16 sps:$4 sm:$0xff]   ;;  %v5650_v14 = vld [vmem:[%s7710_s1 + $0xbac] ss:$16 sps:$4 sm:$0xff]  }
 0x188   :  { %3776 = vmatpush1.bf16.msra.mxu1 %v5594_v29  ;;  %v3443_v44 = vpop.f32.mrf.mxu0  ;;  %3736 = vmatprep.subr.bf16.mxu0 %v5599_v26  ;;  %v5645_v49 = vld [vmem:[%s7710_s1 + $0x9a8] ss:$16 sps:$4 sm:$0xff]   ;;  %v5653_v16 = vld [vmem:[%s7710_s1 + $0x98c] ss:$16 sps:$4 sm:$0xff]  }
 0x189   :  { %v3484_v15 = vpop.f32.mrf.mxu1  ;;  %3777 = vmatprep.subr.bf16.mxu1 %v5602_v6  ;;  %v5648_v46 = vld [vmem:[%s7710_s1 + $0xba8] ss:$16 sps:$4 sm:$0xff]   ;;  %v5656_v17 = vld [vmem:[%s7710_s1 + $0xb8c] ss:$16 sps:$4 sm:$0xff]  }
 0x18a   :  { %v5651_v23 = vld [vmem:[%s7710_s1 + $0x988] ss:$16 sps:$4 sm:$0xff]   ;;  %v5659_v20 = vld [vmem:[%s7710_s1 + $0x96c] ss:$16 sps:$4 sm:$0xff]  }
 0x18b   :  { %3737 = vmatpush1.bf16.msra.mxu0 %v5597_v32  ;;  %v5654_v19 = vld [vmem:[%s7710_s1 + $0xb88] ss:$16 sps:$4 sm:$0xff]   ;;  %v5662_v21 = vld [vmem:[%s7710_s1 + $0xb6c] ss:$16 sps:$4 sm:$0xff]  }
 0x18c   :  { %3778 = vmatpush1.bf16.msra.mxu1 %v5600_v40  ;;  %3738 = vmatprep.subr.bf16.mxu0 %v5605_v41  ;;  %v5657_v22 = vld [vmem:[%s7710_s1 + $0x968] ss:$16 sps:$4 sm:$0xff]   ;;  %v5665_v25 = vld [vmem:[%s7710_s1 + $0x94c] ss:$16 sps:$4 sm:$0xff]  }
 0x18d   :  { %3779 = vmatprep.subr.bf16.mxu1 %v5608_v43  ;;  %v5660_v24 = vld [vmem:[%s7710_s1 + $0xb68] ss:$16 sps:$4 sm:$0xff]   ;;  %v5668_v27 = vld [vmem:[%s7710_s1 + $0xb4c] ss:$16 sps:$4 sm:$0xff]  }
 0x18e   :  { %v5663_v28 = vld [vmem:[%s7710_s1 + $0x948] ss:$16 sps:$4 sm:$0xff]   ;;  %v5671_v30 = vld [vmem:[%s7710_s1 + $0x92c] ss:$16 sps:$4 sm:$0xff]  }
 0x18f   :  { %3739 = vmatpush1.bf16.msra.mxu0 %v5603_v45  ;;  %v5666_v29 = vld [vmem:[%s7710_s1 + $0xb48] ss:$16 sps:$4 sm:$0xff]   ;;  %v5674_v31 = vld [vmem:[%s7710_s1 + $0xb2c] ss:$16 sps:$4 sm:$0xff]  }
 0x190   :  { %3780 = vmatpush1.bf16.msra.mxu1 %v5606_v47  ;;  %3740 = vmatprep.subr.bf16.mxu0 %v5611_v48  ;;  %v5669_v26 = vld [vmem:[%s7710_s1 + $0x928] ss:$16 sps:$4 sm:$0xff]   ;;  %v5677_v33 = vld [vmem:[%s7710_s1 + $0x90c] ss:$16 sps:$4 sm:$0xff]  }
 0x191   :  { %3781 = vmatprep.subr.bf16.mxu1 %v5614_v51  ;;  %v5672_v6 = vld [vmem:[%s7710_s1 + $0xb28] ss:$16 sps:$4 sm:$0xff]   ;;  %v5680_v34 = vld [vmem:[%s7710_s1 + $0xb0c] ss:$16 sps:$4 sm:$0xff]  }
 0x192   :  { %v5675_v36 = vld [vmem:[%s7710_s1 + $0x908] ss:$16 sps:$4 sm:$0xff]   ;;  %v5683_v40 = vld [vmem:[%s7710_s1 + $0xcec] ss:$16 sps:$4 sm:$0xff]  }
 0x193   :  { %3741 = vmatpush1.bf16.msra.mxu0 %v5609_v60  ;;  %v5678_v32 = vld [vmem:[%s7710_s1 + $0xb08] ss:$16 sps:$4 sm:$0xff]   ;;  %v5686_v44 = vld [vmem:[%s7710_s1 + $0xeec] ss:$16 sps:$4 sm:$0xff]  }
 0x194   :  { %3782 = vmatpush1.bf16.msra.mxu1 %v5612_v0  ;;  %3742 = vmatprep.subr.bf16.mxu0 %v5617_v52  ;;  %v5681_v15 = vld [vmem:[%s7710_s1 + $0xce8] ss:$16 sps:$4 sm:$0xff]   ;;  %v5689_v43 = vld [vmem:[%s7710_s1 + $0xccc] ss:$16 sps:$4 sm:$0xff]  }
 0x195   :  { %3783 = vmatprep.subr.bf16.mxu1 %v5620_v53  ;;  %v5684_v41 = vld [vmem:[%s7710_s1 + $0xee8] ss:$16 sps:$4 sm:$0xff]   ;;  %v5692_v45 = vld [vmem:[%s7710_s1 + $0xecc] ss:$16 sps:$4 sm:$0xff]  }
 0x196   :  { %v5687_v60 = vld [vmem:[%s7710_s1 + $0xcc8] ss:$16 sps:$4 sm:$0xff]  }
 0x197   :  { %3743 = vmatpush1.bf16.msra.mxu0 %v5615_v55  ;;  %v5690_v0 = vld [vmem:[%s7710_s1 + $0xec8] ss:$16 sps:$4 sm:$0xff]  }
 0x198   :  { %3784 = vmatpush1.bf16.msra.mxu1 %v5618_v56  ;;  %3744 = vmatprep.subr.bf16.mxu0 %v5623_v57  ;;  %v5693_v57 = vld [vmem:[%s7710_s1 + $0xca8] ss:$16 sps:$4 sm:$0xff]  }
 0x199   :  { %3785 = vmatprep.subr.bf16.mxu1 %v5626_v58  ;;  %v5696_v58 = vld [vmem:[%s7710_s1 + $0xea8] ss:$16 sps:$4 sm:$0xff]  }
 0x19b   :  { %3745 = vmatpush1.bf16.msra.mxu0 %v5621_v61 }
 0x19c   :  { %3786 = vmatpush1.bf16.msra.mxu1 %v5624_v62  ;;  %3746 = vmatprep.subr.bf16.mxu0 %v5629_v63  ;;  %v5699_v63 = vld [vmem:[%s7710_s1 + $0xc88] ss:$16 sps:$4 sm:$0xff]  }
 0x19d   :  { %3787 = vmatprep.subr.bf16.mxu1 %v5632_v1  ;;  %v5702_v1 = vld [vmem:[%s7710_s1 + $0xe88] ss:$16 sps:$4 sm:$0xff]  }
 0x19f   :  { %3747 = vmatpush1.bf16.msra.mxu0 %v5627_v2  ;;  %v5707_v2 = vld [vmem:[%s7710_s1 + $0xc6c] ss:$16 sps:$4 sm:$0xff]  }
 0x1a0   :  { %3788 = vmatpush1.bf16.msra.mxu1 %v5630_v3  ;;  %3748 = vmatprep.subr.bf16.mxu0 %v5635_v4  ;;  %v5710_v3 = vld [vmem:[%s7710_s1 + $0xe6c] ss:$16 sps:$4 sm:$0xff]   ;;  %v5705_v4 = vld [vmem:[%s7710_s1 + $0xc68] ss:$16 sps:$4 sm:$0xff]  }
 0x1a1   :  { %3789 = vmatprep.subr.bf16.mxu1 %v5638_v5  ;;  %v5708_v5 = vld [vmem:[%s7710_s1 + $0xe68] ss:$16 sps:$4 sm:$0xff]  }
 0x1a3   :  { %3749 = vmatpush2.bf16.msra.mxu0 %v5633_v7  ;;  %v5713_v7 = vld [vmem:[%s7710_s1 + $0xc4c] ss:$16 sps:$4 sm:$0xff]  }
 0x1a4   :  { %3790 = vmatpush2.bf16.msra.mxu1 %v5636_v8  ;;  %3750 = vmatprep.subr.bf16.mxu0 %v5641_v9  ;;  %v5716_v8 = vld [vmem:[%s7710_s1 + $0xe4c] ss:$16 sps:$4 sm:$0xff]   ;;  %v5711_v9 = vld [vmem:[%s7710_s1 + $0xc48] ss:$16 sps:$4 sm:$0xff]  }
 0x1a5   :  { %3791 = vmatprep.subr.bf16.mxu1 %v5644_v13  ;;  %v5714_v13 = vld [vmem:[%s7710_s1 + $0xe48] ss:$16 sps:$4 sm:$0xff]  }
 0x1a7   :  { %3751 = vmatpush2.bf16.msra.mxu0 %v5639_v18  ;;  %v5719_v18 = vld [vmem:[%s7710_s1 + $0xc2c] ss:$16 sps:$4 sm:$0xff]  }
 0x1a8   :  { %3792 = vmatpush2.bf16.msra.mxu1 %v5642_v37  ;;  %3752 = vmatprep.subr.bf16.mxu0 %v5647_v12  ;;  %v5722_v37 = vld [vmem:[%s7710_s1 + $0xe2c] ss:$16 sps:$4 sm:$0xff]   ;;  %v5717_v12 = vld [vmem:[%s7710_s1 + $0xc28] ss:$16 sps:$4 sm:$0xff]  }
 0x1a9   :  { %3793 = vmatprep.subr.bf16.mxu1 %v5650_v14  ;;  %v5720_v14 = vld [vmem:[%s7710_s1 + $0xe28] ss:$16 sps:$4 sm:$0xff]  }
 0x1ab   :  { %3753 = vmatpush2.bf16.msra.mxu0 %v5645_v49  ;;  %v5725_v49 = vld [vmem:[%s7710_s1 + $0xc0c] ss:$16 sps:$4 sm:$0xff]  }
 0x1ac   :  { %3794 = vmatpush2.bf16.msra.mxu1 %v5648_v46  ;;  %3754 = vmatprep.subr.bf16.mxu0 %v5653_v16  ;;  %v5728_v46 = vld [vmem:[%s7710_s1 + $0xe0c] ss:$16 sps:$4 sm:$0xff]   ;;  %v5723_v16 = vld [vmem:[%s7710_s1 + $0xc08] ss:$16 sps:$4 sm:$0xff]  }
 0x1ad   :  { %3795 = vmatprep.subr.bf16.mxu1 %v5656_v17  ;;  %v5726_v17 = vld [vmem:[%s7710_s1 + $0xe08] ss:$16 sps:$4 sm:$0xff]  }
 0x1af   :  { %3755 = vmatpush2.bf16.msra.mxu0 %v5651_v23  ;;  %v5731_v23 = vld [vmem:[%s7710_s1 + $0xdec] ss:$16 sps:$4 sm:$0xff]  }
 0x1b0   :  { %3796 = vmatpush2.bf16.msra.mxu1 %v5654_v19  ;;  %3756 = vmatprep.subr.bf16.mxu0 %v5659_v20  ;;  %v5734_v19 = vld [vmem:[%s7710_s1 + $0xfec] ss:$16 sps:$4 sm:$0xff]   ;;  %v5729_v20 = vld [vmem:[%s7710_s1 + $0xde8] ss:$16 sps:$4 sm:$0xff]  }
 0x1b1   :  { %3797 = vmatprep.subr.bf16.mxu1 %v5662_v21  ;;  %v5732_v21 = vld [vmem:[%s7710_s1 + $0xfe8] ss:$16 sps:$4 sm:$0xff]  }
 0x1b3   :  { %3757 = vmatpush2.bf16.msra.mxu0 %v5657_v22  ;;  %v5737_v22 = vld [vmem:[%s7710_s1 + $0xdcc] ss:$16 sps:$4 sm:$0xff]  }
 0x1b4   :  { %3798 = vmatpush2.bf16.msra.mxu1 %v5660_v24  ;;  %3758 = vmatprep.subr.bf16.mxu0 %v5665_v25  ;;  %v5740_v24 = vld [vmem:[%s7710_s1 + $0xfcc] ss:$16 sps:$4 sm:$0xff]   ;;  %v5735_v25 = vld [vmem:[%s7710_s1 + $0xdc8] ss:$16 sps:$4 sm:$0xff]  }
 0x1b5   :  { %3799 = vmatprep.subr.bf16.mxu1 %v5668_v27  ;;  %v5738_v27 = vld [vmem:[%s7710_s1 + $0xfc8] ss:$16 sps:$4 sm:$0xff]  }
 0x1b7   :  { %3759 = vmatpush2.bf16.msra.mxu0 %v5663_v28  ;;  %v5743_v28 = vld [vmem:[%s7710_s1 + $0xdac] ss:$16 sps:$4 sm:$0xff]  }
 0x1b8   :  { %3800 = vmatpush2.bf16.msra.mxu1 %v5666_v29  ;;  %3760 = vmatprep.subr.bf16.mxu0 %v5671_v30  ;;  %v5746_v29 = vld [vmem:[%s7710_s1 + $0xfac] ss:$16 sps:$4 sm:$0xff]   ;;  %v5741_v30 = vld [vmem:[%s7710_s1 + $0xda8] ss:$16 sps:$4 sm:$0xff]  }
 0x1b9   :  { %3801 = vmatprep.subr.bf16.mxu1 %v5674_v31  ;;  %v5744_v31 = vld [vmem:[%s7710_s1 + $0xfa8] ss:$16 sps:$4 sm:$0xff]  }
 0x1bb   :  { %3761 = vmatpush2.bf16.msra.mxu0 %v5669_v26  ;;  %v5749_v26 = vld [vmem:[%s7710_s1 + $0xd8c] ss:$16 sps:$4 sm:$0xff]  }
 0x1bc   :  { %3802 = vmatpush2.bf16.msra.mxu1 %v5672_v6  ;;  %3762 = vmatprep.subr.bf16.mxu0 %v5677_v33  ;;  %v5752_v6 = vld [vmem:[%s7710_s1 + $0xf8c] ss:$16 sps:$4 sm:$0xff]   ;;  %v5747_v33 = vld [vmem:[%s7710_s1 + $0xd88] ss:$16 sps:$4 sm:$0xff]  }
 0x1bd   :  { %3803 = vmatprep.subr.bf16.mxu1 %v5680_v34  ;;  %v5750_v34 = vld [vmem:[%s7710_s1 + $0xf88] ss:$16 sps:$4 sm:$0xff]  }
 0x1bf   :  { %3763 = vmatpush2.bf16.msra.mxu0 %v5675_v36  ;;  %v5755_v36 = vld [vmem:[%s7710_s1 + $0xd6c] ss:$16 sps:$4 sm:$0xff]  }
 0x1c0   :  { %3804 = vmatpush2.bf16.msra.mxu1 %v5678_v32  ;;  %3814 = vmatprep.subr.bf16.mxu0 %v5683_v40  ;;  %v5758_v32 = vld [vmem:[%s7710_s1 + $0xf6c] ss:$16 sps:$4 sm:$0xff]   ;;  %v5753_v40 = vld [vmem:[%s7710_s1 + $0xd68] ss:$16 sps:$4 sm:$0xff]  }
 0x1c1   :  { %3855 = vmatprep.subr.bf16.mxu1 %v5686_v44  ;;  %v5756_v44 = vld [vmem:[%s7710_s1 + $0xf68] ss:$16 sps:$4 sm:$0xff]  }
 0x1c2   :  { %v3520_v47 = vpop.f32.mrf.mxu0  ;;  %3765 = vmatmul.mubr.bf16.vlgmr.msra.gmra.mxu0 %v6537_v50  ;;  %v5695_v50 = vld [vmem:[%s7710_s1 + $0xcac] ss:$16 sps:$4 sm:$0xff]  }
 0x1c3   :  { %v3561_v48 = vpop.f32.mrf.mxu1  ;;  %3806 = vmatmul.mubr.bf16.vlgmr.msra.gmra.mxu1 %v6553_v35  ;;  %v3521_v51 = vadd.f32 %v3520_v47, %v7197_v11  ;;  %3815 = vmatpush1.bf16.msra.mxu0 %v5681_v15  ;;  %v5698_v35 = vld [vmem:[%s7710_s1 + $0xeac] ss:$16 sps:$4 sm:$0xff]  }
 0x1c4   :  { %3856 = vmatpush1.bf16.msra.mxu1 %v5684_v41  ;;  %v7393_v52 = vpop.f32.mrf.mxu0  ;;  %3816 = vmatprep.subr.bf16.mxu0 %v5689_v43  ;;  %v5761_v15 = vld [vmem:[%s7710_s1 + $0xd4c] ss:$16 sps:$4 sm:$0xff]   ;;  %v5759_v43 = vld [vmem:[%s7710_s1 + $0xd48] ss:$16 sps:$4 sm:$0xff]  }
 0x1c5   :  { %v7395_v53 = vpop.f32.mrf.mxu1  ;;  %3857 = vmatprep.subr.bf16.mxu1 %v5692_v45  ;;  %v7403_v11 = vadd.f32 %v3561_v48, %v3521_v51  ;;  %3846 = vmatprep.mubr.bf16.mxu0 %v6549_v54  ;;  %v5701_v54 = vld [vmem:[%s7710_s1 + $0xc8c] ss:$16 sps:$4 sm:$0xff]   ;;  %v5762_v45 = vld [vmem:[%s7710_s1 + $0xf48] ss:$16 sps:$4 sm:$0xff]   ;;  %v3523_v51 = vadd.f32 %v7393_v52, %v7202_v38 }
 0x1c6   :  { %3887 = vmatprep.mubr.bf16.mxu1 %v6569_v59  ;;  %v3524_v55 = vpop.f32.mrf.mxu0  ;;  %v5704_v59 = vld [vmem:[%s7710_s1 + $0xe8c] ss:$16 sps:$4 sm:$0xff]  }
 0x1c7   :  { %v3565_v56 = vpop.f32.mrf.mxu1  ;;  %3817 = vmatpush1.bf16.msra.mxu0 %v5687_v60  ;;  %v5764_v41 = vld [vmem:[%s7710_s1 + $0xf4c] ss:$16 sps:$4 sm:$0xff]   ;;  %v5765_v60 = vld [vmem:[%s7710_s1 + $0xd28] ss:$16 sps:$4 sm:$0xff]   ;;  %v3564_v52 = vadd.f32 %v7395_v53, %v3523_v51  ;;  %v558_v53 = vsub.s32 3, %v6001_v42 }
 0x1c8   :  { %3858 = vmatpush1.bf16.msra.mxu1 %v5690_v0  ;;  %v3525_v61 = vpop.f32.mrf.mxu0  ;;  %3818 = vmatprep.subr.bf16.mxu0 %v5695_v50  ;;  %v5767_v47 = vld [vmem:[%s7710_s1 + $0xd2c] ss:$16 sps:$4 sm:$0xff]   ;;  %v5768_v0 = vld [vmem:[%s7710_s1 + $0xf28] ss:$16 sps:$4 sm:$0xff]   ;;  %v554_v56 = vsub.s32 2, %v6001_v42 }
 0x1c9   :  { %v3566_v62 = vpop.f32.mrf.mxu1  ;;  %3859 = vmatprep.subr.bf16.mxu1 %v5698_v35  ;;  %v5770_v48 = vld [vmem:[%s7710_s1 + $0xf2c] ss:$16 sps:$4 sm:$0xff]   ;;  %v5771_v35 = vld [vmem:[%s7710_s1 + $0xd08] ss:$16 sps:$4 sm:$0xff]   ;;  %v5817_v61 = vld [vmem:[%s7711_s2] sm:$0xf] }
 0x1ca   :  { %v5773_v50 = vld [vmem:[%s7710_s1 + $0xd0c] ss:$16 sps:$4 sm:$0xff]   ;;  %v5774_v55 = vld [vmem:[%s7710_s1 + $0xf08] ss:$16 sps:$4 sm:$0xff]   ;;  %v555_v62 = vrot.slane %v5817_v61, %v554_v56  ;;  %v5808_v56 = vld [vmem:[%s7712_s3 + $0x80] sm:$0xff]  }
 0x1cb   :  { %3819 = vmatpush1.bf16.msra.mxu0 %v5693_v57  ;;  %v5776_v38 = vld [vmem:[%s7710_s1 + $0xf0c] ss:$16 sps:$4 sm:$0xff]  }
 0x1cc   :  { %3860 = vmatpush1.bf16.msra.mxu1 %v5696_v58  ;;  %3820 = vmatprep.subr.bf16.mxu0 %v5701_v54  ;;  %v5777_v57 = vld [vmem:[%s7712_s3 + $0x78] sm:$0xff]   ;;  %v3897_v58 = vmax.f32 %v3564_v52, 0.0 }
 0x1cd   :  { %3861 = vmatprep.subr.bf16.mxu1 %v5704_v59  ;;  %v5778_v54 = vld [vmem:[%s7712_s3 + $0x38] sm:$0xff]   ;;  %v5779_v59 = vld [vmem:[%s7712_s3 + $0x70] sm:$0xff]  }
 0x1cf   :  { %3821 = vmatpush1.bf16.msra.mxu0 %v5699_v63  ;;  %v3901_v63 = vpack.c.bf16 %v3897_v58, %v3897_v58  ;;  %v5841_v58 = vmov 0.0  }
 0x1d0   :  { %3862 = vmatpush1.bf16.msra.mxu1 %v5702_v1  ;;  %3822 = vmatprep.subr.bf16.mxu0 %v5707_v2  ;;  %v559_v1 = vrot.slane %v5817_v61, %v558_v53  ;;  %v5810_v53 = vld [vmem:[%s7714_s5 + $0x30] sm:$0xff]   ;;  %v5811_v61 = vld [vmem:[%s7714_s5 + $0x28] sm:$0xff]  }
 0x1d1   :  { %3863 = vmatprep.subr.bf16.mxu1 %v5710_v3 }
 0x1d3   :  { %3823 = vmatpush1.bf16.msra.mxu0 %v5705_v4  ;;  %v5780_v4 = vld [vmem:[%s7712_s3 + $0x30] sm:$0xff]  }
 0x1d4   :  { %3864 = vmatpush1.bf16.msra.mxu1 %v5708_v5  ;;  %3824 = vmatprep.subr.bf16.mxu0 %v5713_v7 }
 0x1d5   :  { %3865 = vmatprep.subr.bf16.mxu1 %v5716_v8  ;;  %v5781_v8 = vld [vmem:[%s7712_s3 + $0x68] sm:$0xff]  }
 0x1d7   :  { %3825 = vmatpush1.bf16.msra.mxu0 %v5711_v9 }
 0x1d8   :  { %3866 = vmatpush1.bf16.msra.mxu1 %v5714_v13  ;;  %3826 = vmatprep.subr.bf16.mxu0 %v5719_v18 }
 0x1d9   :  { %3867 = vmatprep.subr.bf16.mxu1 %v5722_v37 }
 0x1db   :  { %3827 = vmatpush1.bf16.msra.mxu0 %v5717_v12  ;;  %v5783_v12 = vld [vmem:[%s7712_s3 + $0x60] sm:$0xff]  }
 0x1dc   :  { %3868 = vmatpush1.bf16.msra.mxu1 %v5720_v14  ;;  %3828 = vmatprep.subr.bf16.mxu0 %v5725_v49 }
 0x1dd   :  { %3869 = vmatprep.subr.bf16.mxu1 %v5728_v46  ;;  %v5793_v46 = vld [vmem:[%s7712_s3 + $0xf8] sm:$0xff]  }
 0x1df   :  { %3829 = vmatpush1.bf16.msra.mxu0 %v5723_v16  ;;  %v5794_v16 = vld [vmem:[%s7712_s3 + $0xb8] sm:$0xff]  }
 0x1e0   :  { %3870 = vmatpush1.bf16.msra.mxu1 %v5726_v17  ;;  %3830 = vmatprep.subr.bf16.mxu0 %v5731_v23  ;;  %v5795_v17 = vld [vmem:[%s7712_s3 + $0xf0] sm:$0xff]   ;;  %v5784_v23 = vld [vmem:[%s7712_s3 + $0x20] sm:$0xff]  }
 0x1e1   :  { %3871 = vmatprep.subr.bf16.mxu1 %v5734_v19  ;;  %v5796_v19 = vld [vmem:[%s7712_s3 + $0xb0] sm:$0xff]  }
 0x1e3   :  { %3831 = vmatpush2.bf16.msra.mxu0 %v5729_v20  ;;  %v5785_v20 = vld [vmem:[%s7712_s3 + $0x58] sm:$0xff]  }
 0x1e4   :  { %3872 = vmatpush2.bf16.msra.mxu1 %v5732_v21  ;;  %3832 = vmatprep.subr.bf16.mxu0 %v5737_v22  ;;  %v5797_v21 = vld [vmem:[%s7712_s3 + $0xe8] sm:$0xff]   ;;  %v5786_v22 = vld [vmem:[%s7712_s3 + $0x18] sm:$0xff]  }
 0x1e5   :  { %3873 = vmatprep.subr.bf16.mxu1 %v5740_v24  ;;  %v5798_v24 = vld [vmem:[%s7712_s3 + $0xa8] sm:$0xff]  }
 0x1e7   :  { %3833 = vmatpush2.bf16.msra.mxu0 %v5735_v25  ;;  %v5787_v25 = vld [vmem:[%s7712_s3 + $0x50] sm:$0xff]  }
 0x1e8   :  { %3874 = vmatpush2.bf16.msra.mxu1 %v5738_v27  ;;  %3834 = vmatprep.subr.bf16.mxu0 %v5743_v28  ;;  %v5799_v27 = vld [vmem:[%s7712_s3 + $0xe0] sm:$0xff]   ;;  %v5788_v28 = vld [vmem:[%s7712_s3 + $0x10] sm:$0xff]  }
 0x1e9   :  { %3875 = vmatprep.subr.bf16.mxu1 %v5746_v29  ;;  %v5800_v29 = vld [vmem:[%s7712_s3 + $0xa0] sm:$0xff]  }
 0x1eb   :  { %3835 = vmatpush2.bf16.msra.mxu0 %v5741_v30  ;;  %v5789_v30 = vld [vmem:[%s7712_s3 + $0x48] sm:$0xff]  }
 0x1ec   :  { %3876 = vmatpush2.bf16.msra.mxu1 %v5744_v31  ;;  %3836 = vmatprep.subr.bf16.mxu0 %v5749_v26  ;;  %v5801_v31 = vld [vmem:[%s7712_s3 + $0xd8] sm:$0xff]   ;;  %v5790_v26 = vld [vmem:[%s7712_s3 + $0x8] sm:$0xff]  }
 0x1ed   :  { %3877 = vmatprep.subr.bf16.mxu1 %v5752_v6  ;;  %v5802_v6 = vld [vmem:[%s7712_s3 + $0x98] sm:$0xff]  }
 0x1ef   :  { %3837 = vmatpush2.bf16.msra.mxu0 %v5747_v33  ;;  %v5791_v33 = vld [vmem:[%s7712_s3 + $0x40] sm:$0xff]  }
 0x1f0   :  { %3878 = vmatpush2.bf16.msra.mxu1 %v5750_v34  ;;  %3838 = vmatprep.subr.bf16.mxu0 %v5755_v36  ;;  %v5792_v34 = vld [vmem:[%s7712_s3] sm:$0xff]   ;;  %v3896_v36 = vmax.f32 %v7403_v11, 0.0  ;;  %v5805_v11 = vld [vmem:[%s7712_s3 + $0xc8] sm:$0xff]  }
 0x1f1   :  { %3879 = vmatprep.subr.bf16.mxu1 %v5758_v32 }
 0x1f2   :  { %v3900_v32 = vpack.c.bf16 %v3896_v36, %v3896_v36 }
 0x1f3   :  { %3839 = vmatpush2.bf16.msra.mxu0 %v5753_v40  ;;  %v5803_v40 = vld [vmem:[%s7712_s3 + $0xd0] sm:$0xff]  }
 0x1f4   :  { %3880 = vmatpush2.bf16.msra.mxu1 %v5756_v44  ;;  %3840 = vmatprep.subr.bf16.mxu0 %v5761_v15  ;;  %v5804_v44 = vld [vmem:[%s7712_s3 + $0x90] sm:$0xff]  }
 0x1f5   :  { %3881 = vmatprep.subr.bf16.mxu1 %v5764_v41 }
 0x1f7   :  { %3841 = vmatpush2.bf16.msra.mxu0 %v5759_v43 }
 0x1f8   :  { %3882 = vmatpush2.bf16.msra.mxu1 %v5762_v45  ;;  %3842 = vmatprep.subr.bf16.mxu0 %v5767_v47 }
 0x1f9   :  { %3883 = vmatprep.subr.bf16.mxu1 %v5770_v48 }
 0x1fb   :  { %3843 = vmatpush2.bf16.msra.mxu0 %v5765_v60  ;;  %v5806_v60 = vld [vmem:[%s7712_s3 + $0x88] sm:$0xff]  }
 0x1fc   :  { %3884 = vmatpush2.bf16.msra.mxu1 %v5768_v0  ;;  %3844 = vmatprep.subr.bf16.mxu0 %v5773_v50 }
 0x1fd   :  { %3885 = vmatprep.subr.bf16.mxu1 %v5776_v38 }
 0x1ff   :  { %3845 = vmatpush2.bf16.msra.mxu0 %v5771_v35 }
 0x200   :  { %3886 = vmatpush2.bf16.msra.mxu1 %v5774_v55  ;;  %4930 = vmatprep.subr.bf16.mxu0 %v5777_v57  ;;  %v5807_v55 = vld [vmem:[%s7712_s3 + $0xc0] sm:$0xff]   ;;  %v5809_v57 = vld [vmem:[%s7714_s5 + $0x38] sm:$0xff]  }
 0x201   :  { %4952 = vmatprep.subr.bf16.mxu1 %v5793_v46 }
 0x202   :  { %v3602_v2 = vpop.f32.mrf.mxu0  ;;  %3847 = vmatmul.mubr.bf16.vlgmr.msra.gmra.mxu0 %v6751_v10 }
 0x203   :  { %v3643_v42 = vpop.f32.mrf.mxu1  ;;  %3888 = vmatmul.mubr.bf16.vlgmr.msra.gmra.mxu1 %v6766_v39  ;;  %v3603_v3 = vadd.f32 %v3602_v2, %v555_v62  ;;  %4931 = vmatpush3.bf16.msra.mxu0 %v5778_v54  ;;  %v5782_v39 = vld [vmem:[%s7712_s3 + $0x28] sm:$0xff]   ;;  %v5812_v62 = vld [vmem:[%s7714_s5 + $0x20] sm:$0xff]   ;;  %v5813_v54 = vld [vmem:[%s7714_s5 + $0x18] sm:$0xff]  }
 0x204   :  { %4199 = vmatprep.mubr.bf16.mxu0 %v3901_v63  ;;  %v3604_v5 = vpop.f32.mrf.mxu0  ;;  %4932 = vmatprep.subr.bf16.mxu0 %v5779_v59 }
 0x205   :  { %v3645_v7 = vpop.f32.mrf.mxu1  ;;  %v3644_v9 = vadd.f32 %v3643_v42, %v3603_v3  ;;  %v3605_v13 = vadd.f32 %v3604_v5, %v559_v1  ;;  %4953 = vmatpush3.bf16.msra.mxu1 %v5794_v16 }
 0x206   :  { %v3606_v18 = vpop.f32.mrf.mxu0  ;;  %4954 = vmatprep.subr.bf16.mxu1 %v5795_v17 }
 0x207   :  { %v3647_v10 = vpop.f32.mrf.mxu1  ;;  %v3646_v37 = vadd.f32 %v3645_v7, %v3605_v13  ;;  %4933 = vmatpush3.bf16.msra.mxu0 %v5780_v4 }
 0x208   :  { %v3607_v14 = vpop.f32.mrf.mxu0  ;;  %4934 = vmatprep.subr.bf16.mxu0 %v5781_v8 }
 0x209   :  { %v3648_v49 = vpop.f32.mrf.mxu1  ;;  %4955 = vmatpush3.bf16.msra.mxu1 %v5796_v19 }
 0x20a   :  { %4956 = vmatprep.subr.bf16.mxu1 %v5797_v21 }
 0x20b   :  { %4935 = vmatpush3.bf16.msra.mxu0 %v5782_v39 }
 0x20c   :  { %4936 = vmatprep.subr.bf16.mxu0 %v5783_v12 }
 0x20d   :  { %4957 = vmatpush3.bf16.msra.mxu1 %v5798_v24 }
 0x20e   :  { %4958 = vmatprep.subr.bf16.mxu1 %v5799_v27 }
 0x20f   :  { %4937 = vmatpush3.bf16.msra.mxu0 %v5784_v23 }
 0x210   :  { %4938 = vmatprep.subr.bf16.mxu0 %v5785_v20 }
 0x211   :  { %4959 = vmatpush3.bf16.msra.mxu1 %v5800_v29 }
 0x212   :  { %4960 = vmatprep.subr.bf16.mxu1 %v5801_v31  ;;  %v5814_v31 = vld [vmem:[%s7714_s5 + $0x10] sm:$0xff]  }
 0x213   :  { %4939 = vmatpush3.bf16.msra.mxu0 %v5786_v22 }
 0x214   :  { %4940 = vmatprep.subr.bf16.mxu0 %v5787_v25 }
 0x215   :  { %4961 = vmatpush3.bf16.msra.mxu1 %v5802_v6  ;;  %v5816_v6 = vld [vmem:[%s7714_s5] sm:$0xff]  }
 0x216   :  { %4962 = vmatprep.subr.bf16.mxu1 %v5803_v40 }
 0x217   :  { %4941 = vmatpush3.bf16.msra.mxu0 %v5788_v28 }
 0x218   :  { %4942 = vmatprep.subr.bf16.mxu0 %v5789_v30 }
 0x219   :  { %4963 = vmatpush3.bf16.msra.mxu1 %v5804_v44 }
 0x21a   :  { %4964 = vmatprep.subr.bf16.mxu1 %v5805_v11 }
 0x21b   :  { %4943 = vmatpush3.bf16.msra.mxu0 %v5790_v26  ;;  %v5815_v26 = vld [vmem:[%s7714_s5 + $0x8] sm:$0xff]   ;;  %s5843_s5 = smov [#allocation2]  }
 0x21c   :  { %4944 = vmatprep.subr.bf16.mxu0 %v5791_v33  ;;  %v4888_v33 = vld [vmem:[%s7713_s4] ss:$0 sm:$0xff]  ;;  %s4368_s16 = sshll.u32 %s5843_s5, 4  ;;  %s4369_s16 = int_to_ptr.vmem [resolvable:$true] %s4368_s16 }
 0x21d   :  { %4965 = vmatpush3.bf16.msra.mxu1 %v5806_v60  ;;  %s5818_s4 = scalar_lea.vmem %s4369_s16, 32  ;;  %p5823_p1 = scmp.lt.s32.totalorder %s4369_s16, %s4369_s16 }
 0x21e   :  { %4966 = vmatprep.subr.bf16.mxu1 %v5807_v55  ;;  %p5819_p0 = scmp.ne.s32.totalorder %s4369_s16, %s5818_s4  ;;  %p5824_p2 = scmp.lt.s32.totalorder %s5818_s4, %s5818_s4 }
 0x21f   :  { %4945 = vmatpush3.bf16.msra.mxu0 %v5792_v34 }
 0x220   :  { %4983 = vmatprep.subr.bf16.mxu0 %v5841_v58  ;;  %p5825_p3 = por %p5824_p2, %p5823_p1 }
 0x221   :  { %4967 = vmatpush3.bf16.msra.mxu1 %v5808_v56 }
 0x222   :  { %4200 = vmatmul.mubr.bf16.vlgmr.msra.gmra.mxu0 %v3900_v32  ;;  %p5826_p4 = pnand %p5825_p3, %p5819_p0 }
 0x223   :  { %4984 = vmatpush3.bf16.msra.mxu0 %v5809_v57  ;;  %4999 = vmatprep.mubr.msk.bf16.mxu0 %vm5842_vm0, %v5841_v58 }
 0x224   :  { %4985 = vmatprep.subr.bf16.mxu0 %v5841_v58 }
 0x227   :  { %4986 = vmatpush3.bf16.msra.mxu0 %v5810_v53 }
 0x228   :  { %4987 = vmatprep.subr.bf16.mxu0 %v5841_v58 }
 0x22b   :  { %4988 = vmatpush3.bf16.msra.mxu0 %v5811_v61 }
 0x22c   :  { %4989 = vmatprep.subr.bf16.mxu0 %v5841_v58 }
 0x22f   :  { %4990 = vmatpush3.bf16.msra.mxu0 %v5812_v62 }
 0x230   :  { %4991 = vmatprep.subr.bf16.mxu0 %v5841_v58 }
 0x233   :  { %4992 = vmatpush3.bf16.msra.mxu0 %v5813_v54 }
 0x234   :  { %4993 = vmatprep.subr.bf16.mxu0 %v5841_v58 }
 0x237   :  { %4994 = vmatpush3.bf16.msra.mxu0 %v5814_v31 }
 0x238   :  { %4995 = vmatprep.subr.bf16.mxu0 %v5841_v58 }
 0x23b   :  { %4996 = vmatpush3.bf16.msra.mxu0 %v5815_v26 }
 0x23c   :  { %4997 = vmatprep.subr.bf16.mxu0 %v5841_v58 }
 0x23f   :  { %4998 = vmatpush3.bf16.msra.mxu0 %v5816_v6 }
 0x242   :  { %v3684_v15 = vpop.f32.mrf.mxu0 }
 0x243   :  { %v3725_v41 = vpop.f32.mrf.mxu1  ;;  %v3685_v43 = vadd.f32 %v3684_v15, %v3644_v9 }
 0x244   :  { %v3686_v45 = vpop.f32.mrf.mxu0 }
 0x245   :  { %v3727_v47 = vpop.f32.mrf.mxu1  ;;  %v3726_v48 = vadd.f32 %v3725_v41, %v3685_v43  ;;  %v3687_v51 = vadd.f32 %v3686_v45, %v3646_v37 }
 0x246   :  { %v3688_v0 = vpop.f32.mrf.mxu0 }
 0x247   :  { %v3729_v50 = vpop.f32.mrf.mxu1  ;;  %v3728_v38 = vadd.f32 %v3727_v47, %v3687_v51  ;;  %v4921_v47 = vld [vmem:[%s7715_s6] ss:$0 sm:$0xff] }
 0x248   :  { %v3689_v52 = vpop.f32.mrf.mxu0 }
 0x249   :  { %v3730_v35 = vpop.f32.mrf.mxu1 }
 0x282   :  { %v3766_v59 = vpop.f32.mrf.mxu0 }
 0x283   :  { %v3807_v63 = vpop.f32.mrf.mxu1  ;;  %v3767_v1 = vadd.f32 %v3766_v59, %v3726_v48 }
 0x284   :  { %v3768_v2 = vpop.f32.mrf.mxu0 }
 0x285   :  { %v3809_v42 = vpop.f32.mrf.mxu1  ;;  %v3808_v3 = vadd.f32 %v3807_v63, %v3767_v1  ;;  %v3769_v9 = vadd.f32 %v3768_v2, %v3728_v38 }
 0x286   :  { %v3770_v4 = vpop.f32.mrf.mxu0 }
 0x287   :  { %v3811_v5 = vpop.f32.mrf.mxu1  ;;  %v3810_v10 = vadd.f32 %v3809_v42, %v3769_v9 }
 0x288   :  { %v3771_v7 = vpop.f32.mrf.mxu0 }
 0x289   :  { %v3812_v8 = vpop.f32.mrf.mxu1 }
 0x2c2   :  { %v3848_v13 = vpop.f32.mrf.mxu0 }
 0x2c3   :  { %v3889_v18 = vpop.f32.mrf.mxu1  ;;  %v3849_v37 = vadd.f32 %v3848_v13, %v3808_v3 }
 0x2c4   :  { %v3850_v39 = vpop.f32.mrf.mxu0 }
 0x2c5   :  { %v3891_v12 = vpop.f32.mrf.mxu1  ;;  %v3890_v14 = vadd.f32 %v3889_v18, %v3849_v37  ;;  %v3851_v49 = vadd.f32 %v3850_v39, %v3810_v10 }
 0x2c6   :  { %v3852_v46 = vpop.f32.mrf.mxu0 }
 0x2c7   :  { %v3893_v16 = vpop.f32.mrf.mxu1  ;;  %v3892_v17 = vadd.f32 %v3891_v12, %v3851_v49  ;;  %v3898_v23 = vmax.f32 %v3890_v14, 0.0 }
 0x2c8   :  { %v3853_v19 = vpop.f32.mrf.mxu0 }
 0x2c9   :  { %v3894_v20 = vpop.f32.mrf.mxu1  ;;  %v3899_v21 = vmax.f32 %v3892_v17, 0.0  ;;  %v3902_v24 = vpack.c.bf16 %v3898_v23, %v3898_v23 }
 0x2cb   :  { %v3903_v22 = vpack.c.bf16 %v3899_v21, %v3899_v21 }
 0x2cd   :  { %4239 = vmatprep.mubr.bf16.mxu1 %v3903_v22 }
 0x2ce   :  { %4240 = vmatmul.mubr.bf16.vlgmr.msra.gmra.mxu1 %v3902_v24 }
 0x2e2   :  { %v4946_v25 = vpop.f32.mrf.mxu0 }
 0x2e4   :  { %v4947_v27 = vpop.f32.mrf.mxu0 }
 0x2e5   :  { %v4948_v28 = vadd.f32 %v4947_v27, %v4946_v25 }
 0x2e6   :  { %v4949_v29 = vpop.f32.mrf.mxu0 }
 0x2e7   :  { %v4202_v32 = vadd.f32 %v4948_v28, %v4888_v33 }
 0x2e8   :  { %v4950_v30 = vpop.f32.mrf.mxu0 }
 0x38e   :  { %v4968_v34 = vpop.f32.mrf.mxu1 }
 0x390   :  { %v4969_v36 = vpop.f32.mrf.mxu1 }
 0x391   :  { %v4970_v40 = vadd.f32 %v4969_v36, %v4968_v34 }
 0x392   :  { %v4971_v44 = vpop.f32.mrf.mxu1 }
 0x393   :  { %v4242_v15 = vadd.f32 %v4970_v40, %v4202_v32 }
 0x394   :  { %v4972_v41 = vpop.f32.mrf.mxu1 }
 0x395   :  { %v4247_v43 = vmax.f32 %v4242_v15, 0.0 }
 0x397   :  { %v4248_v45 = vpack.c.bf16 %v4247_v43, %v4247_v43 }
 0x399   :  { %5000 = vmatmul.mubr.bf16.vlgmr.msra.gmra.mxu0 %v4248_v45 }
 0x459   :  { %v4354_v11 = vpop.f32.mrf.mxu0 }
 0x45a   :  { %v4355_v48 = vadd.f32 %v4921_v47, %v4354_v11 }
 0x45b   :  { %v5001_v51 = vpop.f32.mrf.mxu0 }
 0x45c   :  { %4361 = vst.msk [vmem:[#allocation2] sm:$0x3] %vm4360_vm1, %v4355_v48 }
 0x45d   :  { %v4357_v60 = vpop.f32.mrf.mxu0 }
 0x45e   :  { %5829 = shalt.err (!%p5826_p4)
}
 0x45f   :  { %4371 = dma.vmem_to_hbm [thread:$0]  %s4369_s16, 32, %s7716_s7, [#allocation3]   ;;  %v5002_v0 = vpop.f32.mrf.mxu0 }
 0x460   :  { %5838 = dma.done.wait [#allocation3], 32  }
 0x461   :  { %5839 = vsyncadd [#allocation3], 4294967264 }
 0x462   :  { %4375 = vsyncpa [#allocation3], 1 }

</bundles_post_ra>
